<compile_context>
chip_gen: v6e
topology: v6e:2x2x1
jax: 0.10.0
libtpu: 0.0.40
codegen_flags: <defaults>
</compile_context>

<pallas_src>
import functools
import math

import jax
import jax.numpy as jnp
from jax import lax
from jax.experimental import pallas as pl
from jax.experimental.pallas import tpu as pltpu

# MXU operand dtype (accumulation is always f32 via preferred_element_type).
MATMUL_DTYPE = jnp.bfloat16


# --------------------------------------------------------------------------
# In-kernel helpers
# --------------------------------------------------------------------------
def _mm(a, b):
    # Weights are already bf16 (pre-cast at init); only activations cast here.
    return jnp.dot(a.astype(MATMUL_DTYPE), b.astype(MATMUL_DTYPE),
                   preferred_element_type=jnp.float32)


def _dot_qk(q, k):
    # (M, Dh) x (N, Dh) -> (M, N), contracting the head dim of both.
    return lax.dot_general(
        q.astype(MATMUL_DTYPE), k.astype(MATMUL_DTYPE),
        (((1,), (1,)), ((), ())), preferred_element_type=jnp.float32)


def _ln(x, g, b, eps=1e-5):                       # PyTorch LayerNorm eps
    mu = jnp.mean(x, axis=-1, keepdims=True)
    var = jnp.mean(jnp.square(x - mu), axis=-1, keepdims=True)
    return (x - mu) * lax.rsqrt(var + eps) * g + b


def _softmax_rows(s):
    s = s - jnp.max(s, axis=-1, keepdims=True)
    p = jnp.exp(s)
    inv = pl.reciprocal(jnp.sum(p, axis=-1, keepdims=True), approx=True)
    return p * inv


def _mha(q, k, v, heads, key_bias):
    # Multi-head attention on full-width q/k/v (already projected). Per-head
    # work is only the score/softmax/PV matmuls; heads are static lane slices
    # and the outputs are re-concatenated along lanes.
    # TODO(synk): at heads=16 (CoCa-L) switch this Python unroll to
    #             lax.fori_loop(..., unroll=2) to bound live ranges.
    Dh = q.shape[-1] // heads
    outs = []
    for h in range(heads):
        sl = slice(h * Dh, (h + 1) * Dh)
        s = _dot_qk(q[:, sl], k[:, sl]) + key_bias     # (M, Tpad) f32
        p = _softmax_rows(s)
        outs.append(_mm(p, v[:, sl]))                  # (M, Dh)
    return jnp.concatenate(outs, axis=-1)              # (M, D)


# --------------------------------------------------------------------------
# Pallas kernels
# --------------------------------------------------------------------------
def _embed_kernel(p_ref, w_ref, cls_ref, pos_ref, g_ref, b_ref, o_ref, *,
                  t_valid):
    # patch matmul + class token + positional embedding + ln_pre, with the
    # token axis zero-padded to a multiple of 8 (sublane-dense tiles).
    Tpad = o_ref.shape[1]
    t = _mm(p_ref[0], w_ref[...])                                  # (Np, D)
    full = jnp.concatenate([cls_ref[...].astype(jnp.float32), t], axis=0)
    full = full + pos_ref[...].astype(jnp.float32)
    full = _ln(full, g_ref[...], b_ref[...])
    if Tpad > t_valid:
        pad = jnp.zeros((Tpad - t_valid, full.shape[-1]), jnp.float32)
        full = jnp.concatenate([full, pad], axis=0)
    o_ref[0] = full.astype(o_ref.dtype)


def _stack_kernel(x_ref,
                  ln1_g, ln1_b, wqkv, bqkv, wproj, bproj,
                  ln2_g, ln2_b, w1, b1, w2, b2,
                  lnp_g, lnp_b, poolq, lnq_g, lnq_b, lnk_g, lnk_b,
                  pwq, pbq, pwk, pbk, pwv, pbv, pwo, pbo, fcw, fcb,
                  o_ref, acc_ref, *, heads, t_valid):
    # One grid step = one transformer layer for one batch element.
    # Residual stream is carried across the depth axis in VMEM scratch.
    layer = pl.program_id(1)
    Tpad, D = acc_ref.shape
    Dh = D // heads
    scale = 1.0 / math.sqrt(Dh)

    # Additive key mask for the zero-padded token rows.
    key_bias = jnp.where(
        lax.broadcasted_iota(jnp.int32, (1, Tpad), 1) < t_valid,
        0.0, -1e30).astype(jnp.float32)

    @pl.when(layer == 0)
    def _():
        acc_ref[...] = x_ref[0].astype(jnp.float32)

    x = acc_ref[...]                                   # (Tpad, D) f32

    # ---- attention residual sub-block: LN1 + fused QKV + MHA + out-proj ----
    y = _ln(x, ln1_g[0], ln1_b[0])
    qkv = _mm(y, wqkv[0]) + bqkv[0]                    # (Tpad, 3D) f32
    q = qkv[:, :D] * scale
    k = qkv[:, D:2 * D]
    v = qkv[:, 2 * D:]
    attn = _mha(q, k, v, heads, key_bias)              # (Tpad, D)
    x = x + _mm(attn, wproj[0]) + bproj[0]

    # ---- MLP residual sub-block: LN2 + MLP(GELU) ----
    y = _ln(x, ln2_g[0], ln2_b[0])
    h = _mm(y, w1[0]) + b1[0]
    h = jax.nn.gelu(h, approximate=True)   # TODO(synk): reference is erf GELU
    x = x + _mm(h, w2[0]) + b2[0]

    acc_ref[...] = x

    # ---- head (last layer only): ln_post + 1-query pooler + fc ----
    @pl.when(layer == pl.num_programs(1) - 1)
    def _():
        xh = _ln(acc_ref[...], lnp_g[...], lnp_b[...])         # ln_post
        kx = _ln(xh, lnk_g[...], lnk_b[...])                   # pooler ln_k
        qq = _ln(poolq[...].astype(jnp.float32),
                 lnq_g[...], lnq_b[...])                       # pooler ln_q
        qf = (_mm(qq, pwq[...]) + pbq[...]) * scale            # (1, D)
        kf = _mm(kx, pwk[...]) + pbk[...]                      # (Tpad, D)
        vf = _mm(kx, pwv[...]) + pbv[...]                      # (Tpad, D)
        pooled = _mha(qf, kf, vf, heads, key_bias)             # (1, D)
        pooled = _mm(pooled, pwo[...]) + pbo[...]              # (1, D)
        logits = _mm(pooled, fcw[...]) + fcb[...]              # (1, NCpad)
        o_ref[0] = logits.astype(o_ref.dtype)


# --------------------------------------------------------------------------
# BlockSpec helpers
# --------------------------------------------------------------------------
def _const_spec1(a):                       # constant / resident, grid=(B,)
    zeros = (0,) * a.ndim
    return pl.BlockSpec(a.shape, lambda b: zeros)


def _const_spec2(a):                       # constant / resident, grid=(B, L)
    zeros = (0,) * a.ndim
    return pl.BlockSpec(a.shape, lambda b, l: zeros)


def _layer_spec(a):                        # (depth, ...) stacked weight
    rest = (0,) * (a.ndim - 1)
    return pl.BlockSpec((1,) + tuple(a.shape[1:]), lambda b, l: (l,) + rest)


# --------------------------------------------------------------------------
# pallas_call wrappers
# --------------------------------------------------------------------------
def embed_tokens(patches, params, Tpad, t_valid):
    B, Np, CPP = patches.shape
    D = params["patch_w"].shape[1]
    ws = (params["patch_w"], params["class_emb"], params["pos_emb"],
          params["ln_pre_g"], params["ln_pre_b"])
    return pl.pallas_call(
        functools.partial(_embed_kernel, t_valid=t_valid),
        out_shape=jax.ShapeDtypeStruct((B, Tpad, D), jnp.float32),
        grid=(B,),
        in_specs=[pl.BlockSpec((1, Np, CPP), lambda b: (b, 0, 0))]
                 + [_const_spec1(w) for w in ws],
        out_specs=pl.BlockSpec((1, Tpad, D), lambda b: (b, 0, 0)),
        compiler_params=pltpu.CompilerParams(
            dimension_semantics=("parallel",)),
    )(patches, *ws)


def transformer_head(x_emb, params, *, heads, t_valid, depth):
    B, Tpad, D = x_emb.shape
    NCpad = params["fc_w"].shape[1]
    blk = params["blocks"]
    layer_ws = (blk["ln1_g"], blk["ln1_b"], blk["wqkv"], blk["bqkv"],
                blk["wproj"], blk["bproj"], blk["ln2_g"], blk["ln2_b"],
                blk["w1"], blk["b1"], blk["w2"], blk["b2"])
    p = params["pool"]
    head_ws = (params["ln_post_g"], params["ln_post_b"],
               p["query"], p["lnq_g"], p["lnq_b"], p["lnk_g"], p["lnk_b"],
               p["wq"], p["bq"], p["wk"], p["bk"], p["wv"], p["bv"],
               p["wo"], p["bo"], params["fc_w"], params["fc_b"])
    return pl.pallas_call(
        functools.partial(_stack_kernel, heads=heads, t_valid=t_valid),
        out_shape=jax.ShapeDtypeStruct((B, 1, NCpad), jnp.float32),
        grid=(B, depth),
        in_specs=[pl.BlockSpec((1, Tpad, D), lambda b, l: (b, 0, 0))]
                 + [_layer_spec(w) for w in layer_ws]
                 + [_const_spec2(w) for w in head_ws],
        out_specs=pl.BlockSpec((1, 1, NCpad), lambda b, l: (b, 0, 0)),
        scratch_shapes=[pltpu.VMEM((Tpad, D), jnp.float32)],
        compiler_params=pltpu.CompilerParams(
            dimension_semantics=("parallel", "arbitrary"),
            vmem_limit_bytes=64 * 1024 * 1024),
    )(x_emb, *layer_ws, *head_ws)


# --------------------------------------------------------------------------
# Forward pass (glue is only tiny layout ops; all hot compute is in Pallas)
# --------------------------------------------------------------------------
def coca_backbone_forward(params, x, *, cfg):
    B, C, H, W = x.shape
    P = cfg["patch"]
    gh, gw = H // P, W // P
    Np = gh * gw
    T = Np + 1                                  # patches + class token
    Tpad = ((T + 7) // 8) * 8                   # sublane-dense token axis

    # patch unfold (pure layout, equiv. to kernel==stride Conv2d)
    patches = x.reshape(B, C, gh, P, gw, P).transpose(0, 2, 4, 1, 3, 5)
    patches = patches.reshape(B, Np, C * P * P)

    emb = embed_tokens(patches, params, Tpad, T)           # (B, Tpad, D)
    logits = transformer_head(emb, params, heads=cfg["heads"], t_valid=T,
                              depth=cfg["depth"])          # (B, 1, NCpad)
    return logits[:, 0, :cfg["num_classes"]]


# --------------------------------------------------------------------------
# Deterministic synthetic parameter init.
#   * matmul weights stored in bf16 (pre-cast once, halves weight DMA/VMEM)
#   * per-layer weights stacked on a leading (depth, ...) axis
#   * fc weight/bias lane-padded to a multiple of 128 at init
# --------------------------------------------------------------------------
def init_params(key, cfg):
    D = cfg["width"]
    P = cfg["patch"]
    C = cfg["in_chans"]
    depth = cfg["depth"]
    gh = cfg["img"] // P
    T = gh * gh + 1
    hidden = D * cfg["mlp_ratio"]
    NC = cfg["num_classes"]
    NCpad = max(128, ((NC + 127) // 128) * 128)

    keys = iter(jax.random.split(key, 64))
    Wd = MATMUL_DTYPE

    def rnd(shape, std=0.02, dtype=jnp.float32):
        return (jax.random.normal(next(keys), shape, dtype=jnp.float32)
                * std).astype(dtype)

    def ones(shape):
        return jnp.ones(shape, jnp.float32)

    def zeros(shape):
        return jnp.zeros(shape, jnp.float32)

    params = dict(
        patch_w=rnd((C * P * P, D), dtype=Wd),
        class_emb=rnd((1, D)),
        pos_emb=rnd((T, D)),
        ln_pre_g=ones((1, D)), ln_pre_b=zeros((1, D)),
        ln_post_g=ones((1, D)), ln_post_b=zeros((1, D)),
        blocks=dict(
            ln1_g=ones((depth, 1, D)), ln1_b=zeros((depth, 1, D)),
            wqkv=rnd((depth, D, 3 * D), dtype=Wd),
            bqkv=zeros((depth, 1, 3 * D)),
            wproj=rnd((depth, D, D), dtype=Wd),
            bproj=zeros((depth, 1, D)),
            ln2_g=ones((depth, 1, D)), ln2_b=zeros((depth, 1, D)),
            w1=rnd((depth, D, hidden), dtype=Wd),
            b1=zeros((depth, 1, hidden)),
            w2=rnd((depth, hidden, D), dtype=Wd),
            b2=zeros((depth, 1, D)),
        ),
        pool=dict(
            query=rnd((1, D)),
            lnq_g=ones((1, D)), lnq_b=zeros((1, D)),
            lnk_g=ones((1, D)), lnk_b=zeros((1, D)),
            wq=rnd((D, D), dtype=Wd), bq=zeros((1, D)),
            wk=rnd((D, D), dtype=Wd), bk=zeros((1, D)),
            wv=rnd((D, D), dtype=Wd), bv=zeros((1, D)),
            wo=rnd((D, D), dtype=Wd), bo=zeros((1, D)),
        ),
        fc_w=jnp.pad(rnd((D, NC)), ((0, 0), (0, NCpad - NC))).astype(Wd),
        fc_b=zeros((1, NCpad)),
    )
    return params


# --------------------------------------------------------------------------
if __name__ == "__main__":
    # NOTE: synthetic small shapes for the runnable test; the structure
    # (fused stack, bf16 weights, padded T, lane-padded fc) is what matters
    # at real CoCa-L scale (D=1024, heads=16, depth=24, T=257).
    CFG = dict(img=16, patch=4, in_chans=3, width=32, heads=4, depth=2,
               mlp_ratio=4, num_classes=10)

    key = jax.random.PRNGKey(0)
    pkey, xkey = jax.random.split(key)
    params = init_params(pkey, CFG)

    x = jax.random.normal(xkey, (2, CFG["in_chans"], CFG["img"], CFG["img"]),
                          dtype=jnp.float32)

    fwd = jax.jit(functools.partial(coca_backbone_forward, cfg=CFG))
    out = jax.block_until_ready(fwd(params, x))

    assert out.shape == (2, CFG["num_classes"]), out.shape
    assert out.dtype == jnp.float32
    assert bool(jnp.all(jnp.isfinite(out)))
    print("KERNEL_OK")
</pallas_src>

<mosaic_0001>
module attributes {stable_mosaic.version = 11 : i64} {
  func.func @_stack_kernel(%arg0: i32, %arg1: i32, %arg2: memref<1x24x32xf32, #tpu.memory_space<vmem>>, %arg3: memref<1x1x32xf32, #tpu.memory_space<vmem>>, %arg4: memref<1x1x32xf32, #tpu.memory_space<vmem>>, %arg5: memref<1x32x96xbf16, #tpu.memory_space<vmem>>, %arg6: memref<1x1x96xf32, #tpu.memory_space<vmem>>, %arg7: memref<1x32x32xbf16, #tpu.memory_space<vmem>>, %arg8: memref<1x1x32xf32, #tpu.memory_space<vmem>>, %arg9: memref<1x1x32xf32, #tpu.memory_space<vmem>>, %arg10: memref<1x1x32xf32, #tpu.memory_space<vmem>>, %arg11: memref<1x32x128xbf16, #tpu.memory_space<vmem>>, %arg12: memref<1x1x128xf32, #tpu.memory_space<vmem>>, %arg13: memref<1x128x32xbf16, #tpu.memory_space<vmem>>, %arg14: memref<1x1x32xf32, #tpu.memory_space<vmem>>, %arg15: memref<1x32xf32, #tpu.memory_space<vmem>>, %arg16: memref<1x32xf32, #tpu.memory_space<vmem>>, %arg17: memref<1x32xf32, #tpu.memory_space<vmem>>, %arg18: memref<1x32xf32, #tpu.memory_space<vmem>>, %arg19: memref<1x32xf32, #tpu.memory_space<vmem>>, %arg20: memref<1x32xf32, #tpu.memory_space<vmem>>, %arg21: memref<1x32xf32, #tpu.memory_space<vmem>>, %arg22: memref<32x32xbf16, #tpu.memory_space<vmem>>, %arg23: memref<1x32xf32, #tpu.memory_space<vmem>>, %arg24: memref<32x32xbf16, #tpu.memory_space<vmem>>, %arg25: memref<1x32xf32, #tpu.memory_space<vmem>>, %arg26: memref<32x32xbf16, #tpu.memory_space<vmem>>, %arg27: memref<1x32xf32, #tpu.memory_space<vmem>>, %arg28: memref<32x32xbf16, #tpu.memory_space<vmem>>, %arg29: memref<1x32xf32, #tpu.memory_space<vmem>>, %arg30: memref<32x128xbf16, #tpu.memory_space<vmem>>, %arg31: memref<1x128xf32, #tpu.memory_space<vmem>>, %arg32: memref<1x1x128xf32, #tpu.memory_space<vmem>>, %arg33: memref<24x32xf32, #tpu.memory_space<vmem>>) attributes {dimension_semantics = [#tpu.dimension_semantics<parallel>, #tpu.dimension_semantics<arbitrary>], iteration_bounds = array<i64: 2, 2>, scalar_prefetch = 0 : i64, scratch_operands = 1 : i64, tpu.core_type = #tpu.core_type<tc>, window_params = [{transform_indices = @transform_0, window_bounds = array<i64: 1, 24, 32>}, {transform_indices = @transform_1, window_bounds = array<i64: 1, 1, 32>}, {transform_indices = @transform_2, window_bounds = array<i64: 1, 1, 32>}, {transform_indices = @transform_3, window_bounds = array<i64: 1, 32, 96>}, {transform_indices = @transform_4, window_bounds = array<i64: 1, 1, 96>}, {transform_indices = @transform_5, window_bounds = array<i64: 1, 32, 32>}, {transform_indices = @transform_6, window_bounds = array<i64: 1, 1, 32>}, {transform_indices = @transform_7, window_bounds = array<i64: 1, 1, 32>}, {transform_indices = @transform_8, window_bounds = array<i64: 1, 1, 32>}, {transform_indices = @transform_9, window_bounds = array<i64: 1, 32, 128>}, {transform_indices = @transform_10, window_bounds = array<i64: 1, 1, 128>}, {transform_indices = @transform_11, window_bounds = array<i64: 1, 128, 32>}, {transform_indices = @transform_12, window_bounds = array<i64: 1, 1, 32>}, {pipeline_mode = #tpu.pipeline_mode<synchronous>, transform_indices = @transform_13, window_bounds = array<i64: 1, 32>}, {pipeline_mode = #tpu.pipeline_mode<synchronous>, transform_indices = @transform_14, window_bounds = array<i64: 1, 32>}, {pipeline_mode = #tpu.pipeline_mode<synchronous>, transform_indices = @transform_15, window_bounds = array<i64: 1, 32>}, {pipeline_mode = #tpu.pipeline_mode<synchronous>, transform_indices = @transform_16, window_bounds = array<i64: 1, 32>}, {pipeline_mode = #tpu.pipeline_mode<synchronous>, transform_indices = @transform_17, window_bounds = array<i64: 1, 32>}, {pipeline_mode = #tpu.pipeline_mode<synchronous>, transform_indices = @transform_18, window_bounds = array<i64: 1, 32>}, {pipeline_mode = #tpu.pipeline_mode<synchronous>, transform_indices = @transform_19, window_bounds = array<i64: 1, 32>}, {pipeline_mode = #tpu.pipeline_mode<synchronous>, transform_indices = @transform_20, window_bounds = array<i64: 32, 32>}, {pipeline_mode = #tpu.pipeline_mode<synchronous>, transform_indices = @transform_21, window_bounds = array<i64: 1, 32>}, {pipeline_mode = #tpu.pipeline_mode<synchronous>, transform_indices = @transform_22, window_bounds = array<i64: 32, 32>}, {pipeline_mode = #tpu.pipeline_mode<synchronous>, transform_indices = @transform_23, window_bounds = array<i64: 1, 32>}, {pipeline_mode = #tpu.pipeline_mode<synchronous>, transform_indices = @transform_24, window_bounds = array<i64: 32, 32>}, {pipeline_mode = #tpu.pipeline_mode<synchronous>, transform_indices = @transform_25, window_bounds = array<i64: 1, 32>}, {pipeline_mode = #tpu.pipeline_mode<synchronous>, transform_indices = @transform_26, window_bounds = array<i64: 32, 32>}, {pipeline_mode = #tpu.pipeline_mode<synchronous>, transform_indices = @transform_27, window_bounds = array<i64: 1, 32>}, {pipeline_mode = #tpu.pipeline_mode<synchronous>, transform_indices = @transform_28, window_bounds = array<i64: 32, 128>}, {pipeline_mode = #tpu.pipeline_mode<synchronous>, transform_indices = @transform_29, window_bounds = array<i64: 1, 128>}, {transform_indices = @transform_30, window_bounds = array<i64: 1, 1, 128>}]} {
    %0 = tpu.iota {dimensions = array<i32: 1>} : vector<1x24xi32>
    %c17_i32 = arith.constant 17 : i32
    %1 = vector.broadcast %c17_i32 : i32 to vector<1x24xi32>
    %2 = arith.cmpi slt, %0, %1 : vector<1x24xi32>
    %cst = arith.constant 0.000000e+00 : f32
    %cst_0 = arith.constant -1.000000e+30 : f32
    %3 = vector.broadcast %cst : f32 to vector<1x24xf32>
    %4 = vector.broadcast %cst_0 : f32 to vector<1x24xf32>
    %5 = arith.select %2, %3, %4 : vector<1x24xi1>, vector<1x24xf32>
    %c0_i32 = arith.constant 0 : i32
    %6 = arith.cmpi eq, %arg1, %c0_i32 : i32
    %7 = arith.extui %6 : i1 to i32
    %c0_i32_1 = arith.constant 0 : i32
    %8 = arith.cmpi ne, %7, %c0_i32_1 : i32
    scf.if %8 {
      %c0_77 = arith.constant 0 : index
      %c0_78 = arith.constant 0 : index
      %c0_79 = arith.constant 0 : index
      %203 = vector.load %arg2[%c0_77, %c0_78, %c0_79] : memref<1x24x32xf32, #tpu.memory_space<vmem>>, vector<1x24x32xf32>
      %204 = vector.shape_cast %203 : vector<1x24x32xf32> to vector<24x32xf32>
      %c0_80 = arith.constant 0 : index
      %c0_81 = arith.constant 0 : index
      %205 = vector.load %arg33[%c0_80, %c0_81] : memref<24x32xf32, #tpu.memory_space<vmem>>, vector<24x32xf32>
      tpu.vector_store %arg33[%c0_80, %c0_81], %204 {strides = array<i32>} : memref<24x32xf32, #tpu.memory_space<vmem>>, vector<24x32xf32>,
    } else {
    }
    %c0 = arith.constant 0 : index
    %c0_2 = arith.constant 0 : index
    %9 = vector.load %arg33[%c0, %c0_2] : memref<24x32xf32, #tpu.memory_space<vmem>>, vector<24x32xf32>
    %c0_3 = arith.constant 0 : index
    %c0_4 = arith.constant 0 : index
    %c0_5 = arith.constant 0 : index
    %10 = vector.load %arg3[%c0_3, %c0_4, %c0_5] : memref<1x1x32xf32, #tpu.memory_space<vmem>>, vector<1x1x32xf32>
    %11 = vector.shape_cast %10 : vector<1x1x32xf32> to vector<1x32xf32>
    %c0_6 = arith.constant 0 : index
    %c0_7 = arith.constant 0 : index
    %c0_8 = arith.constant 0 : index
    %12 = vector.load %arg4[%c0_6, %c0_7, %c0_8] : memref<1x1x32xf32, #tpu.memory_space<vmem>>, vector<1x1x32xf32>
    %13 = vector.shape_cast %12 : vector<1x1x32xf32> to vector<1x32xf32>
    %cst_9 = arith.constant dense<0.000000e+00> : vector<24xf32>
    %14 = vector.multi_reduction <add>, %9, %cst_9 [1] : vector<24x32xf32> to vector<24xf32>
    %15 = vector.shape_cast %14 : vector<24xf32> to vector<24x1xf32>
    %cst_10 = arith.constant 3.200000e+01 : f32
    %16 = vector.broadcast %cst_10 : f32 to vector<24x1xf32>
    %17 = arith.divf %15, %16 : vector<24x1xf32>
    %18 = vector.broadcast %17 : vector<24x1xf32> to vector<24x32xf32>
    %19 = arith.subf %9, %18 : vector<24x32xf32>
    %20 = arith.mulf %19, %19 : vector<24x32xf32>
    %cst_11 = arith.constant dense<0.000000e+00> : vector<24xf32>
    %21 = vector.multi_reduction <add>, %20, %cst_11 [1] : vector<24x32xf32> to vector<24xf32>
    %22 = vector.shape_cast %21 : vector<24xf32> to vector<24x1xf32>
    %cst_12 = arith.constant 3.200000e+01 : f32
    %23 = vector.broadcast %cst_12 : f32 to vector<24x1xf32>
    %24 = arith.divf %22, %23 : vector<24x1xf32>
    %25 = vector.broadcast %17 : vector<24x1xf32> to vector<24x32xf32>
    %26 = arith.subf %9, %25 : vector<24x32xf32>
    %cst_13 = arith.constant 9.99999974E-6 : f32
    %27 = vector.broadcast %cst_13 : f32 to vector<24x1xf32>
    %28 = arith.addf %24, %27 : vector<24x1xf32>
    %29 = math.rsqrt %28 : vector<24x1xf32>
    %30 = vector.broadcast %29 : vector<24x1xf32> to vector<24x32xf32>
    %31 = arith.mulf %26, %30 : vector<24x32xf32>
    %32 = vector.broadcast %11 : vector<1x32xf32> to vector<24x32xf32>
    %33 = arith.mulf %31, %32 : vector<24x32xf32>
    %34 = vector.broadcast %13 : vector<1x32xf32> to vector<24x32xf32>
    %35 = arith.addf %33, %34 : vector<24x32xf32>
    %c0_14 = arith.constant 0 : index
    %c0_15 = arith.constant 0 : index
    %c0_16 = arith.constant 0 : index
    %36 = vector.load %arg5[%c0_14, %c0_15, %c0_16] : memref<1x32x96xbf16, #tpu.memory_space<vmem>>, vector<1x32x96xbf16>
    %37 = vector.shape_cast %36 : vector<1x32x96xbf16> to vector<32x96xbf16>
    %38 = arith.truncf %35 : vector<24x32xf32> to vector<24x32xbf16>
    %cst_17 = arith.constant dense<0.000000e+00> : vector<24x96xf32>
    %39 = tpu.matmul %38, %37, %cst_17 {dimension_numbers = #tpu.dot_dimension_numbers<[1], [0], [0], [1], [0, 0, 1, 1], [], []>} : vector<24x32xbf16>, vector<32x96xbf16>, vector<24x96xf32> -> vector<24x96xf32>
    %c0_18 = arith.constant 0 : index
    %c0_19 = arith.constant 0 : index
    %c0_20 = arith.constant 0 : index
    %40 = vector.load %arg6[%c0_18, %c0_19, %c0_20] : memref<1x1x96xf32, #tpu.memory_space<vmem>>, vector<1x1x96xf32>
    %41 = vector.shape_cast %40 : vector<1x1x96xf32> to vector<1x96xf32>
    %42 = vector.broadcast %41 : vector<1x96xf32> to vector<24x96xf32>
    %43 = arith.addf %39, %42 : vector<24x96xf32>
    %44 = vector.extract_strided_slice %43 {offsets = [0, 0], sizes = [24, 32], strides = [1, 1]} : vector<24x96xf32> to vector<24x32xf32>
    %cst_21 = arith.constant 0.353553385 : f32
    %45 = vector.broadcast %cst_21 : f32 to vector<24x32xf32>
    %46 = arith.mulf %44, %45 : vector<24x32xf32>
    %47 = vector.extract_strided_slice %43 {offsets = [0, 32], sizes = [24, 32], strides = [1, 1]} : vector<24x96xf32> to vector<24x32xf32>
    %48 = vector.extract_strided_slice %43 {offsets = [0, 64], sizes = [24, 32], strides = [1, 1]} : vector<24x96xf32> to vector<24x32xf32>
    %49 = vector.extract_strided_slice %46 {offsets = [0, 0], sizes = [24, 8], strides = [1, 1]} : vector<24x32xf32> to vector<24x8xf32>
    %50 = vector.extract_strided_slice %47 {offsets = [0, 0], sizes = [24, 8], strides = [1, 1]} : vector<24x32xf32> to vector<24x8xf32>
    %51 = arith.truncf %49 : vector<24x8xf32> to vector<24x8xbf16>
    %52 = arith.truncf %50 : vector<24x8xf32> to vector<24x8xbf16>
    %cst_22 = arith.constant dense<0.000000e+00> : vector<24x24xf32>
    %53 = tpu.matmul %51, %52, %cst_22 {dimension_numbers = #tpu.dot_dimension_numbers<[1], [1], [0], [0], [0, 0, 1, 0], [], []>} : vector<24x8xbf16>, vector<24x8xbf16>, vector<24x24xf32> -> vector<24x24xf32>
    %54 = vector.broadcast %5 : vector<1x24xf32> to vector<24x24xf32>
    %55 = arith.addf %53, %54 : vector<24x24xf32>
    %cst_23 = arith.constant dense<0xFF800000> : vector<24xf32>
    %56 = vector.multi_reduction <maximumf>, %55, %cst_23 [1] : vector<24x24xf32> to vector<24xf32>
    %57 = vector.shape_cast %56 : vector<24xf32> to vector<24x1xf32>
    %58 = vector.broadcast %57 : vector<24x1xf32> to vector<24x24xf32>
    %59 = arith.subf %55, %58 : vector<24x24xf32>
    %60 = math.exp %59 : vector<24x24xf32>
    %cst_24 = arith.constant dense<0.000000e+00> : vector<24xf32>
    %61 = vector.multi_reduction <add>, %60, %cst_24 [1] : vector<24x24xf32> to vector<24xf32>
    %62 = vector.shape_cast %61 : vector<24xf32> to vector<24x1xf32>
    %63 = tpu.reciprocal %62 {approx = true} : vector<24x1xf32> -> vector<24x1xf32>
    %64 = vector.broadcast %63 : vector<24x1xf32> to vector<24x24xf32>
    %65 = arith.mulf %60, %64 : vector<24x24xf32>
    %66 = vector.extract_strided_slice %48 {offsets = [0, 0], sizes = [24, 8], strides = [1, 1]} : vector<24x32xf32> to vector<24x8xf32>
    %67 = arith.truncf %65 : vector<24x24xf32> to vector<24x24xbf16>
    %68 = arith.truncf %66 : vector<24x8xf32> to vector<24x8xbf16>
    %cst_25 = arith.constant dense<0.000000e+00> : vector<24x8xf32>
    %69 = tpu.matmul %67, %68, %cst_25 {dimension_numbers = #tpu.dot_dimension_numbers<[1], [0], [0], [1], [0, 0, 1, 1], [], []>} : vector<24x24xbf16>, vector<24x8xbf16>, vector<24x8xf32> -> vector<24x8xf32>
    %70 = vector.extract_strided_slice %46 {offsets = [0, 8], sizes = [24, 8], strides = [1, 1]} : vector<24x32xf32> to vector<24x8xf32>
    %71 = vector.extract_strided_slice %47 {offsets = [0, 8], sizes = [24, 8], strides = [1, 1]} : vector<24x32xf32> to vector<24x8xf32>
    %72 = arith.truncf %70 : vector<24x8xf32> to vector<24x8xbf16>
    %73 = arith.truncf %71 : vector<24x8xf32> to vector<24x8xbf16>
    %cst_26 = arith.constant dense<0.000000e+00> : vector<24x24xf32>
    %74 = tpu.matmul %72, %73, %cst_26 {dimension_numbers = #tpu.dot_dimension_numbers<[1], [1], [0], [0], [0, 0, 1, 0], [], []>} : vector<24x8xbf16>, vector<24x8xbf16>, vector<24x24xf32> -> vector<24x24xf32>
    %75 = vector.broadcast %5 : vector<1x24xf32> to vector<24x24xf32>
    %76 = arith.addf %74, %75 : vector<24x24xf32>
    %cst_27 = arith.constant dense<0xFF800000> : vector<24xf32>
    %77 = vector.multi_reduction <maximumf>, %76, %cst_27 [1] : vector<24x24xf32> to vector<24xf32>
    %78 = vector.shape_cast %77 : vector<24xf32> to vector<24x1xf32>
    %79 = vector.broadcast %78 : vector<24x1xf32> to vector<24x24xf32>
    %80 = arith.subf %76, %79 : vector<24x24xf32>
    %81 = math.exp %80 : vector<24x24xf32>
    %cst_28 = arith.constant dense<0.000000e+00> : vector<24xf32>
    %82 = vector.multi_reduction <add>, %81, %cst_28 [1] : vector<24x24xf32> to vector<24xf32>
    %83 = vector.shape_cast %82 : vector<24xf32> to vector<24x1xf32>
    %84 = tpu.reciprocal %83 {approx = true} : vector<24x1xf32> -> vector<24x1xf32>
    %85 = vector.broadcast %84 : vector<24x1xf32> to vector<24x24xf32>
    %86 = arith.mulf %81, %85 : vector<24x24xf32>
    %87 = vector.extract_strided_slice %48 {offsets = [0, 8], sizes = [24, 8], strides = [1, 1]} : vector<24x32xf32> to vector<24x8xf32>
    %88 = arith.truncf %86 : vector<24x24xf32> to vector<24x24xbf16>
    %89 = arith.truncf %87 : vector<24x8xf32> to vector<24x8xbf16>
    %cst_29 = arith.constant dense<0.000000e+00> : vector<24x8xf32>
    %90 = tpu.matmul %88, %89, %cst_29 {dimension_numbers = #tpu.dot_dimension_numbers<[1], [0], [0], [1], [0, 0, 1, 1], [], []>} : vector<24x24xbf16>, vector<24x8xbf16>, vector<24x8xf32> -> vector<24x8xf32>
    %91 = vector.extract_strided_slice %46 {offsets = [0, 16], sizes = [24, 8], strides = [1, 1]} : vector<24x32xf32> to vector<24x8xf32>
    %92 = vector.extract_strided_slice %47 {offsets = [0, 16], sizes = [24, 8], strides = [1, 1]} : vector<24x32xf32> to vector<24x8xf32>
    %93 = arith.truncf %91 : vector<24x8xf32> to vector<24x8xbf16>
    %94 = arith.truncf %92 : vector<24x8xf32> to vector<24x8xbf16>
    %cst_30 = arith.constant dense<0.000000e+00> : vector<24x24xf32>
    %95 = tpu.matmul %93, %94, %cst_30 {dimension_numbers = #tpu.dot_dimension_numbers<[1], [1], [0], [0], [0, 0, 1, 0], [], []>} : vector<24x8xbf16>, vector<24x8xbf16>, vector<24x24xf32> -> vector<24x24xf32>
    %96 = vector.broadcast %5 : vector<1x24xf32> to vector<24x24xf32>
    %97 = arith.addf %95, %96 : vector<24x24xf32>
    %cst_31 = arith.constant dense<0xFF800000> : vector<24xf32>
    %98 = vector.multi_reduction <maximumf>, %97, %cst_31 [1] : vector<24x24xf32> to vector<24xf32>
    %99 = vector.shape_cast %98 : vector<24xf32> to vector<24x1xf32>
    %100 = vector.broadcast %99 : vector<24x1xf32> to vector<24x24xf32>
    %101 = arith.subf %97, %100 : vector<24x24xf32>
    %102 = math.exp %101 : vector<24x24xf32>
    %cst_32 = arith.constant dense<0.000000e+00> : vector<24xf32>
    %103 = vector.multi_reduction <add>, %102, %cst_32 [1] : vector<24x24xf32> to vector<24xf32>
    %104 = vector.shape_cast %103 : vector<24xf32> to vector<24x1xf32>
    %105 = tpu.reciprocal %104 {approx = true} : vector<24x1xf32> -> vector<24x1xf32>
    %106 = vector.broadcast %105 : vector<24x1xf32> to vector<24x24xf32>
    %107 = arith.mulf %102, %106 : vector<24x24xf32>
    %108 = vector.extract_strided_slice %48 {offsets = [0, 16], sizes = [24, 8], strides = [1, 1]} : vector<24x32xf32> to vector<24x8xf32>
    %109 = arith.truncf %107 : vector<24x24xf32> to vector<24x24xbf16>
    %110 = arith.truncf %108 : vector<24x8xf32> to vector<24x8xbf16>
    %cst_33 = arith.constant dense<0.000000e+00> : vector<24x8xf32>
    %111 = tpu.matmul %109, %110, %cst_33 {dimension_numbers = #tpu.dot_dimension_numbers<[1], [0], [0], [1], [0, 0, 1, 1], [], []>} : vector<24x24xbf16>, vector<24x8xbf16>, vector<24x8xf32> -> vector<24x8xf32>
    %112 = vector.extract_strided_slice %46 {offsets = [0, 24], sizes = [24, 8], strides = [1, 1]} : vector<24x32xf32> to vector<24x8xf32>
    %113 = vector.extract_strided_slice %47 {offsets = [0, 24], sizes = [24, 8], strides = [1, 1]} : vector<24x32xf32> to vector<24x8xf32>
    %114 = arith.truncf %112 : vector<24x8xf32> to vector<24x8xbf16>
    %115 = arith.truncf %113 : vector<24x8xf32> to vector<24x8xbf16>
    %cst_34 = arith.constant dense<0.000000e+00> : vector<24x24xf32>
    %116 = tpu.matmul %114, %115, %cst_34 {dimension_numbers = #tpu.dot_dimension_numbers<[1], [1], [0], [0], [0, 0, 1, 0], [], []>} : vector<24x8xbf16>, vector<24x8xbf16>, vector<24x24xf32> -> vector<24x24xf32>
    %117 = vector.broadcast %5 : vector<1x24xf32> to vector<24x24xf32>
    %118 = arith.addf %116, %117 : vector<24x24xf32>
    %cst_35 = arith.constant dense<0xFF800000> : vector<24xf32>
    %119 = vector.multi_reduction <maximumf>, %118, %cst_35 [1] : vector<24x24xf32> to vector<24xf32>
    %120 = vector.shape_cast %119 : vector<24xf32> to vector<24x1xf32>
    %121 = vector.broadcast %120 : vector<24x1xf32> to vector<24x24xf32>
    %122 = arith.subf %118, %121 : vector<24x24xf32>
    %123 = math.exp %122 : vector<24x24xf32>
    %cst_36 = arith.constant dense<0.000000e+00> : vector<24xf32>
    %124 = vector.multi_reduction <add>, %123, %cst_36 [1] : vector<24x24xf32> to vector<24xf32>
    %125 = vector.shape_cast %124 : vector<24xf32> to vector<24x1xf32>
    %126 = tpu.reciprocal %125 {approx = true} : vector<24x1xf32> -> vector<24x1xf32>
    %127 = vector.broadcast %126 : vector<24x1xf32> to vector<24x24xf32>
    %128 = arith.mulf %123, %127 : vector<24x24xf32>
    %129 = vector.extract_strided_slice %48 {offsets = [0, 24], sizes = [24, 8], strides = [1, 1]} : vector<24x32xf32> to vector<24x8xf32>
    %130 = arith.truncf %128 : vector<24x24xf32> to vector<24x24xbf16>
    %131 = arith.truncf %129 : vector<24x8xf32> to vector<24x8xbf16>
    %cst_37 = arith.constant dense<0.000000e+00> : vector<24x8xf32>
    %132 = tpu.matmul %130, %131, %cst_37 {dimension_numbers = #tpu.dot_dimension_numbers<[1], [0], [0], [1], [0, 0, 1, 1], [], []>} : vector<24x24xbf16>, vector<24x8xbf16>, vector<24x8xf32> -> vector<24x8xf32>
    %133 = tpu.concatenate %69, %90, %111, %132 in 1 : vector<24x8xf32>, vector<24x8xf32>, vector<24x8xf32>, vector<24x8xf32> -> vector<24x32xf32>
    %c0_38 = arith.constant 0 : index
    %c0_39 = arith.constant 0 : index
    %c0_40 = arith.constant 0 : index
    %134 = vector.load %arg7[%c0_38, %c0_39, %c0_40] : memref<1x32x32xbf16, #tpu.memory_space<vmem>>, vector<1x32x32xbf16>
    %135 = vector.shape_cast %134 : vector<1x32x32xbf16> to vector<32x32xbf16>
    %136 = arith.truncf %133 : vector<24x32xf32> to vector<24x32xbf16>
    %cst_41 = arith.constant dense<0.000000e+00> : vector<24x32xf32>
    %137 = tpu.matmul %136, %135, %cst_41 {dimension_numbers = #tpu.dot_dimension_numbers<[1], [0], [0], [1], [0, 0, 1, 1], [], []>} : vector<24x32xbf16>, vector<32x32xbf16>, vector<24x32xf32> -> vector<24x32xf32>
    %138 = arith.addf %9, %137 : vector<24x32xf32>
    %c0_42 = arith.constant 0 : index
    %c0_43 = arith.constant 0 : index
    %c0_44 = arith.constant 0 : index
    %139 = vector.load %arg8[%c0_42, %c0_43, %c0_44] : memref<1x1x32xf32, #tpu.memory_space<vmem>>, vector<1x1x32xf32>
    %140 = vector.shape_cast %139 : vector<1x1x32xf32> to vector<1x32xf32>
    %141 = vector.broadcast %140 : vector<1x32xf32> to vector<24x32xf32>
    %142 = arith.addf %138, %141 : vector<24x32xf32>
    %c0_45 = arith.constant 0 : index
    %c0_46 = arith.constant 0 : index
    %c0_47 = arith.constant 0 : index
    %143 = vector.load %arg9[%c0_45, %c0_46, %c0_47] : memref<1x1x32xf32, #tpu.memory_space<vmem>>, vector<1x1x32xf32>
    %144 = vector.shape_cast %143 : vector<1x1x32xf32> to vector<1x32xf32>
    %c0_48 = arith.constant 0 : index
    %c0_49 = arith.constant 0 : index
    %c0_50 = arith.constant 0 : index
    %145 = vector.load %arg10[%c0_48, %c0_49, %c0_50] : memref<1x1x32xf32, #tpu.memory_space<vmem>>, vector<1x1x32xf32>
    %146 = vector.shape_cast %145 : vector<1x1x32xf32> to vector<1x32xf32>
    %cst_51 = arith.constant dense<0.000000e+00> : vector<24xf32>
    %147 = vector.multi_reduction <add>, %142, %cst_51 [1] : vector<24x32xf32> to vector<24xf32>
    %148 = vector.shape_cast %147 : vector<24xf32> to vector<24x1xf32>
    %cst_52 = arith.constant 3.200000e+01 : f32
    %149 = vector.broadcast %cst_52 : f32 to vector<24x1xf32>
    %150 = arith.divf %148, %149 : vector<24x1xf32>
    %151 = vector.broadcast %150 : vector<24x1xf32> to vector<24x32xf32>
    %152 = arith.subf %142, %151 : vector<24x32xf32>
    %153 = arith.mulf %152, %152 : vector<24x32xf32>
    %cst_53 = arith.constant dense<0.000000e+00> : vector<24xf32>
    %154 = vector.multi_reduction <add>, %153, %cst_53 [1] : vector<24x32xf32> to vector<24xf32>
    %155 = vector.shape_cast %154 : vector<24xf32> to vector<24x1xf32>
    %cst_54 = arith.constant 3.200000e+01 : f32
    %156 = vector.broadcast %cst_54 : f32 to vector<24x1xf32>
    %157 = arith.divf %155, %156 : vector<24x1xf32>
    %158 = vector.broadcast %150 : vector<24x1xf32> to vector<24x32xf32>
    %159 = arith.subf %142, %158 : vector<24x32xf32>
    %cst_55 = arith.constant 9.99999974E-6 : f32
    %160 = vector.broadcast %cst_55 : f32 to vector<24x1xf32>
    %161 = arith.addf %157, %160 : vector<24x1xf32>
    %162 = math.rsqrt %161 : vector<24x1xf32>
    %163 = vector.broadcast %162 : vector<24x1xf32> to vector<24x32xf32>
    %164 = arith.mulf %159, %163 : vector<24x32xf32>
    %165 = vector.broadcast %144 : vector<1x32xf32> to vector<24x32xf32>
    %166 = arith.mulf %164, %165 : vector<24x32xf32>
    %167 = vector.broadcast %146 : vector<1x32xf32> to vector<24x32xf32>
    %168 = arith.addf %166, %167 : vector<24x32xf32>
    %c0_56 = arith.constant 0 : index
    %c0_57 = arith.constant 0 : index
    %c0_58 = arith.constant 0 : index
    %169 = vector.load %arg11[%c0_56, %c0_57, %c0_58] : memref<1x32x128xbf16, #tpu.memory_space<vmem>>, vector<1x32x128xbf16>
    %170 = vector.shape_cast %169 : vector<1x32x128xbf16> to vector<32x128xbf16>
    %171 = arith.truncf %168 : vector<24x32xf32> to vector<24x32xbf16>
    %cst_59 = arith.constant dense<0.000000e+00> : vector<24x128xf32>
    %172 = tpu.matmul %171, %170, %cst_59 {dimension_numbers = #tpu.dot_dimension_numbers<[1], [0], [0], [1], [0, 0, 1, 1], [], []>} : vector<24x32xbf16>, vector<32x128xbf16>, vector<24x128xf32> -> vector<24x128xf32>
    %c0_60 = arith.constant 0 : index
    %c0_61 = arith.constant 0 : index
    %c0_62 = arith.constant 0 : index
    %173 = vector.load %arg12[%c0_60, %c0_61, %c0_62] : memref<1x1x128xf32, #tpu.memory_space<vmem>>, vector<1x1x128xf32>
    %174 = vector.shape_cast %173 : vector<1x1x128xf32> to vector<1x128xf32>
    %175 = vector.broadcast %174 : vector<1x128xf32> to vector<24x128xf32>
    %176 = arith.addf %172, %175 : vector<24x128xf32>
    %177 = arith.mulf %176, %176 : vector<24x128xf32>
    %178 = arith.mulf %176, %177 : vector<24x128xf32>
    %cst_63 = arith.constant 4.471500e-02 : f32
    %179 = vector.broadcast %cst_63 : f32 to vector<24x128xf32>
    %180 = arith.mulf %179, %178 : vector<24x128xf32>
    %181 = arith.addf %176, %180 : vector<24x128xf32>
    %cst_64 = arith.constant 0.797884583 : f32
    %182 = vector.broadcast %cst_64 : f32 to vector<24x128xf32>
    %183 = arith.mulf %182, %181 : vector<24x128xf32>
    %184 = math.tanh %183 : vector<24x128xf32>
    %cst_65 = arith.constant 1.000000e+00 : f32
    %185 = vector.broadcast %cst_65 : f32 to vector<24x128xf32>
    %186 = arith.addf %185, %184 : vector<24x128xf32>
    %cst_66 = arith.constant 5.000000e-01 : f32
    %187 = vector.broadcast %cst_66 : f32 to vector<24x128xf32>
    %188 = arith.mulf %187, %186 : vector<24x128xf32>
    %189 = arith.mulf %176, %188 : vector<24x128xf32>
    %c0_67 = arith.constant 0 : index
    %c0_68 = arith.constant 0 : index
    %c0_69 = arith.constant 0 : index
    %190 = vector.load %arg13[%c0_67, %c0_68, %c0_69] : memref<1x128x32xbf16, #tpu.memory_space<vmem>>, vector<1x128x32xbf16>
    %191 = vector.shape_cast %190 : vector<1x128x32xbf16> to vector<128x32xbf16>
    %192 = arith.truncf %189 : vector<24x128xf32> to vector<24x128xbf16>
    %cst_70 = arith.constant dense<0.000000e+00> : vector<24x32xf32>
    %193 = tpu.matmul %192, %191, %cst_70 {dimension_numbers = #tpu.dot_dimension_numbers<[1], [0], [0], [1], [0, 0, 1, 1], [], []>} : vector<24x128xbf16>, vector<128x32xbf16>, vector<24x32xf32> -> vector<24x32xf32>
    %194 = arith.addf %142, %193 : vector<24x32xf32>
    %c0_71 = arith.constant 0 : index
    %c0_72 = arith.constant 0 : index
    %c0_73 = arith.constant 0 : index
    %195 = vector.load %arg14[%c0_71, %c0_72, %c0_73] : memref<1x1x32xf32, #tpu.memory_space<vmem>>, vector<1x1x32xf32>
    %196 = vector.shape_cast %195 : vector<1x1x32xf32> to vector<1x32xf32>
    %197 = vector.broadcast %196 : vector<1x32xf32> to vector<24x32xf32>
    %198 = arith.addf %194, %197 : vector<24x32xf32>
    %c0_74 = arith.constant 0 : index
    %c0_75 = arith.constant 0 : index
    %199 = vector.load %arg33[%c0_74, %c0_75] : memref<24x32xf32, #tpu.memory_space<vmem>>, vector<24x32xf32>
    tpu.vector_store %arg33[%c0_74, %c0_75], %198 {strides = array<i32>} : memref<24x32xf32, #tpu.memory_space<vmem>>, vector<24x32xf32>,
    %c1_i32 = arith.constant 1 : i32
    %200 = arith.cmpi eq, %arg1, %c1_i32 : i32
    %201 = arith.extui %200 : i1 to i32
    %c0_i32_76 = arith.constant 0 : i32
    %202 = arith.cmpi ne, %201, %c0_i32_76 : i32
    scf.if %202 {
      %c0_77 = arith.constant 0 : index
      %c0_78 = arith.constant 0 : index
      %203 = vector.load %arg33[%c0_77, %c0_78] : memref<24x32xf32, #tpu.memory_space<vmem>>, vector<24x32xf32>
      %c0_79 = arith.constant 0 : index
      %c0_80 = arith.constant 0 : index
      %204 = vector.load %arg15[%c0_79, %c0_80] : memref<1x32xf32, #tpu.memory_space<vmem>>, vector<1x32xf32>
      %c0_81 = arith.constant 0 : index
      %c0_82 = arith.constant 0 : index
      %205 = vector.load %arg16[%c0_81, %c0_82] : memref<1x32xf32, #tpu.memory_space<vmem>>, vector<1x32xf32>
      %cst_83 = arith.constant dense<0.000000e+00> : vector<24xf32>
      %206 = vector.multi_reduction <add>, %203, %cst_83 [1] : vector<24x32xf32> to vector<24xf32>
      %207 = vector.shape_cast %206 : vector<24xf32> to vector<24x1xf32>
      %cst_84 = arith.constant 3.200000e+01 : f32
      %208 = vector.broadcast %cst_84 : f32 to vector<24x1xf32>
      %209 = arith.divf %207, %208 : vector<24x1xf32>
      %210 = vector.broadcast %209 : vector<24x1xf32> to vector<24x32xf32>
      %211 = arith.subf %203, %210 : vector<24x32xf32>
      %212 = arith.mulf %211, %211 : vector<24x32xf32>
      %cst_85 = arith.constant dense<0.000000e+00> : vector<24xf32>
      %213 = vector.multi_reduction <add>, %212, %cst_85 [1] : vector<24x32xf32> to vector<24xf32>
      %214 = vector.shape_cast %213 : vector<24xf32> to vector<24x1xf32>
      %cst_86 = arith.constant 3.200000e+01 : f32
      %215 = vector.broadcast %cst_86 : f32 to vector<24x1xf32>
      %216 = arith.divf %214, %215 : vector<24x1xf32>
      %217 = vector.broadcast %209 : vector<24x1xf32> to vector<24x32xf32>
      %218 = arith.subf %203, %217 : vector<24x32xf32>
      %cst_87 = arith.constant 9.99999974E-6 : f32
      %219 = vector.broadcast %cst_87 : f32 to vector<24x1xf32>
      %220 = arith.addf %216, %219 : vector<24x1xf32>
      %221 = math.rsqrt %220 : vector<24x1xf32>
      %222 = vector.broadcast %221 : vector<24x1xf32> to vector<24x32xf32>
      %223 = arith.mulf %218, %222 : vector<24x32xf32>
      %224 = vector.broadcast %204 : vector<1x32xf32> to vector<24x32xf32>
      %225 = arith.mulf %223, %224 : vector<24x32xf32>
      %226 = vector.broadcast %205 : vector<1x32xf32> to vector<24x32xf32>
      %227 = arith.addf %225, %226 : vector<24x32xf32>
      %c0_88 = arith.constant 0 : index
      %c0_89 = arith.constant 0 : index
      %228 = vector.load %arg20[%c0_88, %c0_89] : memref<1x32xf32, #tpu.memory_space<vmem>>, vector<1x32xf32>
      %c0_90 = arith.constant 0 : index
      %c0_91 = arith.constant 0 : index
      %229 = vector.load %arg21[%c0_90, %c0_91] : memref<1x32xf32, #tpu.memory_space<vmem>>, vector<1x32xf32>
      %cst_92 = arith.constant dense<0.000000e+00> : vector<24xf32>
      %230 = vector.multi_reduction <add>, %227, %cst_92 [1] : vector<24x32xf32> to vector<24xf32>
      %231 = vector.shape_cast %230 : vector<24xf32> to vector<24x1xf32>
      %cst_93 = arith.constant 3.200000e+01 : f32
      %232 = vector.broadcast %cst_93 : f32 to vector<24x1xf32>
      %233 = arith.divf %231, %232 : vector<24x1xf32>
      %234 = vector.broadcast %233 : vector<24x1xf32> to vector<24x32xf32>
      %235 = arith.subf %227, %234 : vector<24x32xf32>
      %236 = arith.mulf %235, %235 : vector<24x32xf32>
      %cst_94 = arith.constant dense<0.000000e+00> : vector<24xf32>
      %237 = vector.multi_reduction <add>, %236, %cst_94 [1] : vector<24x32xf32> to vector<24xf32>
      %238 = vector.shape_cast %237 : vector<24xf32> to vector<24x1xf32>
      %cst_95 = arith.constant 3.200000e+01 : f32
      %239 = vector.broadcast %cst_95 : f32 to vector<24x1xf32>
      %240 = arith.divf %238, %239 : vector<24x1xf32>
      %241 = vector.broadcast %233 : vector<24x1xf32> to vector<24x32xf32>
      %242 = arith.subf %227, %241 : vector<24x32xf32>
      %cst_96 = arith.constant 9.99999974E-6 : f32
      %243 = vector.broadcast %cst_96 : f32 to vector<24x1xf32>
      %244 = arith.addf %240, %243 : vector<24x1xf32>
      %245 = math.rsqrt %244 : vector<24x1xf32>
      %246 = vector.broadcast %245 : vector<24x1xf32> to vector<24x32xf32>
      %247 = arith.mulf %242, %246 : vector<24x32xf32>
      %248 = vector.broadcast %228 : vector<1x32xf32> to vector<24x32xf32>
      %249 = arith.mulf %247, %248 : vector<24x32xf32>
      %250 = vector.broadcast %229 : vector<1x32xf32> to vector<24x32xf32>
      %251 = arith.addf %249, %250 : vector<24x32xf32>
      %c0_97 = arith.constant 0 : index
      %c0_98 = arith.constant 0 : index
      %252 = vector.load %arg17[%c0_97, %c0_98] : memref<1x32xf32, #tpu.memory_space<vmem>>, vector<1x32xf32>
      %c0_99 = arith.constant 0 : index
      %c0_100 = arith.constant 0 : index
      %253 = vector.load %arg18[%c0_99, %c0_100] : memref<1x32xf32, #tpu.memory_space<vmem>>, vector<1x32xf32>
      %c0_101 = arith.constant 0 : index
      %c0_102 = arith.constant 0 : index
      %254 = vector.load %arg19[%c0_101, %c0_102] : memref<1x32xf32, #tpu.memory_space<vmem>>, vector<1x32xf32>
      %cst_103 = arith.constant dense<0.000000e+00> : vector<1xf32>
      %255 = vector.multi_reduction <add>, %252, %cst_103 [1] : vector<1x32xf32> to vector<1xf32>
      %256 = vector.shape_cast %255 : vector<1xf32> to vector<1x1xf32>
      %cst_104 = arith.constant 3.200000e+01 : f32
      %257 = vector.broadcast %cst_104 : f32 to vector<1x1xf32>
      %258 = arith.divf %256, %257 : vector<1x1xf32>
      %259 = vector.broadcast %258 : vector<1x1xf32> to vector<1x32xf32>
      %260 = arith.subf %252, %259 : vector<1x32xf32>
      %261 = arith.mulf %260, %260 : vector<1x32xf32>
      %cst_105 = arith.constant dense<0.000000e+00> : vector<1xf32>
      %262 = vector.multi_reduction <add>, %261, %cst_105 [1] : vector<1x32xf32> to vector<1xf32>
      %263 = vector.shape_cast %262 : vector<1xf32> to vector<1x1xf32>
      %cst_106 = arith.constant 3.200000e+01 : f32
      %264 = vector.broadcast %cst_106 : f32 to vector<1x1xf32>
      %265 = arith.divf %263, %264 : vector<1x1xf32>
      %266 = vector.broadcast %258 : vector<1x1xf32> to vector<1x32xf32>
      %267 = arith.subf %252, %266 : vector<1x32xf32>
      %cst_107 = arith.constant 9.99999974E-6 : f32
      %268 = vector.broadcast %cst_107 : f32 to vector<1x1xf32>
      %269 = arith.addf %265, %268 : vector<1x1xf32>
      %270 = math.rsqrt %269 : vector<1x1xf32>
      %271 = vector.broadcast %270 : vector<1x1xf32> to vector<1x32xf32>
      %272 = arith.mulf %267, %271 : vector<1x32xf32>
      %273 = arith.mulf %272, %253 : vector<1x32xf32>
      %274 = arith.addf %273, %254 : vector<1x32xf32>
      %c0_108 = arith.constant 0 : index
      %c0_109 = arith.constant 0 : index
      %275 = vector.load %arg22[%c0_108, %c0_109] : memref<32x32xbf16, #tpu.memory_space<vmem>>, vector<32x32xbf16>
      %276 = arith.truncf %274 : vector<1x32xf32> to vector<1x32xbf16>
      %cst_110 = arith.constant dense<0.000000e+00> : vector<1x32xf32>
      %277 = tpu.matmul %276, %275, %cst_110 {dimension_numbers = #tpu.dot_dimension_numbers<[1], [0], [0], [1], [0, 0, 1, 1], [], []>} : vector<1x32xbf16>, vector<32x32xbf16>, vector<1x32xf32> -> vector<1x32xf32>
      %c0_111 = arith.constant 0 : index
      %c0_112 = arith.constant 0 : index
      %278 = vector.load %arg23[%c0_111, %c0_112] : memref<1x32xf32, #tpu.memory_space<vmem>>, vector<1x32xf32>
      %279 = arith.addf %277, %278 : vector<1x32xf32>
      %cst_113 = arith.constant 0.353553385 : f32
      %280 = vector.broadcast %cst_113 : f32 to vector<1x32xf32>
      %281 = arith.mulf %279, %280 : vector<1x32xf32>
      %c0_114 = arith.constant 0 : index
      %c0_115 = arith.constant 0 : index
      %282 = vector.load %arg24[%c0_114, %c0_115] : memref<32x32xbf16, #tpu.memory_space<vmem>>, vector<32x32xbf16>
      %283 = arith.truncf %251 : vector<24x32xf32> to vector<24x32xbf16>
      %cst_116 = arith.constant dense<0.000000e+00> : vector<24x32xf32>
      %284 = tpu.matmul %283, %282, %cst_116 {dimension_numbers = #tpu.dot_dimension_numbers<[1], [0], [0], [1], [0, 0, 1, 1], [], []>} : vector<24x32xbf16>, vector<32x32xbf16>, vector<24x32xf32> -> vector<24x32xf32>
      %c0_117 = arith.constant 0 : index
      %c0_118 = arith.constant 0 : index
      %285 = vector.load %arg25[%c0_117, %c0_118] : memref<1x32xf32, #tpu.memory_space<vmem>>, vector<1x32xf32>
      %286 = vector.broadcast %285 : vector<1x32xf32> to vector<24x32xf32>
      %287 = arith.addf %284, %286 : vector<24x32xf32>
      %c0_119 = arith.constant 0 : index
      %c0_120 = arith.constant 0 : index
      %288 = vector.load %arg26[%c0_119, %c0_120] : memref<32x32xbf16, #tpu.memory_space<vmem>>, vector<32x32xbf16>
      %289 = arith.truncf %251 : vector<24x32xf32> to vector<24x32xbf16>
      %cst_121 = arith.constant dense<0.000000e+00> : vector<24x32xf32>
      %290 = tpu.matmul %289, %288, %cst_121 {dimension_numbers = #tpu.dot_dimension_numbers<[1], [0], [0], [1], [0, 0, 1, 1], [], []>} : vector<24x32xbf16>, vector<32x32xbf16>, vector<24x32xf32> -> vector<24x32xf32>
      %c0_122 = arith.constant 0 : index
      %c0_123 = arith.constant 0 : index
      %291 = vector.load %arg27[%c0_122, %c0_123] : memref<1x32xf32, #tpu.memory_space<vmem>>, vector<1x32xf32>
      %292 = vector.broadcast %291 : vector<1x32xf32> to vector<24x32xf32>
      %293 = arith.addf %290, %292 : vector<24x32xf32>
      %294 = vector.extract_strided_slice %281 {offsets = [0, 0], sizes = [1, 8], strides = [1, 1]} : vector<1x32xf32> to vector<1x8xf32>
      %295 = vector.extract_strided_slice %287 {offsets = [0, 0], sizes = [24, 8], strides = [1, 1]} : vector<24x32xf32> to vector<24x8xf32>
      %296 = arith.truncf %294 : vector<1x8xf32> to vector<1x8xbf16>
      %297 = arith.truncf %295 : vector<24x8xf32> to vector<24x8xbf16>
      %cst_124 = arith.constant dense<0.000000e+00> : vector<1x24xf32>
      %298 = tpu.matmul %296, %297, %cst_124 {dimension_numbers = #tpu.dot_dimension_numbers<[1], [1], [0], [0], [0, 0, 1, 0], [], []>} : vector<1x8xbf16>, vector<24x8xbf16>, vector<1x24xf32> -> vector<1x24xf32>
      %299 = arith.addf %298, %5 : vector<1x24xf32>
      %cst_125 = arith.constant dense<0xFF800000> : vector<1xf32>
      %300 = vector.multi_reduction <maximumf>, %299, %cst_125 [1] : vector<1x24xf32> to vector<1xf32>
      %301 = vector.shape_cast %300 : vector<1xf32> to vector<1x1xf32>
      %302 = vector.broadcast %301 : vector<1x1xf32> to vector<1x24xf32>
      %303 = arith.subf %299, %302 : vector<1x24xf32>
      %304 = math.exp %303 : vector<1x24xf32>
      %cst_126 = arith.constant dense<0.000000e+00> : vector<1xf32>
      %305 = vector.multi_reduction <add>, %304, %cst_126 [1] : vector<1x24xf32> to vector<1xf32>
      %306 = vector.shape_cast %305 : vector<1xf32> to vector<1x1xf32>
      %307 = tpu.reciprocal %306 {approx = true} : vector<1x1xf32> -> vector<1x1xf32>
      %308 = vector.broadcast %307 : vector<1x1xf32> to vector<1x24xf32>
      %309 = arith.mulf %304, %308 : vector<1x24xf32>
      %310 = vector.extract_strided_slice %293 {offsets = [0, 0], sizes = [24, 8], strides = [1, 1]} : vector<24x32xf32> to vector<24x8xf32>
      %311 = arith.truncf %309 : vector<1x24xf32> to vector<1x24xbf16>
      %312 = arith.truncf %310 : vector<24x8xf32> to vector<24x8xbf16>
      %cst_127 = arith.constant dense<0.000000e+00> : vector<1x8xf32>
      %313 = tpu.matmul %311, %312, %cst_127 {dimension_numbers = #tpu.dot_dimension_numbers<[1], [0], [0], [1], [0, 0, 1, 1], [], []>} : vector<1x24xbf16>, vector<24x8xbf16>, vector<1x8xf32> -> vector<1x8xf32>
      %314 = vector.extract_strided_slice %281 {offsets = [0, 8], sizes = [1, 8], strides = [1, 1]} : vector<1x32xf32> to vector<1x8xf32>
      %315 = vector.extract_strided_slice %287 {offsets = [0, 8], sizes = [24, 8], strides = [1, 1]} : vector<24x32xf32> to vector<24x8xf32>
      %316 = arith.truncf %314 : vector<1x8xf32> to vector<1x8xbf16>
      %317 = arith.truncf %315 : vector<24x8xf32> to vector<24x8xbf16>
      %cst_128 = arith.constant dense<0.000000e+00> : vector<1x24xf32>
      %318 = tpu.matmul %316, %317, %cst_128 {dimension_numbers = #tpu.dot_dimension_numbers<[1], [1], [0], [0], [0, 0, 1, 0], [], []>} : vector<1x8xbf16>, vector<24x8xbf16>, vector<1x24xf32> -> vector<1x24xf32>
      %319 = arith.addf %318, %5 : vector<1x24xf32>
      %cst_129 = arith.constant dense<0xFF800000> : vector<1xf32>
      %320 = vector.multi_reduction <maximumf>, %319, %cst_129 [1] : vector<1x24xf32> to vector<1xf32>
      %321 = vector.shape_cast %320 : vector<1xf32> to vector<1x1xf32>
      %322 = vector.broadcast %321 : vector<1x1xf32> to vector<1x24xf32>
      %323 = arith.subf %319, %322 : vector<1x24xf32>
      %324 = math.exp %323 : vector<1x24xf32>
      %cst_130 = arith.constant dense<0.000000e+00> : vector<1xf32>
      %325 = vector.multi_reduction <add>, %324, %cst_130 [1] : vector<1x24xf32> to vector<1xf32>
      %326 = vector.shape_cast %325 : vector<1xf32> to vector<1x1xf32>
      %327 = tpu.reciprocal %326 {approx = true} : vector<1x1xf32> -> vector<1x1xf32>
      %328 = vector.broadcast %327 : vector<1x1xf32> to vector<1x24xf32>
      %329 = arith.mulf %324, %328 : vector<1x24xf32>
      %330 = vector.extract_strided_slice %293 {offsets = [0, 8], sizes = [24, 8], strides = [1, 1]} : vector<24x32xf32> to vector<24x8xf32>
      %331 = arith.truncf %329 : vector<1x24xf32> to vector<1x24xbf16>
      %332 = arith.truncf %330 : vector<24x8xf32> to vector<24x8xbf16>
      %cst_131 = arith.constant dense<0.000000e+00> : vector<1x8xf32>
      %333 = tpu.matmul %331, %332, %cst_131 {dimension_numbers = #tpu.dot_dimension_numbers<[1], [0], [0], [1], [0, 0, 1, 1], [], []>} : vector<1x24xbf16>, vector<24x8xbf16>, vector<1x8xf32> -> vector<1x8xf32>
      %334 = vector.extract_strided_slice %281 {offsets = [0, 16], sizes = [1, 8], strides = [1, 1]} : vector<1x32xf32> to vector<1x8xf32>
      %335 = vector.extract_strided_slice %287 {offsets = [0, 16], sizes = [24, 8], strides = [1, 1]} : vector<24x32xf32> to vector<24x8xf32>
      %336 = arith.truncf %334 : vector<1x8xf32> to vector<1x8xbf16>
      %337 = arith.truncf %335 : vector<24x8xf32> to vector<24x8xbf16>
      %cst_132 = arith.constant dense<0.000000e+00> : vector<1x24xf32>
      %338 = tpu.matmul %336, %337, %cst_132 {dimension_numbers = #tpu.dot_dimension_numbers<[1], [1], [0], [0], [0, 0, 1, 0], [], []>} : vector<1x8xbf16>, vector<24x8xbf16>, vector<1x24xf32> -> vector<1x24xf32>
      %339 = arith.addf %338, %5 : vector<1x24xf32>
      %cst_133 = arith.constant dense<0xFF800000> : vector<1xf32>
      %340 = vector.multi_reduction <maximumf>, %339, %cst_133 [1] : vector<1x24xf32> to vector<1xf32>
      %341 = vector.shape_cast %340 : vector<1xf32> to vector<1x1xf32>
      %342 = vector.broadcast %341 : vector<1x1xf32> to vector<1x24xf32>
      %343 = arith.subf %339, %342 : vector<1x24xf32>
      %344 = math.exp %343 : vector<1x24xf32>
      %cst_134 = arith.constant dense<0.000000e+00> : vector<1xf32>
      %345 = vector.multi_reduction <add>, %344, %cst_134 [1] : vector<1x24xf32> to vector<1xf32>
      %346 = vector.shape_cast %345 : vector<1xf32> to vector<1x1xf32>
      %347 = tpu.reciprocal %346 {approx = true} : vector<1x1xf32> -> vector<1x1xf32>
      %348 = vector.broadcast %347 : vector<1x1xf32> to vector<1x24xf32>
      %349 = arith.mulf %344, %348 : vector<1x24xf32>
      %350 = vector.extract_strided_slice %293 {offsets = [0, 16], sizes = [24, 8], strides = [1, 1]} : vector<24x32xf32> to vector<24x8xf32>
      %351 = arith.truncf %349 : vector<1x24xf32> to vector<1x24xbf16>
      %352 = arith.truncf %350 : vector<24x8xf32> to vector<24x8xbf16>
      %cst_135 = arith.constant dense<0.000000e+00> : vector<1x8xf32>
      %353 = tpu.matmul %351, %352, %cst_135 {dimension_numbers = #tpu.dot_dimension_numbers<[1], [0], [0], [1], [0, 0, 1, 1], [], []>} : vector<1x24xbf16>, vector<24x8xbf16>, vector<1x8xf32> -> vector<1x8xf32>
      %354 = vector.extract_strided_slice %281 {offsets = [0, 24], sizes = [1, 8], strides = [1, 1]} : vector<1x32xf32> to vector<1x8xf32>
      %355 = vector.extract_strided_slice %287 {offsets = [0, 24], sizes = [24, 8], strides = [1, 1]} : vector<24x32xf32> to vector<24x8xf32>
      %356 = arith.truncf %354 : vector<1x8xf32> to vector<1x8xbf16>
      %357 = arith.truncf %355 : vector<24x8xf32> to vector<24x8xbf16>
      %cst_136 = arith.constant dense<0.000000e+00> : vector<1x24xf32>
      %358 = tpu.matmul %356, %357, %cst_136 {dimension_numbers = #tpu.dot_dimension_numbers<[1], [1], [0], [0], [0, 0, 1, 0], [], []>} : vector<1x8xbf16>, vector<24x8xbf16>, vector<1x24xf32> -> vector<1x24xf32>
      %359 = arith.addf %358, %5 : vector<1x24xf32>
      %cst_137 = arith.constant dense<0xFF800000> : vector<1xf32>
      %360 = vector.multi_reduction <maximumf>, %359, %cst_137 [1] : vector<1x24xf32> to vector<1xf32>
      %361 = vector.shape_cast %360 : vector<1xf32> to vector<1x1xf32>
      %362 = vector.broadcast %361 : vector<1x1xf32> to vector<1x24xf32>
      %363 = arith.subf %359, %362 : vector<1x24xf32>
      %364 = math.exp %363 : vector<1x24xf32>
      %cst_138 = arith.constant dense<0.000000e+00> : vector<1xf32>
      %365 = vector.multi_reduction <add>, %364, %cst_138 [1] : vector<1x24xf32> to vector<1xf32>
      %366 = vector.shape_cast %365 : vector<1xf32> to vector<1x1xf32>
      %367 = tpu.reciprocal %366 {approx = true} : vector<1x1xf32> -> vector<1x1xf32>
      %368 = vector.broadcast %367 : vector<1x1xf32> to vector<1x24xf32>
      %369 = arith.mulf %364, %368 : vector<1x24xf32>
      %370 = vector.extract_strided_slice %293 {offsets = [0, 24], sizes = [24, 8], strides = [1, 1]} : vector<24x32xf32> to vector<24x8xf32>
      %371 = arith.truncf %369 : vector<1x24xf32> to vector<1x24xbf16>
      %372 = arith.truncf %370 : vector<24x8xf32> to vector<24x8xbf16>
      %cst_139 = arith.constant dense<0.000000e+00> : vector<1x8xf32>
      %373 = tpu.matmul %371, %372, %cst_139 {dimension_numbers = #tpu.dot_dimension_numbers<[1], [0], [0], [1], [0, 0, 1, 1], [], []>} : vector<1x24xbf16>, vector<24x8xbf16>, vector<1x8xf32> -> vector<1x8xf32>
      %374 = tpu.concatenate %313, %333, %353, %373 in 1 : vector<1x8xf32>, vector<1x8xf32>, vector<1x8xf32>, vector<1x8xf32> -> vector<1x32xf32>
      %c0_140 = arith.constant 0 : index
      %c0_141 = arith.constant 0 : index
      %375 = vector.load %arg28[%c0_140, %c0_141] : memref<32x32xbf16, #tpu.memory_space<vmem>>, vector<32x32xbf16>
      %376 = arith.truncf %374 : vector<1x32xf32> to vector<1x32xbf16>
      %cst_142 = arith.constant dense<0.000000e+00> : vector<1x32xf32>
      %377 = tpu.matmul %376, %375, %cst_142 {dimension_numbers = #tpu.dot_dimension_numbers<[1], [0], [0], [1], [0, 0, 1, 1], [], []>} : vector<1x32xbf16>, vector<32x32xbf16>, vector<1x32xf32> -> vector<1x32xf32>
      %c0_143 = arith.constant 0 : index
      %c0_144 = arith.constant 0 : index
      %378 = vector.load %arg29[%c0_143, %c0_144] : memref<1x32xf32, #tpu.memory_space<vmem>>, vector<1x32xf32>
      %379 = arith.addf %377, %378 : vector<1x32xf32>
      %c0_145 = arith.constant 0 : index
      %c0_146 = arith.constant 0 : index
      %380 = vector.load %arg30[%c0_145, %c0_146] : memref<32x128xbf16, #tpu.memory_space<vmem>>, vector<32x128xbf16>
      %381 = arith.truncf %379 : vector<1x32xf32> to vector<1x32xbf16>
      %cst_147 = arith.constant dense<0.000000e+00> : vector<1x128xf32>
      %382 = tpu.matmul %381, %380, %cst_147 {dimension_numbers = #tpu.dot_dimension_numbers<[1], [0], [0], [1], [0, 0, 1, 1], [], []>} : vector<1x32xbf16>, vector<32x128xbf16>, vector<1x128xf32> -> vector<1x128xf32>
      %c0_148 = arith.constant 0 : index
      %c0_149 = arith.constant 0 : index
      %383 = vector.load %arg31[%c0_148, %c0_149] : memref<1x128xf32, #tpu.memory_space<vmem>>, vector<1x128xf32>
      %384 = arith.addf %382, %383 : vector<1x128xf32>
      %c0_150 = arith.constant 0 : index
      %c0_151 = arith.constant 0 : index
      %c0_152 = arith.constant 0 : index
      %385 = vector.load %arg32[%c0_150, %c0_151, %c0_152] : memref<1x1x128xf32, #tpu.memory_space<vmem>>, vector<1x1x128xf32>
      %386 = vector.shape_cast %385 : vector<1x1x128xf32> to vector<1x128xf32>
      %387 = vector.shape_cast %384 : vector<1x128xf32> to vector<1x1x128xf32>
      tpu.vector_store %arg32[%c0_150, %c0_151, %c0_152], %387 {strides = array<i32>} : memref<1x1x128xf32, #tpu.memory_space<vmem>>, vector<1x1x128xf32>,
    } else {
    }
    return
  }
  func.func @transform_0(%arg0: i32, %arg1: i32) -> (i32, i32, i32) {
    %c0_i32 = arith.constant 0 : i32
    %c0_i32_0 = arith.constant 0 : i32
    %c0_i32_1 = arith.constant 0 : i32
    return %arg0, %c0_i32, %c0_i32_0 : i32, i32, i32
  }
  func.func @transform_1(%arg0: i32, %arg1: i32) -> (i32, i32, i32) {
    %c0_i32 = arith.constant 0 : i32
    %c0_i32_0 = arith.constant 0 : i32
    %c0_i32_1 = arith.constant 0 : i32
    return %arg1, %c0_i32, %c0_i32_0 : i32, i32, i32
  }
  func.func @transform_2(%arg0: i32, %arg1: i32) -> (i32, i32, i32) {
    %c0_i32 = arith.constant 0 : i32
    %c0_i32_0 = arith.constant 0 : i32
    %c0_i32_1 = arith.constant 0 : i32
    return %arg1, %c0_i32, %c0_i32_0 : i32, i32, i32
  }
  func.func @transform_3(%arg0: i32, %arg1: i32) -> (i32, i32, i32) {
    %c0_i32 = arith.constant 0 : i32
    %c0_i32_0 = arith.constant 0 : i32
    %c0_i32_1 = arith.constant 0 : i32
    return %arg1, %c0_i32, %c0_i32_0 : i32, i32, i32
  }
  func.func @transform_4(%arg0: i32, %arg1: i32) -> (i32, i32, i32) {
    %c0_i32 = arith.constant 0 : i32
    %c0_i32_0 = arith.constant 0 : i32
    %c0_i32_1 = arith.constant 0 : i32
    return %arg1, %c0_i32, %c0_i32_0 : i32, i32, i32
  }
  func.func @transform_5(%arg0: i32, %arg1: i32) -> (i32, i32, i32) {
    %c0_i32 = arith.constant 0 : i32
    %c0_i32_0 = arith.constant 0 : i32
    %c0_i32_1 = arith.constant 0 : i32
    return %arg1, %c0_i32, %c0_i32_0 : i32, i32, i32
  }
  func.func @transform_6(%arg0: i32, %arg1: i32) -> (i32, i32, i32) {
    %c0_i32 = arith.constant 0 : i32
    %c0_i32_0 = arith.constant 0 : i32
    %c0_i32_1 = arith.constant 0 : i32
    return %arg1, %c0_i32, %c0_i32_0 : i32, i32, i32
  }
  func.func @transform_7(%arg0: i32, %arg1: i32) -> (i32, i32, i32) {
    %c0_i32 = arith.constant 0 : i32
    %c0_i32_0 = arith.constant 0 : i32
    %c0_i32_1 = arith.constant 0 : i32
    return %arg1, %c0_i32, %c0_i32_0 : i32, i32, i32
  }
  func.func @transform_8(%arg0: i32, %arg1: i32) -> (i32, i32, i32) {
    %c0_i32 = arith.constant 0 : i32
    %c0_i32_0 = arith.constant 0 : i32
    %c0_i32_1 = arith.constant 0 : i32
    return %arg1, %c0_i32, %c0_i32_0 : i32, i32, i32
  }
  func.func @transform_9(%arg0: i32, %arg1: i32) -> (i32, i32, i32) {
    %c0_i32 = arith.constant 0 : i32
    %c0_i32_0 = arith.constant 0 : i32
    %c0_i32_1 = arith.constant 0 : i32
    return %arg1, %c0_i32, %c0_i32_0 : i32, i32, i32
  }
  func.func @transform_10(%arg0: i32, %arg1: i32) -> (i32, i32, i32) {
    %c0_i32 = arith.constant 0 : i32
    %c0_i32_0 = arith.constant 0 : i32
    %c0_i32_1 = arith.constant 0 : i32
    return %arg1, %c0_i32, %c0_i32_0 : i32, i32, i32
  }
  func.func @transform_11(%arg0: i32, %arg1: i32) -> (i32, i32, i32) {
    %c0_i32 = arith.constant 0 : i32
    %c0_i32_0 = arith.constant 0 : i32
    %c0_i32_1 = arith.constant 0 : i32
    return %arg1, %c0_i32, %c0_i32_0 : i32, i32, i32
  }
  func.func @transform_12(%arg0: i32, %arg1: i32) -> (i32, i32, i32) {
    %c0_i32 = arith.constant 0 : i32
    %c0_i32_0 = arith.constant 0 : i32
    %c0_i32_1 = arith.constant 0 : i32
    return %arg1, %c0_i32, %c0_i32_0 : i32, i32, i32
  }
  func.func @transform_13(%arg0: i32, %arg1: i32) -> (i32, i32) {
    %c0_i32 = arith.constant 0 : i32
    %c0_i32_0 = arith.constant 0 : i32
    %c0_i32_1 = arith.constant 0 : i32
    return %c0_i32, %c0_i32_0 : i32, i32
  }
  func.func @transform_14(%arg0: i32, %arg1: i32) -> (i32, i32) {
    %c0_i32 = arith.constant 0 : i32
    %c0_i32_0 = arith.constant 0 : i32
    %c0_i32_1 = arith.constant 0 : i32
    return %c0_i32, %c0_i32_0 : i32, i32
  }
  func.func @transform_15(%arg0: i32, %arg1: i32) -> (i32, i32) {
    %c0_i32 = arith.constant 0 : i32
    %c0_i32_0 = arith.constant 0 : i32
    %c0_i32_1 = arith.constant 0 : i32
    return %c0_i32, %c0_i32_0 : i32, i32
  }
  func.func @transform_16(%arg0: i32, %arg1: i32) -> (i32, i32) {
    %c0_i32 = arith.constant 0 : i32
    %c0_i32_0 = arith.constant 0 : i32
    %c0_i32_1 = arith.constant 0 : i32
    return %c0_i32, %c0_i32_0 : i32, i32
  }
  func.func @transform_17(%arg0: i32, %arg1: i32) -> (i32, i32) {
    %c0_i32 = arith.constant 0 : i32
    %c0_i32_0 = arith.constant 0 : i32
    %c0_i32_1 = arith.constant 0 : i32
    return %c0_i32, %c0_i32_0 : i32, i32
  }
  func.func @transform_18(%arg0: i32, %arg1: i32) -> (i32, i32) {
    %c0_i32 = arith.constant 0 : i32
    %c0_i32_0 = arith.constant 0 : i32
    %c0_i32_1 = arith.constant 0 : i32
    return %c0_i32, %c0_i32_0 : i32, i32
  }
  func.func @transform_19(%arg0: i32, %arg1: i32) -> (i32, i32) {
    %c0_i32 = arith.constant 0 : i32
    %c0_i32_0 = arith.constant 0 : i32
    %c0_i32_1 = arith.constant 0 : i32
    return %c0_i32, %c0_i32_0 : i32, i32
  }
  func.func @transform_20(%arg0: i32, %arg1: i32) -> (i32, i32) {
    %c0_i32 = arith.constant 0 : i32
    %c0_i32_0 = arith.constant 0 : i32
    %c0_i32_1 = arith.constant 0 : i32
    return %c0_i32, %c0_i32_0 : i32, i32
  }
  func.func @transform_21(%arg0: i32, %arg1: i32) -> (i32, i32) {
    %c0_i32 = arith.constant 0 : i32
    %c0_i32_0 = arith.constant 0 : i32
    %c0_i32_1 = arith.constant 0 : i32
    return %c0_i32, %c0_i32_0 : i32, i32
  }
  func.func @transform_22(%arg0: i32, %arg1: i32) -> (i32, i32) {
    %c0_i32 = arith.constant 0 : i32
    %c0_i32_0 = arith.constant 0 : i32
    %c0_i32_1 = arith.constant 0 : i32
    return %c0_i32, %c0_i32_0 : i32, i32
  }
  func.func @transform_23(%arg0: i32, %arg1: i32) -> (i32, i32) {
    %c0_i32 = arith.constant 0 : i32
    %c0_i32_0 = arith.constant 0 : i32
    %c0_i32_1 = arith.constant 0 : i32
    return %c0_i32, %c0_i32_0 : i32, i32
  }
  func.func @transform_24(%arg0: i32, %arg1: i32) -> (i32, i32) {
    %c0_i32 = arith.constant 0 : i32
    %c0_i32_0 = arith.constant 0 : i32
    %c0_i32_1 = arith.constant 0 : i32
    return %c0_i32, %c0_i32_0 : i32, i32
  }
  func.func @transform_25(%arg0: i32, %arg1: i32) -> (i32, i32) {
    %c0_i32 = arith.constant 0 : i32
    %c0_i32_0 = arith.constant 0 : i32
    %c0_i32_1 = arith.constant 0 : i32
    return %c0_i32, %c0_i32_0 : i32, i32
  }
  func.func @transform_26(%arg0: i32, %arg1: i32) -> (i32, i32) {
    %c0_i32 = arith.constant 0 : i32
    %c0_i32_0 = arith.constant 0 : i32
    %c0_i32_1 = arith.constant 0 : i32
    return %c0_i32, %c0_i32_0 : i32, i32
  }
  func.func @transform_27(%arg0: i32, %arg1: i32) -> (i32, i32) {
    %c0_i32 = arith.constant 0 : i32
    %c0_i32_0 = arith.constant 0 : i32
    %c0_i32_1 = arith.constant 0 : i32
    return %c0_i32, %c0_i32_0 : i32, i32
  }
  func.func @transform_28(%arg0: i32, %arg1: i32) -> (i32, i32) {
    %c0_i32 = arith.constant 0 : i32
    %c0_i32_0 = arith.constant 0 : i32
    %c0_i32_1 = arith.constant 0 : i32
    return %c0_i32, %c0_i32_0 : i32, i32
  }
  func.func @transform_29(%arg0: i32, %arg1: i32) -> (i32, i32) {
    %c0_i32 = arith.constant 0 : i32
    %c0_i32_0 = arith.constant 0 : i32
    %c0_i32_1 = arith.constant 0 : i32
    return %c0_i32, %c0_i32_0 : i32, i32
  }
  func.func @transform_30(%arg0: i32, %arg1: i32) -> (i32, i32, i32) {
    %c0_i32 = arith.constant 0 : i32
    %c0_i32_0 = arith.constant 0 : i32
    %c0_i32_1 = arith.constant 0 : i32
    return %arg0, %c0_i32, %c0_i32_0 : i32, i32, i32
  }
}

module attributes {stable_mosaic.version = 11 : i64} {
  func.func @_embed_kernel(%arg0: i32, %arg1: memref<1x16x48xf32, #tpu.memory_space<vmem>>, %arg2: memref<48x32xbf16, #tpu.memory_space<vmem>>, %arg3: memref<1x32xf32, #tpu.memory_space<vmem>>, %arg4: memref<17x32xf32, #tpu.memory_space<vmem>>, %arg5: memref<1x32xf32, #tpu.memory_space<vmem>>, %arg6: memref<1x32xf32, #tpu.memory_space<vmem>>, %arg7: memref<1x24x32xf32, #tpu.memory_space<vmem>>) attributes {dimension_semantics = [#tpu.dimension_semantics<parallel>], iteration_bounds = array<i64: 2>, scalar_prefetch = 0 : i64, scratch_operands = 0 : i64, tpu.core_type = #tpu.core_type<tc>, window_params = [{transform_indices = @transform_0, window_bounds = array<i64: 1, 16, 48>}, {pipeline_mode = #tpu.pipeline_mode<synchronous>, transform_indices = @transform_1, window_bounds = array<i64: 48, 32>}, {pipeline_mode = #tpu.pipeline_mode<synchronous>, transform_indices = @transform_2, window_bounds = array<i64: 1, 32>}, {pipeline_mode = #tpu.pipeline_mode<synchronous>, transform_indices = @transform_3, window_bounds = array<i64: 17, 32>}, {pipeline_mode = #tpu.pipeline_mode<synchronous>, transform_indices = @transform_4, window_bounds = array<i64: 1, 32>}, {pipeline_mode = #tpu.pipeline_mode<synchronous>, transform_indices = @transform_5, window_bounds = array<i64: 1, 32>}, {transform_indices = @transform_6, window_bounds = array<i64: 1, 24, 32>}]} {
    %c0 = arith.constant 0 : index
    %c0_0 = arith.constant 0 : index
    %c0_1 = arith.constant 0 : index
    %0 = vector.load %arg1[%c0, %c0_0, %c0_1] : memref<1x16x48xf32, #tpu.memory_space<vmem>>, vector<1x16x48xf32>
    %1 = vector.shape_cast %0 : vector<1x16x48xf32> to vector<16x48xf32>
    %c0_2 = arith.constant 0 : index
    %c0_3 = arith.constant 0 : index
    %2 = vector.load %arg2[%c0_2, %c0_3] : memref<48x32xbf16, #tpu.memory_space<vmem>>, vector<48x32xbf16>
    %3 = arith.truncf %1 : vector<16x48xf32> to vector<16x48xbf16>
    %cst = arith.constant dense<0.000000e+00> : vector<16x32xf32>
    %4 = tpu.matmul %3, %2, %cst {dimension_numbers = #tpu.dot_dimension_numbers<[1], [0], [0], [1], [0, 0, 1, 1], [], []>} : vector<16x48xbf16>, vector<48x32xbf16>, vector<16x32xf32> -> vector<16x32xf32>
    %c0_4 = arith.constant 0 : index
    %c0_5 = arith.constant 0 : index
    %5 = vector.load %arg3[%c0_4, %c0_5] : memref<1x32xf32, #tpu.memory_space<vmem>>, vector<1x32xf32>
    %6 = tpu.concatenate %5, %4 in 0 : vector<1x32xf32>, vector<16x32xf32> -> vector<17x32xf32>
    %c0_6 = arith.constant 0 : index
    %c0_7 = arith.constant 0 : index
    %7 = vector.load %arg4[%c0_6, %c0_7] : memref<17x32xf32, #tpu.memory_space<vmem>>, vector<17x32xf32>
    %8 = arith.addf %6, %7 : vector<17x32xf32>
    %c0_8 = arith.constant 0 : index
    %c0_9 = arith.constant 0 : index
    %9 = vector.load %arg5[%c0_8, %c0_9] : memref<1x32xf32, #tpu.memory_space<vmem>>, vector<1x32xf32>
    %c0_10 = arith.constant 0 : index
    %c0_11 = arith.constant 0 : index
    %10 = vector.load %arg6[%c0_10, %c0_11] : memref<1x32xf32, #tpu.memory_space<vmem>>, vector<1x32xf32>
    %cst_12 = arith.constant dense<0.000000e+00> : vector<17xf32>
    %11 = vector.multi_reduction <add>, %8, %cst_12 [1] : vector<17x32xf32> to vector<17xf32>
    %12 = vector.shape_cast %11 : vector<17xf32> to vector<17x1xf32>
    %cst_13 = arith.constant 3.200000e+01 : f32
    %13 = vector.broadcast %cst_13 : f32 to vector<17x1xf32>
    %14 = arith.divf %12, %13 : vector<17x1xf32>
    %15 = vector.broadcast %14 : vector<17x1xf32> to vector<17x32xf32>
    %16 = arith.subf %8, %15 : vector<17x32xf32>
    %17 = arith.mulf %16, %16 : vector<17x32xf32>
    %cst_14 = arith.constant dense<0.000000e+00> : vector<17xf32>
    %18 = vector.multi_reduction <add>, %17, %cst_14 [1] : vector<17x32xf32> to vector<17xf32>
    %19 = vector.shape_cast %18 : vector<17xf32> to vector<17x1xf32>
    %cst_15 = arith.constant 3.200000e+01 : f32
    %20 = vector.broadcast %cst_15 : f32 to vector<17x1xf32>
    %21 = arith.divf %19, %20 : vector<17x1xf32>
    %22 = vector.broadcast %14 : vector<17x1xf32> to vector<17x32xf32>
    %23 = arith.subf %8, %22 : vector<17x32xf32>
    %cst_16 = arith.constant 9.99999974E-6 : f32
    %24 = vector.broadcast %cst_16 : f32 to vector<17x1xf32>
    %25 = arith.addf %21, %24 : vector<17x1xf32>
    %26 = math.rsqrt %25 : vector<17x1xf32>
    %27 = vector.broadcast %26 : vector<17x1xf32> to vector<17x32xf32>
    %28 = arith.mulf %23, %27 : vector<17x32xf32>
    %29 = vector.broadcast %9 : vector<1x32xf32> to vector<17x32xf32>
    %30 = arith.mulf %28, %29 : vector<17x32xf32>
    %31 = vector.broadcast %10 : vector<1x32xf32> to vector<17x32xf32>
    %32 = arith.addf %30, %31 : vector<17x32xf32>
    %cst_17 = arith.constant 0.000000e+00 : f32
    %33 = vector.broadcast %cst_17 : f32 to vector<7x32xf32>
    %34 = tpu.concatenate %32, %33 in 0 : vector<17x32xf32>, vector<7x32xf32> -> vector<24x32xf32>
    %c0_18 = arith.constant 0 : index
    %c0_19 = arith.constant 0 : index
    %c0_20 = arith.constant 0 : index
    %35 = vector.load %arg7[%c0_18, %c0_19, %c0_20] : memref<1x24x32xf32, #tpu.memory_space<vmem>>, vector<1x24x32xf32>
    %36 = vector.shape_cast %35 : vector<1x24x32xf32> to vector<24x32xf32>
    %37 = vector.shape_cast %34 : vector<24x32xf32> to vector<1x24x32xf32>
    tpu.vector_store %arg7[%c0_18, %c0_19, %c0_20], %37 {strides = array<i32>} : memref<1x24x32xf32, #tpu.memory_space<vmem>>, vector<1x24x32xf32>,
    return
  }
  func.func @transform_0(%arg0: i32) -> (i32, i32, i32) {
    %c0_i32 = arith.constant 0 : i32
    %c0_i32_0 = arith.constant 0 : i32
    %c0_i32_1 = arith.constant 0 : i32
    return %arg0, %c0_i32, %c0_i32_0 : i32, i32, i32
  }
  func.func @transform_1(%arg0: i32) -> (i32, i32) {
    %c0_i32 = arith.constant 0 : i32
    %c0_i32_0 = arith.constant 0 : i32
    %c0_i32_1 = arith.constant 0 : i32
    return %c0_i32, %c0_i32_0 : i32, i32
  }
  func.func @transform_2(%arg0: i32) -> (i32, i32) {
    %c0_i32 = arith.constant 0 : i32
    %c0_i32_0 = arith.constant 0 : i32
    %c0_i32_1 = arith.constant 0 : i32
    return %c0_i32, %c0_i32_0 : i32, i32
  }
  func.func @transform_3(%arg0: i32) -> (i32, i32) {
    %c0_i32 = arith.constant 0 : i32
    %c0_i32_0 = arith.constant 0 : i32
    %c0_i32_1 = arith.constant 0 : i32
    return %c0_i32, %c0_i32_0 : i32, i32
  }
  func.func @transform_4(%arg0: i32) -> (i32, i32) {
    %c0_i32 = arith.constant 0 : i32
    %c0_i32_0 = arith.constant 0 : i32
    %c0_i32_1 = arith.constant 0 : i32
    return %c0_i32, %c0_i32_0 : i32, i32
  }
  func.func @transform_5(%arg0: i32) -> (i32, i32) {
    %c0_i32 = arith.constant 0 : i32
    %c0_i32_0 = arith.constant 0 : i32
    %c0_i32_1 = arith.constant 0 : i32
    return %c0_i32, %c0_i32_0 : i32, i32
  }
  func.func @transform_6(%arg0: i32) -> (i32, i32, i32) {
    %c0_i32 = arith.constant 0 : i32
    %c0_i32_0 = arith.constant 0 : i32
    %c0_i32_1 = arith.constant 0 : i32
    return %arg0, %c0_i32, %c0_i32_0 : i32, i32, i32
  }
}

</mosaic_0001>

<bundles_post_ra>
// kernel: coca_backbone_forward.2
= control target key start
LH: loop header
LB: loop body
LE: loop exit
PB: predicated region body
PF: predicated region fallthrough
CT: control target
= control target key end

     0   :  { %s559_s21 = smov 0   ;;  %s619_s0 = inlined_call_operand.vmem [shape: f32[2,16,48], index: 0, kind: input, shape index: {}]   ;;  %s620_s1 = inlined_call_operand.vmem [shape: bf16[48,32], index: 1, kind: input, shape index: {}]   ;;  %s621_s2 = inlined_call_operand.vmem [shape: f32[1,32], index: 2, kind: input, shape index: {}]   ;;  %s622_s3 = inlined_call_operand.vmem [shape: f32[17,32], index: 3, kind: input, shape index: {}]   ;;  %s623_s4 = inlined_call_operand.vmem [shape: f32[1,32], index: 4, kind: input, shape index: {}]   ;;  %s624_s5 = inlined_call_operand.vmem [shape: f32[1,32], index: 5, kind: input, shape index: {}]   ;;  %s625_s6 = inlined_call_operand.vmem [shape: f32[2,24,32], index: 6, kind: output, shape index: {}]  }
   0x1 LB: > { %s463_s22 = sadd.s32 4294967295, %s520_s21   ;;  %p467_p0 = scmp.ge.s32.totalorder %s520_s21, 1  ;;  %s520_s21 = sphi %s559_s21, %s16_s21  }
   0x2   : > { %p212_p1 = scmp.lt.s32.totalorder %s520_s21, 3 }
   0x4   : > { %p213_p2 = pnand %p467_p0, %p212_p1 }
   0x5   : > { %p242_p3 = scmp.lt.s32.totalorder (!%p213_p2), %s463_s22, 1 }
   0x6   : > { %216 = sbr.rel (%p213_p2) target bundleno = 539 (0x21b), region = 44 }
   0xb   : > { %v505_v0 = vld [vmem:[%s620_s1 + $0x10] sm:$0xff]   ;;  %v522_v1 = vmov 0.0   ;;  %v506_v2 = vld [vmem:[%s620_s1 + $0x8] sm:$0xff]   ;;  %vm523_vm0 = vmmov 0   ;;  %s627_s22 = smov (!%p242_p3, %s463_s22), 1  ;;  %v507_v3 = vld [vmem:[%s620_s1] sm:$0xff]  }
   0xc   : > { %484 = vmatprep.subr.bf16.mxu0 %v522_v1  ;;  %490 = vmatprep.mubr.msk.bf16.mxu0 %vm523_vm0, %v522_v1  ;;  %s479_s29 = sshll.u32 %s627_s22, 4  ;;  %vm280_vm1 = vcmask 392192   ;;  %vm328_vm2 = vcmask 1040384   ;;  %v325_v10 = vld [vmem:[%s621_s2] sm:$0x1]  ;;  %v337_v14 = vld [vmem:[%s622_s3 + $0x8] sm:$0xff] }
   0xd   : > { %485 = vmatpush3.bf16.msra.mxu0 %v505_v0  ;;  %s246_s8 = scalar_lea.vmem %s619_s0, %s479_s29  ;;  %v338_v12 = vld [vmem:[%s622_s3 + $0x10] sm:$0x1]  ;;  %vm351_vm3 = vcmask 253952   ;;  %v336_v17 = vld [vmem:[%s622_s3] sm:$0xff]  ;;  %vm344_vm4 = vcmask 261120   ;;  %s494_s19 = smul.u32 24, %s627_s22 }
   0xe   : > { %486 = vmatprep.subr.bf16.mxu0 %v522_v1  ;;  %v253_v4 = vld [vmem:[%s246_s8] sm:$0xff]  ;;  %v254_v5 = vld [vmem:[%s246_s8 + $0x8] sm:$0xff] }
   0xf   : > { %v261_v6 = vpack.c.bf16 %v254_v5, %v253_v4  ;;  %v475_v50 = vld [vmem:[%s623_s4] ss:$0 sm:$0xff]  ;;  %s251_s26 = scalar_lea.vmem %s625_s6, %s494_s19 }
  0x10   : > { %v476_v52 = vld [vmem:[%s624_s5] ss:$0 sm:$0xff] }
  0x11   : > { %487 = vmatpush3.bf16.msra.mxu0 %v506_v2 }
  0x12   : > { %488 = vmatprep.subr.bf16.mxu0 %v522_v1 }
  0x15   : > { %489 = vmatpush3.bf16.msra.mxu0 %v507_v3 }
  0x18   : > { %491 = vmatmul.mubr.msk.bf16.vlgmr.msra.gmra.mxu0 %vm280_vm1, %v261_v6 }
  0xd8   : > { %v318_v7 = vpop.f32.mrf.mxu0 }
  0xd9   : > { %v329_v8 = vrot.slane %v318_v7, 7 }
  0xda   : > { %v492_v9 = vpop.f32.mrf.mxu0 }
  0xdb   : > { %v335_v16 = vsel %vm328_vm2, %v325_v10, %v329_v8 }
  0xdc   : > { %v321_v11 = vpop.f32.mrf.mxu0  ;;  %v339_v22 = vadd.f32 %v336_v17, %v335_v16 }
  0xdd   : > { %v330_v13 = vrot.slane %v321_v11, 7 }
  0xde   : > { %v493_v15 = vpop.f32.mrf.mxu0  ;;  %v345_v24 = vsel %vm344_vm4, %v339_v22, 0.0 }
  0xdf   : > { %v341_v18 = vadd.f32 %v338_v12, %v330_v13  ;;  %v331_v19 = vsel %vm328_vm2, %v329_v8, %v330_v13 }
  0xe0   : > { %v340_v20 = vadd.f32 %v337_v14, %v331_v19 }
  0xe1   : > { %v352_v21 = vsel %vm351_vm3, %v341_v18, 0.0 }
  0xe2   : > { %353 = vadd.xlane.f32.xlu0 %v352_v21  ;;  %v348_v23 = vsel %vm344_vm4, %v340_v20, 0.0 }
  0xe3   : > { %349 = vadd.xlane.f32.xlu1 %v348_v23 }
  0xe6   : > { %346 = vadd.xlane.f32.xlu0 %v345_v24 }
 0x16b   : > { %v354_v25 = vpop.xlane.xlu0 %353 }
 0x16c   : > { %v358_v26 = vmul.f32 0.03125, %v354_v25  ;;  %v350_v27 = vpop.xlane.xlu1 %349 }
 0x16d   : > { %v357_v28 = vmul.f32 0.03125, %v350_v27 }
 0x16e   : > { %v361_v29 = vsub.f32 %v341_v18, %v358_v26 }
 0x16f   : > { %v360_v30 = vsub.f32 %v340_v20, %v357_v28  ;;  %v347_v31 = vpop.xlane.xlu0 %346 }
 0x170   : > { %v356_v32 = vmul.f32 0.03125, %v347_v31  ;;  %v364_v33 = vmul.f32 %v361_v29, %v361_v29 }
 0x171   : > { %v363_v36 = vmul.f32 %v360_v30, %v360_v30 }
 0x172   : > { %v359_v34 = vsub.f32 %v339_v22, %v356_v32  ;;  %v371_v35 = vsel %vm351_vm3, %v364_v33, 0.0 }
 0x173   : > { %372 = vadd.xlane.f32.xlu1 %v371_v35  ;;  %v368_v39 = vsel %vm344_vm4, %v363_v36, 0.0 }
 0x174   : > { %v362_v37 = vmul.f32 %v359_v34, %v359_v34 }
 0x176   : > { %v365_v38 = vsel %vm344_vm4, %v362_v37, 0.0 }
 0x177   : > { %366 = vadd.xlane.f32.xlu0 %v365_v38  ;;  %369 = vadd.xlane.f32.xlu1 %v368_v39 }
 0x1fc   : > { %v373_v40 = vpop.xlane.xlu1 %372 }
 0x1fd   : > { %v376_v41 = vmul.f32 0.03125, %v373_v40 }
 0x1ff   : > { %v379_v42 = vadd.f32 1e-05, %v376_v41 }
 0x200   : > { %v367_v43 = vpop.xlane.xlu0 %366  ;;  %v370_v44 = vpop.xlane.xlu1 %369 }
 0x201   : > { %508 = vrsqrt.f32 %v379_v42  ;;  %v374_v45 = vmul.f32 0.03125, %v367_v43  ;;  %v375_v46 = vmul.f32 0.03125, %v370_v44 }
 0x203   : > { %v377_v47 = vadd.f32 1e-05, %v374_v45  ;;  %v378_v48 = vadd.f32 1e-05, %v375_v46 }
 0x205   : > { %510 = vrsqrt.f32 %v377_v47 }
 0x206   : > { %512 = vrsqrt.f32 %v378_v48 }
 0x20e   : > { %v509_v49 = vpop.eup %508 }
 0x20f   : > { %v385_v51 = vmul.f32 %v509_v49, %v361_v29 }
 0x211   : > { %v394_v53 = vmul.f32 %v475_v50, %v385_v51 }
 0x212   : > { %v511_v54 = vpop.eup %510 }
 0x213   : > { %v513_v55 = vpop.eup %512  ;;  %v403_v56 = vadd.f32 %v476_v52, %v394_v53  ;;  %v383_v57 = vmul.f32 %v511_v54, %v359_v34 }
 0x214   : > { %v384_v58 = vmul.f32 %v513_v55, %v360_v30 }
 0x215   : > { %v404_v59 = vsel %vm328_vm2, %v403_v56, 0.0  ;;  %v392_v60 = vmul.f32 %v475_v50, %v383_v57 }
 0x216   : > { %407 = vst.msk [vmem:[%s251_s26 + $0x10] sm:$0xff] %vm344_vm4, %v404_v59  ;;  %v393_v61 = vmul.f32 %v475_v50, %v384_v58 }
 0x217   : > { %v401_v62 = vadd.f32 %v476_v52, %v392_v60 }
 0x218   : > { %v402_v63 = vadd.f32 %v476_v52, %v393_v61 }
 0x219   : > { %405 = vst.msk [vmem:[%s251_s26] sm:$0xff] %vm344_vm4, %v401_v62 }
 0x21a   : > { %406 = vst.msk [vmem:[%s251_s26 + $0x8] sm:$0xff] %vm344_vm4, %v402_v63 }
 0x21b PF: > { %s16_s21 = sadd.s32 1, %s520_s21  }
 0x21c   : > { %p13_p4 = scmp.ge.s32.totalorder %s16_s21, 4  }
 0x21e   :  { %15 = sbr.rel (!%p13_p4) target bundleno = 1 (0x1), region = 74 }

// kernel: coca_backbone_forward.3
= control target key start
LH: loop header
LB: loop body
LE: loop exit
PB: predicated region body
PF: predicated region fallthrough
CT: control target
= control target key end

     0   :  { %s4353_s6 = smov 1   ;;  %s4354_s10 = smov 2   ;;  %s5121_s0 = inlined_call_operand.smem [shape: u32[31], index: -1, kind: input, shape index: {}] }
   0x1   :  { %s4415_s5 = sld [smem:[%s5121_s0]]   ;;  %s4355_s14 = smov 3  }
   0x2   :  { %s4420_s9 = sld [smem:[%s5121_s0 + %s4353_s6]]   ;;  %s4356_s18 = smov 4  }
   0x3   :  { %s4425_s13 = sld [smem:[%s5121_s0 + %s4354_s10]]   ;;  %s4357_s22 = smov 5  }
   0x4   :  { %s4430_s17 = sld [smem:[%s5121_s0 + %s4355_s14]]   ;;  %s4358_s26 = smov 6  }
   0x5   :  { %s4435_s21 = sld [smem:[%s5121_s0 + %s4356_s18]]   ;;  %s4359_s30 = smov 7  }
   0x6   :  { %s4440_s25 = sld [smem:[%s5121_s0 + %s4357_s22]]   ;;  %s4360_s4 = smov 8  }
   0x7   :  { %s4445_s29 = sld [smem:[%s5121_s0 + %s4358_s26]]   ;;  %s4361_s10 = smov 9  }
   0x8   :  { %s4450_s3 = sld [smem:[%s5121_s0 + %s4359_s30]]   ;;  %s4362_s15 = smov 10  }
   0x9   :  { %5139 = sst [smem:[#allocation6_spill]] %s4425_s13  ;;  %s4363_s20 = smov 11  }
   0xa   :  { %s4455_s8 = sld [smem:[%s5121_s0 + %s4360_s4]]   ;;  %s4364_s26 = smov 12  }
   0xb   :  { %s4460_s14 = sld [smem:[%s5121_s0 + %s4361_s10]]   ;;  %s4365_s1 = smov 13  }
   0xc   :  { %s4465_s19 = sld [smem:[%s5121_s0 + %s4362_s15]]   ;;  %s4366_s7 = smov 14  }
   0xd   :  { %s4470_s24 = sld [smem:[%s5121_s0 + %s4363_s20]]   ;;  %s4367_s15 = smov 15  }
   0xe   :  { %s4475_s30 = sld [smem:[%s5121_s0 + %s4364_s26]]   ;;  %s4368_s22 = smov 16  }
   0xf   :  { %s4480_s6 = sld [smem:[%s5121_s0 + %s4365_s1]]   ;;  %s4369_s28 = smov 17  }
  0x10   :  { %s4485_s12 = sld [smem:[%s5121_s0 + %s4366_s7]]   ;;  %s4370_s7 = smov 18  }
  0x11   :  { %s4490_s20 = sld [smem:[%s5121_s0 + %s4367_s15]]   ;;  %s4371_s15 = smov 19  }
  0x12   :  { %s4495_s27 = sld [smem:[%s5121_s0 + %s4368_s22]]   ;;  %s4372_s22 = smov 20  }
  0x13   :  { %s4500_s4 = sld [smem:[%s5121_s0 + %s4369_s28]]   ;;  %s4373_s28 = smov 21  }
  0x15   :  { %5140 = sst [smem:[#allocation7_spill]] %s4480_s6 }
  0x16   :  { %5141 = sst [smem:[#allocation8_spill]] %s4485_s12 }
  0x17   :  { %5142 = sst [smem:[#allocation9_spill]] %s4490_s20 }
  0x18   :  { %5143 = sst [smem:[#allocation10_spill]] %s4495_s27 }
  0x19   :  { %5144 = sst [smem:[#allocation11_spill]] %s4500_s4 }
  0x1a   :  { %s4505_s12 = sld [smem:[%s5121_s0 + %s4370_s7]]   ;;  %s4374_s7 = smov 22  }
  0x1b   :  { %s4510_s20 = sld [smem:[%s5121_s0 + %s4371_s15]]   ;;  %s4375_s15 = smov 23  }
  0x1c   :  { %s4515_s27 = sld [smem:[%s5121_s0 + %s4372_s22]]   ;;  %s4376_s22 = smov 24  }
  0x1d   :  { %s4520_s4 = sld [smem:[%s5121_s0 + %s4373_s28]]   ;;  %s4377_s28 = smov 25  }
  0x20   :  { %5145 = sst [smem:[#allocation12_spill]] %s4505_s12 }
  0x21   :  { %5146 = sst [smem:[#allocation13_spill]] %s4510_s20 }
  0x22   :  { %5147 = sst [smem:[#allocation14_spill]] %s4515_s27 }
  0x23   :  { %5148 = sst [smem:[#allocation15_spill]] %s4520_s4 }
  0x24   :  { %s4525_s12 = sld [smem:[%s5121_s0 + %s4374_s7]]   ;;  %s4378_s7 = smov 26  }
  0x25   :  { %s4530_s20 = sld [smem:[%s5121_s0 + %s4375_s15]]   ;;  %s4379_s15 = smov 27  }
  0x26   :  { %s4535_s27 = sld [smem:[%s5121_s0 + %s4376_s22]]   ;;  %s4380_s22 = smov 28  }
  0x27   :  { %s4540_s4 = sld [smem:[%s5121_s0 + %s4377_s28]]   ;;  %s4381_s28 = smov 29  }
  0x2a   :  { %5149 = sst [smem:[#allocation16_spill]] %s4525_s12 }
  0x2b   :  { %5150 = sst [smem:[#allocation17_spill]] %s4530_s20 }
  0x2c   :  { %5151 = sst [smem:[#allocation18_spill]] %s4535_s27 }
  0x2d   :  { %5152 = sst [smem:[#allocation19_spill]] %s4540_s4 }
  0x2e   :  { %s4545_s12 = sld [smem:[%s5121_s0 + %s4378_s7]]   ;;  %s4382_s7 = smov 30  }
  0x2f   :  { %s4550_s20 = sld [smem:[%s5121_s0 + %s4379_s15]]  }
  0x30   :  { %s4555_s27 = sld [smem:[%s5121_s0 + %s4380_s22]]  }
  0x31   :  { %s4560_s4 = sld [smem:[%s5121_s0 + %s4381_s28]]  }
  0x34   :  { %5153 = sst [smem:[#allocation20_spill]] %s4545_s12 }
  0x35   :  { %5154 = sst [smem:[#allocation21_spill]] %s4550_s20 }
  0x36   :  { %5155 = sst [smem:[#allocation22_spill]] %s4555_s27 }
  0x37   :  { %5156 = sst [smem:[#allocation23_spill]] %s4560_s4 }
  0x38   :  { %s4565_s12 = sld [smem:[%s5121_s0 + %s4382_s7]]  }
  0x3e   :  { %5157 = sst [smem:[#allocation24_spill]] %s4565_s12 }
  0x3f   :  { %66 = vsyncpa [#allocation4], 0 }
  0x40   :  { %68 = vsyncpa [#allocation4 + $0x1], 0  ;;  %s4567_s15 = smov 0   ;;  %s4569_s16 = smov 0  }
  0x41   :  { %s4571_s18 = smov 0   ;;  %s4573_s22 = smov 0  }
  0x42   :  { %s4575_s23 = smov 0   ;;  %s4577_s26 = smov 0  }
  0x43   :  { %s4579_s28 = smov 0   ;;  %s4581_s1 = smov 0  }
  0x44 LB: > { %5158 = sst [smem:[#allocation25_spill]] %s4323_s15  ;;  %s3582_s0 = sadd.s32 4294967295, %s4351_s1   ;;  %s4351_s1 = sphi %s4581_s1, %s74_s1   ;;  %s4347_s28 = sphi %s4579_s28, %s5210_s28   ;;  %s4343_s26 = sphi %s4577_s26, %s5209_s26   ;;  %s4339_s23 = sphi %s4575_s23, %s5208_s23   ;;  %s4335_s22 = sphi %s4573_s22, %s5207_s22   ;;  %s4331_s18 = sphi %s4571_s18, %s5206_s18   ;;  %s4327_s16 = sphi %s4569_s16, %s5212_s16   ;;  %s4323_s15 = sphi %s4567_s15, %s5211_s15  }
  0x45   : > { %5159 = sst [smem:[#allocation26_spill]] %s4331_s18  ;;  %s3583_s2 = sadd.s32 4294967294, %s4351_s1  }
  0x46   : > { %5160 = sst [smem:[#allocation27_spill]] %s4339_s23  ;;  %s83_s7 = sadd.s32 1, %s4343_s26 }
  0x47   : > { %5161 = sst [smem:[#allocation28_spill]] %s4343_s26  ;;  %p84_p0 = scmp.ge.s32.totalorder %s83_s7, 2 }
  0x48   : > { %5162 = sst [smem:[#allocation29_spill]] %s4347_s28  ;;  %s86_s10 = sadd.s32 1, %s4347_s28 }
  0x49   : > { %5163 = sst [smem:[#allocation30_spill]] %s4351_s1  ;;  %p798_p1 = scmp.ne.s32.totalorder %s4331_s18, %s4327_s16 }
  0x4a   : > { %p799_p2 = scmp.eq.s32.totalorder %s3582_s0, 3  ;;  %s5214_s7 = smov (%p84_p0, %s83_s7), 0 }
  0x4b   : > { %5164 = sst [smem:[#allocation31_spill]] %s5214_s7  ;;  %s5216_s10 = smov (!%p84_p0, %s86_s10), %s4347_s28 }
  0x4c   : > { %p4616_p3 = por %p799_p2, %p798_p1  ;;  %p804_p4 = scmp.ne.s32.totalorder %s4327_s16, %s4323_s15 }
  0x4d   : > { %p88_p5 = scmp.ge.s32.totalorder %s5216_s10, 2  ;;  %p805_p6 = scmp.eq.s32.totalorder %s3583_s2, 3 }
  0x4e   : > { %s5165_s11 = scalar_select %p4616_p3, 1, 0 }
  0x4f   : > { %p3586_p7 = scmp.ge.s32.totalorder %s4351_s1, 1  ;;  %p962_p8 = scmp.lt.s32.totalorder %s4351_s1, 5 }
  0x50   : > { %5166 = sst [smem:[#allocation32_spill]] %s5165_s11  ;;  %s5218_s10 = smov (%p88_p5, %s5216_s10), 0 }
  0x51   : > { %5167 = sst [smem:[#allocation33_spill]] %s5218_s10  ;;  %p4626_p9 = por %p805_p6, %p804_p4 }
  0x52   : > { %p963_p10 = pnand %p3586_p7, %p962_p8  ;;  %s785_s0 = ssub.s32 %s4347_s28, %s5218_s10 }
  0x53   : > { %s5168_s26 = scalar_select %p4626_p9, 1, 0 }
  0x54   : > { %s788_s7 = sadd.s32 1, %s4331_s18  ;;  %p786_p11 = scmp.eq.s32.totalorder %s785_s0, 0 }
  0x55   : > { %5169 = sst [smem:[#allocation34_spill]] %s5168_s26  ;;  %966 = sbr.rel (%p963_p10) target bundleno = 7808 (0x1e80), region = 140 }
  0x56   : > { %s4634_s12 = scalar_select %p786_p11, %s4331_s18, %s788_s7  }
  0x57   : > { %p1083_p12 = scmp.lt.s32.totalorder (!%p963_p10), %s4339_s23, 1  ;;  %p1088_p13 = scmp.lt.s32.totalorder (!%p963_p10), %s4335_s22, 1 }
  0x58   : > { %5170 = sst [smem:[#allocation35_spill]] %s4634_s12  ;;  %s5172_s6 = sand.u32 (!%p963_p10), 1, %s4327_s16  }
  0x59   : > { %s4678_s13 = scalar_lea.vmem (!%p963_p10), [#allocation3], %s5172_s6  ;;  %p3596_p0 = scmp.ne.s32.totalorder (!%p963_p10), %s4335_s22, 0 }
  0x5a   : > { %v1133_v0 = vlaneseq  ;;  %s1084_s7 = scalar_select %p1083_p12, %s4339_s23, 1  ;;  %v4383_v2 = vmov -1e+30  }
  0x5b   : > { %s4641_s0 = scalar_select %p1088_p13, %s4335_s22, 1 }
  0x5c   : > { %v1134_v1 = vand.u32 127, %v1133_v0  ;;  %s3999_s2 = smul.u32 24, %s1084_s7 }
  0x5d   : > { %s3676_s18 = sshll.u32 %s4641_s0, 4  ;;  %s1101_s15 = scalar_lea.vmem %s4435_s21, %s4641_s0 }
  0x5e   : > { %vm1135_vm0 = vcmp.lt.s32.totalorder %v1134_v1, 17  ;;  %s1087_s12 = scalar_lea.vmem %s4415_s5, %s3999_s2  ;;  %s4652_s26 = scalar_lea.vmem %s4430_s17, %s3676_s18 }
  0x5f   : > { %v4647_v3 = vsel %vm1135_vm0, 0.0, %v4383_v2  ;;  %s4657_s1 = scalar_lea.vmem %s4440_s25, %s3676_s18  ;;  %s1109_s11 = scalar_lea.vmem %s4445_s29, %s4641_s0 }
  0x60   : > { %s1112_s7 = scalar_lea.vmem %s4450_s3, %s4641_s0  ;;  %s1115_s23 = scalar_lea.vmem %s4455_s8, %s4641_s0 }
  0x61   : > { %s4666_s4 = scalar_lea.vmem %s4460_s14, %s3676_s18  ;;  %s1123_s20 = scalar_lea.vmem %s4465_s19, %s4641_s0 }
  0x62   : > { %s3679_s10 = sshll.u32 %s4641_s0, 6  ;;  %s1131_s27 = scalar_lea.vmem %s4475_s30, %s4641_s0 }
  0x63   : > { %s4674_s28 = scalar_lea.vmem %s4470_s24, %s3679_s10  ;;  %1140 = sbr.rel (%p3596_p0) target bundleno = 107 (0x6b), region = 144 }
  0x68   : > { %v1141_v4 = vld [vmem:[%s1087_s12] sm:$0xff]  ;;  %vm1144_vm1 = vcmask 261120   ;;  %v1142_v5 = vld [vmem:[%s1087_s12 + $0x8] sm:$0xff]  ;;  %v1143_v6 = vld [vmem:[%s1087_s12 + $0x10] sm:$0xff] }
  0x69   : > { %1145 = vst.msk [vmem:[#allocation2] sm:$0xff] %vm1144_vm1, %v1141_v4  ;;  %1146 = vst.msk [vmem:[#allocation2 + $0x8] sm:$0xff] %vm1144_vm1, %v1142_v5 }
  0x6a   : > { %1147 = vst.msk [vmem:[#allocation2 + $0x10] sm:$0xff] %vm1144_vm1, %v1143_v6 }
  0x6b PF: > { %vm1153_vm2 = vcmask 261120   ;;  %v4139_v28 = vld [vmem:[%s4652_s26 + $0x8] sm:$0xff]   ;;  %v4140_v29 = vld [vmem:[%s4652_s26] sm:$0xff]   ;;  %s5173_s6 = sld [smem:[#allocation6_spill]]  ;;  %s5174_s12 = scalar_lea.vmem %s4420_s9, %s4641_s0  ;;  %vm1304_vm3 = vcmask 64512   ;;  %vm1365_vm4 = vcmask 195584  }
  0x6c   : > { %3775 = vmatprep.subr.bf16.mxu0 %v4139_v28  ;;  %v3597_v41 = vld [vmem:[%s5174_s12] ss:$0 sm:$0xff]  ;;  %s4384_s26 = smov 96   ;;  %s4386_s10 = smov 120   ;;  %vm1412_vm5 = vcmask 1043456   ;;  %vm2000_vm6 = vcmask 130048  }
  0x6d   : > { %3776 = vmatpush3.bf16.msra.mxu0 %v4139_v28  ;;  %v3599_v55 = vld [vmem:[%s1101_s15] ss:$0 sm:$0xff]  ;;  %s4385_s15 = smov 64   ;;  %s4387_s2 = smov 88  }
  0x6e   : > { %3777 = vmatprep.subr.bf16.mxu0 %v4140_v29  ;;  %s4389_s12 = smov 80   ;;  %p3641_p1 = scmp.ne.s32.totalorder %s4335_s22, 1 }
  0x6f   : > { %s5179_s22 = sld [smem:[#allocation16_spill]] (!%p3641_p1) }
  0x70   : > { %v4681_v7 = vld [vmem:[#allocation2] sm:$0xff]  ;;  %v4685_v9 = vld [vmem:[#allocation2 + $0x8] sm:$0xff] }
  0x71   : > { %v4683_v8 = vld [vmem:[#allocation2 + $0x10] sm:$0xff]  ;;  %v1154_v10 = vsel %vm1153_vm2, %v4681_v7, 0.0  ;;  %v1157_v12 = vsel %vm1153_vm2, %v4685_v9, 0.0  ;;  %3778 = vmatpush3.bf16.msra.mxu0 %v4140_v29  ;;  %s5175_s18 = scalar_lea.vmem %s5173_s6, %s4641_s0  ;;  %s4388_s6 = smov 56  }
  0x72   : > { %v1160_v11 = vsel %vm1153_vm2, %v4683_v8, 0.0  ;;  %1155 = vadd.xlane.f32.xlu0 %v1154_v10  ;;  %v3598_v47 = vld [vmem:[%s5175_s18] ss:$0 sm:$0xff]  ;;  %s4390_s18 = smov 112  }
  0x73   : > { %1161 = vadd.xlane.f32.xlu1 %v1160_v11 }
  0x76   : > { %1158 = vadd.xlane.f32.xlu0 %v1157_v12 }
  0xfb   : > { %v1156_v13 = vpop.xlane.xlu0 %1155 }
  0xfc   : > { %v1162_v14 = vpop.xlane.xlu1 %1161  ;;  %v1164_v15 = vmul.f32 0.03125, %v1156_v13 }
  0xfd   : > { %v1166_v16 = vmul.f32 0.03125, %v1162_v14 }
  0xfe   : > { %v1167_v17 = vsub.f32 %v4681_v7, %v1164_v15 }
  0xff   : > { %v1169_v18 = vsub.f32 %v4683_v8, %v1166_v16  ;;  %v1159_v19 = vpop.xlane.xlu0 %1158 }
 0x100   : > { %v1165_v20 = vmul.f32 0.03125, %v1159_v19  ;;  %v1170_v21 = vmul.f32 %v1167_v17, %v1167_v17 }
 0x101   : > { %v1172_v22 = vmul.f32 %v1169_v18, %v1169_v18 }
 0x102   : > { %v1168_v23 = vsub.f32 %v4685_v9, %v1165_v20  ;;  %v1173_v24 = vsel %vm1153_vm2, %v1170_v21, 0.0 }
 0x103   : > { %1174 = vadd.xlane.f32.xlu1 %v1173_v24  ;;  %v1179_v25 = vsel %vm1153_vm2, %v1172_v22, 0.0 }
 0x104   : > { %v1171_v26 = vmul.f32 %v1168_v23, %v1168_v23 }
 0x106   : > { %v1176_v27 = vsel %vm1153_vm2, %v1171_v26, 0.0 }
 0x107   : > { %1180 = vadd.xlane.f32.xlu1 %v1179_v25  ;;  %1177 = vadd.xlane.f32.xlu0 %v1176_v27 }
 0x18c   : > { %v1175_v30 = vpop.xlane.xlu1 %1174 }
 0x18d   : > { %v1182_v31 = vmul.f32 0.03125, %v1175_v30 }
 0x18f   : > { %v1185_v32 = vadd.f32 1e-05, %v1182_v31 }
 0x190   : > { %v1181_v33 = vpop.xlane.xlu1 %1180  ;;  %v1178_v34 = vpop.xlane.xlu0 %1177 }
 0x191   : > { %4153 = vrsqrt.f32 %v1185_v32  ;;  %v1184_v35 = vmul.f32 0.03125, %v1181_v33  ;;  %v1183_v36 = vmul.f32 0.03125, %v1178_v34 }
 0x193   : > { %v1187_v37 = vadd.f32 1e-05, %v1184_v35  ;;  %v1186_v38 = vadd.f32 1e-05, %v1183_v36 }
 0x195   : > { %4155 = vrsqrt.f32 %v1187_v37 }
 0x196   : > { %4157 = vrsqrt.f32 %v1186_v38 }
 0x19e   : > { %v4154_v39 = vpop.eup %4153 }
 0x19f   : > { %v1191_v40 = vmul.f32 %v4154_v39, %v1167_v17 }
 0x1a1   : > { %v1200_v46 = vmul.f32 %v3597_v41, %v1191_v40 }
 0x1a2   : > { %v4156_v42 = vpop.eup %4155 }
 0x1a3   : > { %v4158_v43 = vpop.eup %4157  ;;  %v1193_v44 = vmul.f32 %v4156_v42, %v1169_v18  ;;  %v1209_v51 = vadd.f32 %v3598_v47, %v1200_v46 }
 0x1a4   : > { %v1192_v45 = vmul.f32 %v4158_v43, %v1168_v23 }
 0x1a5   : > { %v1202_v48 = vmul.f32 %v3597_v41, %v1193_v44 }
 0x1a6   : > { %v1201_v49 = vmul.f32 %v3597_v41, %v1192_v45 }
 0x1a7   : > { %v1211_v50 = vadd.f32 %v3598_v47, %v1202_v48 }
 0x1a8   : > { %v1210_v52 = vadd.f32 %v3598_v47, %v1201_v49 }
 0x1a9   : > { %v1217_v53 = vpack.c.bf16 %v1211_v50, %v1211_v50 }
 0x1aa   : > { %v1216_v54 = vpack.c.bf16 %v1210_v52, %v1209_v51 }
 0x1ac   : > { %3779 = vmatprep.mubr.msk.bf16.mxu0 %vm1153_vm2, %v1216_v54 }
 0x1ad   : > { %3780 = vmatmul.mubr.msk.bf16.vlgmr.msra.gmra.mxu0 %vm1153_vm2, %v1217_v53 }
 0x26d   : > { %v3781_v56 = vpop.f32.mrf.mxu0 }
 0x26e   : > { %v1286_v57 = vadd.f32 %v3781_v56, %v3599_v55 }
 0x26f   : > { %v1277_v58 = vpop.f32.mrf.mxu0 }
 0x270   : > { %v4712_v59 = vpack.c.bf16 %v1286_v57, %v1286_v57  ;;  %v1278_v61 = vadd.f32 %v3599_v55, %v1277_v58  ;;  %v1293_v12 = vmul.f32 0.35355338, %v1286_v57 }
 0x271   : > { %v3782_v60 = vpop.f32.mrf.mxu0 }
 0x272   : > { %1302 = vrot.lane.b32.xlu0 %v4712_v59, %s4384_s26  ;;  %v1291_v0 = vmul.f32 0.35355338, %v1278_v61  ;;  %v4726_v13 = vpack.c.bf16 %v1293_v12, %v1293_v12 }
 0x273   : > { %v1280_v62 = vpop.f32.mrf.mxu0 }
 0x274   : > { %v1281_v63 = vadd.f32 %v3599_v55, %v1280_v62 }
 0x276   : > { %v1292_v1 = vmul.f32 0.35355338, %v1281_v63  ;;  %v4715_v2 = vpack.c.bf16 %v1281_v63, %v1278_v61 }
 0x278   : > { %v4717_v4 = vpack.c.bf16 %v1292_v1, %v1291_v0  ;;  %1300 = vrot.lane.b32.xlu1 %v4715_v2, %s4384_s26  ;;  %s4391_s26 = smov 48  }
 0x27a   : > { %3787 = vmatprep.mubr.msk.bf16.mxu0 %vm1304_vm3, %v4717_v4 }
 0x2e4   : > { %v1303_v5 = vpop.permute.xlu0 %1302 }
 0x2e5   : > { %v1315_v6 = vsel %vm1304_vm3, %v1303_v5, 0  ;;  %3987 = vmatprep.subr.msk.bf16.mxu0 %vm1304_vm3, %v1303_v5 }
 0x2e6   : > { %3784 = vmatpush3.bf16.xpose.msra.mxu0 %v1315_v6 }
 0x2ea   : > { %v1301_v10 = vpop.permute.xlu1 %1300 }
 0x2eb   : > { %3988 = vmatprep.subr.msk.bf16.mxu0 %vm1304_vm3, %v1301_v10  ;;  %v1312_v11 = vsel %vm1304_vm3, %v1301_v10, 0 }
 0x2ee   : > { %3786 = vmatpush3.bf16.xpose.msra.mxu0 %v1312_v11 }
 0x2f5   : > { %3788 = vmatmul.mubr.msk.bf16.vlgmr.msra.gmra.mxu0 %vm1304_vm3, %v4726_v13 }
 0x3b5   : > { %v3789_v14 = vpop.f32.mrf.mxu0 }
 0x3b6   : > { %v1360_v21 = vadd.f32 %v3789_v14, %v4647_v3 }
 0x3b7   : > { %v1351_v15 = vpop.f32.mrf.mxu0 }
 0x3b8   : > { %v1352_v16 = vadd.f32 %v1351_v15, %v4647_v3  ;;  %v1372_v23 = vsel %vm1365_vm4, %v1360_v21, -inf }
 0x3b9   : > { %v3790_v17 = vpop.f32.mrf.mxu0 }
 0x3ba   : > { %v1366_v18 = vsel %vm1365_vm4, %v1352_v16, -inf }
 0x3bb   : > { %v1354_v19 = vpop.f32.mrf.mxu0  ;;  %1367 = vmax.xlane.f32.xlu1 %v1366_v18 }
 0x3bc   : > { %v1355_v20 = vadd.f32 %v1354_v19, %v4647_v3 }
 0x3be   : > { %v1369_v22 = vsel %vm1365_vm4, %v1355_v20, -inf }
 0x3bf   : > { %1370 = vmax.xlane.f32.xlu0 %v1369_v22 }
 0x3c3   : > { %1373 = vmax.xlane.f32.xlu0 %v1372_v23 }
 0x444   : > { %v1368_v24 = vpop.xlane.xlu1 %1367 }
 0x445   : > { %v1375_v27 = vsub.f32 %v1352_v16, %v1368_v24 }
 0x447   : > { %v1378_v31 = vmul.f32 1.442695, %v1375_v27 }
 0x448   : > { %v1371_v25 = vpop.xlane.xlu0 %1370 }
 0x449   : > { %v1376_v26 = vsub.f32 %v1355_v20, %v1371_v25 }
 0x44b   : > { %v1380_v28 = vmul.f32 1.442695, %v1376_v26 }
 0x44c   : > { %v1374_v29 = vpop.xlane.xlu0 %1373 }
 0x44d   : > { %4159 = vpow2.f32 %v1380_v28  ;;  %v1377_v30 = vsub.f32 %v1360_v21, %v1374_v29 }
 0x44f   : > { %v1382_v32 = vmul.f32 1.442695, %v1377_v30 }
 0x451   : > { %4161 = vpow2.f32 %v1382_v32 }
 0x452   : > { %4163 = vpow2.f32 %v1378_v31 }
 0x45a   : > { %v4160_v33 = vpop.eup %4159 }
 0x45b   : > { %v1387_v34 = vsel %vm1365_vm4, %v4160_v33, 0.0 }
 0x45c   : > { %1388 = vadd.xlane.f32.xlu0 %v1387_v34 }
 0x45e   : > { %v4162_v35 = vpop.eup %4161 }
 0x45f   : > { %v1390_v36 = vsel %vm1365_vm4, %v4162_v35, 0.0  ;;  %v4164_v37 = vpop.eup %4163 }
 0x460   : > { %1391 = vadd.xlane.f32.xlu1 %v1390_v36  ;;  %v1384_v38 = vsel %vm1365_vm4, %v4164_v37, 0.0 }
 0x464   : > { %1385 = vadd.xlane.f32.xlu1 %v1384_v38 }
 0x472   : > { %1403 = vrot.lane.b32.xlu0 %v4712_v59, %s4385_s15 }
 0x475   : > { %1401 = vrot.lane.b32.xlu1 %v4715_v2, %s4385_s15  ;;  %s4392_s15 = smov 72  }
 0x476   : > { %1466 = vrot.lane.b32.xlu0 %v4717_v4, %s4386_s10 }
 0x479   : > { %1472 = vrot.lane.b32.xlu1 %v4712_v59, %s4387_s2 }
 0x47d   : > { %1470 = vrot.lane.b32.xlu1 %v4715_v2, %s4387_s2  ;;  %s4394_s2 = smov 40  }
 0x481   : > { %1468 = vrot.lane.b32.xlu1 %v4726_v13, %s4386_s10  ;;  %s4393_s10 = smov 104  }
 0x4e5   : > { %v1389_v39 = vpop.xlane.xlu0 %1388 }
 0x4e9   : > { %v1404_v40 = vpop.permute.xlu0 %1403  ;;  %v1392_v41 = vpop.xlane.xlu1 %1391 }
 0x4ea   : > { %v1414_v42 = vsel %vm1412_vm5, %v1404_v40, 0  ;;  %3989 = vmatprep.subr.msk.bf16.mxu0 %vm1412_vm5, %v1404_v40  ;;  %4165 = vrcp.f32 %v1392_v41 }
 0x4eb   : > { %3792 = vmatpush3.bf16.msra.mxu0 %v1414_v42  ;;  %4167 = vrcp.f32 %v1389_v39 }
 0x4ed   : > { %v1386_v43 = vpop.xlane.xlu1 %1385  ;;  %v1467_v54 = vpop.permute.xlu0 %1466 }
 0x4ee   : > { %4169 = vrcp.f32 %v1386_v43 }
 0x4f1   : > { %v1402_v44 = vpop.permute.xlu1 %1401 }
 0x4f2   : > { %3793 = vmatprep.subr.bf16.mxu0 %v1402_v44 }
 0x4f3   : > { %3794 = vmatpush3.bf16.msra.mxu0 %v1402_v44 }
 0x4f5   : > { %v1473_v45 = vpop.permute.xlu1 %1472 }
 0x4f6   : > { %3990 = vmatprep.subr.msk.bf16.mxu0 %vm1304_vm3, %v1473_v45  ;;  %v1484_v55 = vsel %vm1304_vm3, %v1473_v45, 0 }
 0x4f7   : > { %v4166_v46 = vpop.eup %4165 }
 0x4f8   : > { %v4168_v47 = vpop.eup %4167  ;;  %v1398_v49 = vmul.f32 %v4166_v46, %v4162_v35 }
 0x4f9   : > { %v1397_v51 = vmul.f32 %v4168_v47, %v4160_v33  ;;  %v1471_v56 = vpop.permute.xlu1 %1470 }
 0x4fa   : > { %v1400_v53 = vpack.c.bf16 %v1398_v49, %v1398_v49  ;;  %v1481_v57 = vsel %vm1304_vm3, %v1471_v56, 0 }
 0x4fb   : > { %v4170_v48 = vpop.eup %4169 }
 0x4fc   : > { %v1396_v50 = vmul.f32 %v4170_v48, %v4164_v37 }
 0x4fd   : > { %v1469_v58 = vpop.permute.xlu1 %1468 }
 0x4fe   : > { %v1399_v52 = vpack.c.bf16 %v1397_v51, %v1396_v50 }
 0x500   : > { %3795 = vmatprep.mubr.msk.bf16.mxu0 %vm1365_vm4, %v1399_v52 }
 0x501   : > { %3796 = vmatmul.mubr.msk.bf16.vlgmr.msra.gmra.mxu0 %vm1365_vm4, %v1400_v53 }
 0x502   : > { %3800 = vmatpush3.bf16.xpose.msra.mxu0 %v1484_v55  ;;  %3803 = vmatprep.mubr.msk.bf16.mxu0 %vm1304_vm3, %v1467_v54 }
 0x503   : > { %3991 = vmatprep.subr.msk.bf16.mxu0 %vm1304_vm3, %v1471_v56 }
 0x50a   : > { %3802 = vmatpush3.bf16.xpose.msra.mxu0 %v1481_v57 }
 0x511   : > { %3804 = vmatmul.mubr.msk.bf16.vlgmr.msra.gmra.mxu0 %vm1304_vm3, %v1469_v58 }
 0x5c1   : > { %v4755_v60 = vpop.f32.mrf.mxu0 }
 0x5c3   : > { %v4757_v61 = vpop.f32.mrf.mxu0 }
 0x5c5   : > { %v3798_v62 = vpop.f32.mrf.mxu0 }
 0x5c7   : > { %v4759_v63 = vpop.f32.mrf.mxu0 }
 0x5d1   : > { %v3805_v0 = vpop.f32.mrf.mxu0 }
 0x5d2   : > { %v1529_v10 = vadd.f32 %v3805_v0, %v4647_v3 }
 0x5d3   : > { %v1520_v1 = vpop.f32.mrf.mxu0 }
 0x5d4   : > { %v1521_v5 = vadd.f32 %v1520_v1, %v4647_v3  ;;  %v1540_v16 = vsel %vm1365_vm4, %v1529_v10, -inf }
 0x5d5   : > { %v3806_v6 = vpop.f32.mrf.mxu0 }
 0x5d6   : > { %v1534_v11 = vsel %vm1365_vm4, %v1521_v5, -inf }
 0x5d7   : > { %v1523_v12 = vpop.f32.mrf.mxu0  ;;  %1535 = vmax.xlane.f32.xlu0 %v1534_v11 }
 0x5d8   : > { %v1524_v14 = vadd.f32 %v1523_v12, %v4647_v3 }
 0x5da   : > { %v1537_v15 = vsel %vm1365_vm4, %v1524_v14, -inf }
 0x5db   : > { %1538 = vmax.xlane.f32.xlu1 %v1537_v15  ;;  %1541 = vmax.xlane.f32.xlu0 %v1540_v16 }
 0x660   : > { %v1536_v17 = vpop.xlane.xlu0 %1535 }
 0x661   : > { %v1543_v18 = vsub.f32 %v1521_v5, %v1536_v17 }
 0x663   : > { %v1546_v19 = vmul.f32 1.442695, %v1543_v18 }
 0x664   : > { %v1539_v20 = vpop.xlane.xlu1 %1538  ;;  %v1542_v21 = vpop.xlane.xlu0 %1541 }
 0x665   : > { %4171 = vpow2.f32 %v1546_v19  ;;  %v1544_v22 = vsub.f32 %v1524_v14, %v1539_v20  ;;  %v1545_v23 = vsub.f32 %v1529_v10, %v1542_v21 }
 0x667   : > { %v1548_v24 = vmul.f32 1.442695, %v1544_v22  ;;  %v1550_v25 = vmul.f32 1.442695, %v1545_v23 }
 0x669   : > { %4173 = vpow2.f32 %v1548_v24 }
 0x66a   : > { %4175 = vpow2.f32 %v1550_v25 }
 0x672   : > { %v4172_v26 = vpop.eup %4171 }
 0x673   : > { %v1552_v27 = vsel %vm1365_vm4, %v4172_v26, 0.0 }
 0x674   : > { %1553 = vadd.xlane.f32.xlu0 %v1552_v27 }
 0x676   : > { %v4174_v28 = vpop.eup %4173 }
 0x677   : > { %v4176_v29 = vpop.eup %4175  ;;  %v1555_v30 = vsel %vm1365_vm4, %v4174_v28, 0.0 }
 0x678   : > { %1556 = vadd.xlane.f32.xlu0 %v1555_v30  ;;  %v1558_v31 = vsel %vm1365_vm4, %v4176_v29, 0.0 }
 0x679   : > { %1559 = vadd.xlane.f32.xlu1 %v1558_v31 }
 0x68a   : > { %1569 = vrot.lane.b32.xlu1 %v4715_v2, %s4388_s6 }
 0x68e   : > { %1637 = vrot.lane.b32.xlu1 %v4712_v59, %s4389_s12  ;;  %1571 = vrot.lane.b32.xlu0 %v4712_v59, %s4388_s6  ;;  %s4395_s6 = smov 8  }
 0x692   : > { %1635 = vrot.lane.b32.xlu1 %v4715_v2, %s4389_s12  ;;  %1631 = vrot.lane.b32.xlu0 %v4717_v4, %s4390_s18  ;;  %s4396_s12 = smov 16  }
 0x696   : > { %1633 = vrot.lane.b32.xlu1 %v4726_v13, %s4390_s18  ;;  %s4397_s18 = smov 24  }
 0x6fd   : > { %v1554_v32 = vpop.xlane.xlu0 %1553 }
 0x6fe   : > { %4177 = vrcp.f32 %v1554_v32 }
 0x701   : > { %v1557_v33 = vpop.xlane.xlu0 %1556 }
 0x702   : > { %v1560_v34 = vpop.xlane.xlu1 %1559  ;;  %4179 = vrcp.f32 %v1557_v33 }
 0x703   : > { %4181 = vrcp.f32 %v1560_v34 }
 0x705   : > { %v1572_v35 = vpop.permute.xlu0 %1571 }
 0x706   : > { %v1570_v36 = vpop.permute.xlu1 %1569  ;;  %3992 = vmatprep.subr.msk.bf16.mxu1 %vm1412_vm5, %v1572_v35  ;;  %v1581_v37 = vsel %vm1412_vm5, %v1572_v35, 0 }
 0x707   : > { %3808 = vmatpush3.bf16.msra.mxu1 %v1581_v37 }
 0x708   : > { %3809 = vmatprep.subr.bf16.mxu1 %v1570_v36 }
 0x709   : > { %v1632_v48 = vpop.permute.xlu0 %1631 }
 0x70a   : > { %v1638_v38 = vpop.permute.xlu1 %1637 }
 0x70b   : > { %3810 = vmatpush3.bf16.msra.mxu1 %v1570_v36  ;;  %v4178_v39 = vpop.eup %4177  ;;  %v1649_v47 = vsel %vm1304_vm3, %v1638_v38, 0 }
 0x70c   : > { %3993 = vmatprep.subr.msk.bf16.mxu1 %vm1304_vm3, %v1638_v38  ;;  %v1564_v42 = vmul.f32 %v4178_v39, %v4172_v26 }
 0x70e   : > { %v1636_v49 = vpop.permute.xlu1 %1635 }
 0x70f   : > { %v4180_v40 = vpop.eup %4179  ;;  %v1646_v50 = vsel %vm1304_vm3, %v1636_v49, 0 }
 0x710   : > { %v4182_v41 = vpop.eup %4181  ;;  %v1565_v43 = vmul.f32 %v4180_v40, %v4174_v28 }
 0x711   : > { %v1566_v44 = vmul.f32 %v4182_v41, %v4176_v29 }
 0x712   : > { %v1567_v45 = vpack.c.bf16 %v1565_v43, %v1564_v42  ;;  %v1634_v51 = vpop.permute.xlu1 %1633 }
 0x713   : > { %v1568_v46 = vpack.c.bf16 %v1566_v44, %v1566_v44 }
 0x714   : > { %3811 = vmatprep.mubr.msk.bf16.mxu1 %vm1365_vm4, %v1567_v45 }
 0x715   : > { %3812 = vmatmul.mubr.msk.bf16.vlgmr.msra.gmra.mxu1 %vm1365_vm4, %v1568_v46 }
 0x716   : > { %3816 = vmatpush3.bf16.xpose.msra.mxu1 %v1649_v47  ;;  %3819 = vmatprep.mubr.msk.bf16.mxu1 %vm1304_vm3, %v1632_v48 }
 0x717   : > { %3994 = vmatprep.subr.msk.bf16.mxu1 %vm1304_vm3, %v1636_v49 }
 0x71e   : > { %3818 = vmatpush3.bf16.xpose.msra.mxu1 %v1646_v50 }
 0x725   : > { %3820 = vmatmul.mubr.msk.bf16.vlgmr.msra.gmra.mxu1 %vm1304_vm3, %v1634_v51 }
 0x7d5   : > { %v4786_v52 = vpop.f32.mrf.mxu1 }
 0x7d7   : > { %v4788_v53 = vpop.f32.mrf.mxu1 }
 0x7d9   : > { %v3814_v54 = vpop.f32.mrf.mxu1 }
 0x7db   : > { %v4790_v55 = vpop.f32.mrf.mxu1 }
 0x7dc   : > { %v4124_v56 = vpack.i.bf16 %v4790_v55, %v4788_v53 }
 0x7e5   : > { %v3821_v57 = vpop.f32.mrf.mxu1 }
 0x7e6   : > { %v1694_v1 = vadd.f32 %v3821_v57, %v4647_v3 }
 0x7e7   : > { %v1685_v58 = vpop.f32.mrf.mxu1 }
 0x7e8   : > { %v1686_v62 = vadd.f32 %v1685_v58, %v4647_v3  ;;  %v1705_v12 = vsel %vm1365_vm4, %v1694_v1, -inf }
 0x7e9   : > { %v3822_v0 = vpop.f32.mrf.mxu1 }
 0x7ea   : > { %v1699_v5 = vsel %vm1365_vm4, %v1686_v62, -inf }
 0x7eb   : > { %v1688_v6 = vpop.f32.mrf.mxu1  ;;  %1700 = vmax.xlane.f32.xlu0 %v1699_v5 }
 0x7ec   : > { %v1689_v10 = vadd.f32 %v1688_v6, %v4647_v3 }
 0x7ee   : > { %v1702_v11 = vsel %vm1365_vm4, %v1689_v10, -inf }
 0x7ef   : > { %1703 = vmax.xlane.f32.xlu1 %v1702_v11  ;;  %1706 = vmax.xlane.f32.xlu0 %v1705_v12 }
 0x874   : > { %v1701_v14 = vpop.xlane.xlu0 %1700 }
 0x875   : > { %v1708_v15 = vsub.f32 %v1686_v62, %v1701_v14 }
 0x877   : > { %v1711_v16 = vmul.f32 1.442695, %v1708_v15 }
 0x878   : > { %v1704_v17 = vpop.xlane.xlu1 %1703  ;;  %v1707_v18 = vpop.xlane.xlu0 %1706 }
 0x879   : > { %4183 = vpow2.f32 %v1711_v16  ;;  %v1709_v19 = vsub.f32 %v1689_v10, %v1704_v17  ;;  %v1710_v20 = vsub.f32 %v1694_v1, %v1707_v18 }
 0x87b   : > { %v1713_v21 = vmul.f32 1.442695, %v1709_v19  ;;  %v1715_v22 = vmul.f32 1.442695, %v1710_v20 }
 0x87d   : > { %4185 = vpow2.f32 %v1713_v21 }
 0x87e   : > { %4187 = vpow2.f32 %v1715_v22 }
 0x886   : > { %v4184_v23 = vpop.eup %4183 }
 0x887   : > { %v1717_v24 = vsel %vm1365_vm4, %v4184_v23, 0.0 }
 0x888   : > { %1718 = vadd.xlane.f32.xlu0 %v1717_v24 }
 0x88a   : > { %v4186_v25 = vpop.eup %4185 }
 0x88b   : > { %v4188_v26 = vpop.eup %4187  ;;  %v1720_v27 = vsel %vm1365_vm4, %v4186_v25, 0.0 }
 0x88c   : > { %1721 = vadd.xlane.f32.xlu0 %v1720_v27  ;;  %v1723_v28 = vsel %vm1365_vm4, %v4188_v26, 0.0 }
 0x88d   : > { %1724 = vadd.xlane.f32.xlu1 %v1723_v28 }
 0x89e   : > { %1734 = vrot.lane.b32.xlu1 %v4715_v2, %s4391_s26 }
 0x8a2   : > { %1802 = vrot.lane.b32.xlu1 %v4712_v59, %s4392_s15  ;;  %1736 = vrot.lane.b32.xlu0 %v4712_v59, %s4391_s26  ;;  %s5186_s26 = sld [smem:[#allocation13_spill]] (!%p3641_p1) }
 0x8a6   : > { %1800 = vrot.lane.b32.xlu1 %v4715_v2, %s4392_s15  ;;  %1796 = vrot.lane.b32.xlu0 %v4717_v4, %s4393_s10  ;;  %s5187_s15 = sld [smem:[#allocation10_spill]] (!%p3641_p1) }
 0x8aa   : > { %1798 = vrot.lane.b32.xlu1 %v4726_v13, %s4393_s10  ;;  %s5188_s10 = sld [smem:[#allocation11_spill]] (!%p3641_p1) }
 0x911   : > { %v1719_v29 = vpop.xlane.xlu0 %1718 }
 0x912   : > { %4189 = vrcp.f32 %v1719_v29 }
 0x915   : > { %v1722_v30 = vpop.xlane.xlu0 %1721 }
 0x916   : > { %v1725_v31 = vpop.xlane.xlu1 %1724  ;;  %4191 = vrcp.f32 %v1722_v30 }
 0x917   : > { %4193 = vrcp.f32 %v1725_v31 }
 0x919   : > { %v1737_v32 = vpop.permute.xlu0 %1736 }
 0x91a   : > { %v1735_v33 = vpop.permute.xlu1 %1734  ;;  %v1746_v34 = vsel %vm1412_vm5, %v1737_v32, 0  ;;  %3995 = vmatprep.subr.msk.bf16.mxu0 %vm1412_vm5, %v1737_v32 }
 0x91b   : > { %3824 = vmatpush3.bf16.msra.mxu0 %v1746_v34 }
 0x91c   : > { %3825 = vmatprep.subr.bf16.mxu0 %v1735_v33 }
 0x91d   : > { %v1797_v43 = vpop.permute.xlu0 %1796 }
 0x91e   : > { %v1803_v35 = vpop.permute.xlu1 %1802 }
 0x91f   : > { %3826 = vmatpush3.bf16.msra.mxu0 %v1735_v33  ;;  %v4190_v4 = vpop.eup %4189  ;;  %v1814_v42 = vsel %vm1304_vm3, %v1803_v35, 0 }
 0x920   : > { %3996 = vmatprep.subr.msk.bf16.mxu0 %vm1304_vm3, %v1803_v35  ;;  %v1729_v37 = vmul.f32 %v4190_v4, %v4184_v23  ;;  %v4141_v4 = vld [vmem:[%s4657_s1 + $0x8] sm:$0xff]  }
 0x922   : > { %v1801_v44 = vpop.permute.xlu1 %1800 }
 0x923   : > { %v4192_v13 = vpop.eup %4191  ;;  %v1811_v45 = vsel %vm1304_vm3, %v1801_v44, 0 }
 0x924   : > { %v4194_v36 = vpop.eup %4193  ;;  %v1730_v38 = vmul.f32 %v4192_v13, %v4186_v25  ;;  %v4142_v13 = vld [vmem:[%s4657_s1] sm:$0xff]   ;;  %s5185_s1 = sld [smem:[#allocation12_spill]] (!%p3641_p1) }
 0x925   : > { %v1731_v39 = vmul.f32 %v4194_v36, %v4188_v26 }
 0x926   : > { %v1732_v40 = vpack.c.bf16 %v1730_v38, %v1729_v37  ;;  %v1799_v46 = vpop.permute.xlu1 %1798 }
 0x927   : > { %v1733_v41 = vpack.c.bf16 %v1731_v39, %v1731_v39 }
 0x928   : > { %3827 = vmatprep.mubr.msk.bf16.mxu0 %vm1365_vm4, %v1732_v40 }
 0x929   : > { %3828 = vmatmul.mubr.msk.bf16.vlgmr.msra.gmra.mxu0 %vm1365_vm4, %v1733_v41 }
 0x92a   : > { %3832 = vmatpush3.bf16.xpose.msra.mxu0 %v1814_v42  ;;  %3835 = vmatprep.mubr.msk.bf16.mxu0 %vm1304_vm3, %v1797_v43 }
 0x92b   : > { %3997 = vmatprep.subr.msk.bf16.mxu0 %vm1304_vm3, %v1801_v44 }
 0x932   : > { %3834 = vmatpush3.bf16.xpose.msra.mxu0 %v1811_v45 }
 0x939   : > { %3836 = vmatmul.mubr.msk.bf16.vlgmr.msra.gmra.mxu0 %vm1304_vm3, %v1799_v46 }
 0x9e9   : > { %v3829_v47 = vpop.f32.mrf.mxu0 }
 0x9eb   : > { %v1782_v48 = vpop.f32.mrf.mxu0 }
 0x9ed   : > { %v3830_v49 = vpop.f32.mrf.mxu0 }
 0x9ef   : > { %v1785_v50 = vpop.f32.mrf.mxu0 }
 0x9f0   : > { %v4129_v51 = vpack.i.bf16 %v1785_v50, %v1782_v48 }
 0x9f9   : > { %v3837_v54 = vpop.f32.mrf.mxu0 }
 0x9fa   : > { %v1859_v0 = vadd.f32 %v3837_v54, %v4647_v3 }
 0x9fb   : > { %v1850_v57 = vpop.f32.mrf.mxu0 }
 0x9fc   : > { %v1851_v58 = vadd.f32 %v1850_v57, %v4647_v3  ;;  %v1870_v11 = vsel %vm1365_vm4, %v1859_v0, -inf }
 0x9fd   : > { %v3838_v62 = vpop.f32.mrf.mxu0 }
 0x9fe   : > { %v1864_v1 = vsel %vm1365_vm4, %v1851_v58, -inf }
 0x9ff   : > { %v1853_v5 = vpop.f32.mrf.mxu0  ;;  %1865 = vmax.xlane.f32.xlu0 %v1864_v1 }
 0xa00   : > { %v1854_v6 = vadd.f32 %v1853_v5, %v4647_v3 }
 0xa02   : > { %v1867_v10 = vsel %vm1365_vm4, %v1854_v6, -inf }
 0xa03   : > { %1868 = vmax.xlane.f32.xlu1 %v1867_v10  ;;  %1871 = vmax.xlane.f32.xlu0 %v1870_v11 }
 0xa88   : > { %v1866_v12 = vpop.xlane.xlu0 %1865 }
 0xa89   : > { %v1873_v14 = vsub.f32 %v1851_v58, %v1866_v12 }
 0xa8b   : > { %v1876_v15 = vmul.f32 1.442695, %v1873_v14 }
 0xa8c   : > { %v1869_v16 = vpop.xlane.xlu1 %1868  ;;  %v1872_v17 = vpop.xlane.xlu0 %1871 }
 0xa8d   : > { %4195 = vpow2.f32 %v1876_v15  ;;  %v1874_v18 = vsub.f32 %v1854_v6, %v1869_v16  ;;  %v1875_v19 = vsub.f32 %v1859_v0, %v1872_v17  ;;  %v3624_v16 = vld [vmem:[%s1109_s11] ss:$0 sm:$0xff]  ;;  %s5180_s11 = smov (!%p3641_p1), %s5179_s22 }
 0xa8f   : > { %v1878_v20 = vmul.f32 1.442695, %v1874_v18  ;;  %v1880_v21 = vmul.f32 1.442695, %v1875_v19 }
 0xa91   : > { %4197 = vpow2.f32 %v1878_v20 }
 0xa92   : > { %4199 = vpow2.f32 %v1880_v21 }
 0xa9a   : > { %v4196_v22 = vpop.eup %4195 }
 0xa9b   : > { %v1882_v23 = vsel %vm1365_vm4, %v4196_v22, 0.0 }
 0xa9c   : > { %1883 = vadd.xlane.f32.xlu0 %v1882_v23 }
 0xa9e   : > { %v4198_v24 = vpop.eup %4197 }
 0xa9f   : > { %v4200_v25 = vpop.eup %4199  ;;  %v1885_v26 = vsel %vm1365_vm4, %v4198_v24, 0.0 }
 0xaa0   : > { %1886 = vadd.xlane.f32.xlu0 %v1885_v26  ;;  %v1888_v27 = vsel %vm1365_vm4, %v4200_v25, 0.0 }
 0xaa1   : > { %1889 = vadd.xlane.f32.xlu1 %v1888_v27 }
 0xab2   : > { %1899 = vrot.lane.b32.xlu1 %v4715_v2, %s4394_s2 }
 0xab6   : > { %4125 = vrot.lane.b32.xlu1 %v4124_v56, %s4395_s6  ;;  %1901 = vrot.lane.b32.xlu0 %v4712_v59, %s4394_s2  ;;  %s5189_s2 = sld [smem:[#allocation17_spill]] (!%p3641_p1) }
 0xaba   : > { %1968 = vrot.lane.b32.xlu1 %v4786_v52, %s4395_s6  ;;  %4130 = vrot.lane.b32.xlu0 %v4129_v51, %s4396_s12  ;;  %s5190_s6 = sld [smem:[#allocation15_spill]] (!%p3641_p1) }
 0xabe   : > { %1980 = vrot.lane.b32.xlu1 %v3829_v47, %s4396_s12  ;;  %s5191_s12 = sld [smem:[#allocation19_spill]] (!%p3641_p1) }
 0xb25   : > { %v1884_v28 = vpop.xlane.xlu0 %1883 }
 0xb26   : > { %4201 = vrcp.f32 %v1884_v28 }
 0xb29   : > { %v1887_v29 = vpop.xlane.xlu0 %1886 }
 0xb2a   : > { %v1890_v30 = vpop.xlane.xlu1 %1889  ;;  %4203 = vrcp.f32 %v1887_v29 }
 0xb2b   : > { %4205 = vrcp.f32 %v1890_v30 }
 0xb2d   : > { %v1902_v31 = vpop.permute.xlu0 %1901 }
 0xb2e   : > { %v1911_v2 = vsel %vm1412_vm5, %v1902_v31, 0  ;;  %3998 = vmatprep.subr.msk.bf16.mxu1 %vm1412_vm5, %v1902_v31  ;;  %v1900_v53 = vpop.permute.xlu1 %1899 }
 0xb2f   : > { %3840 = vmatpush3.bf16.msra.mxu1 %v1911_v2 }
 0xb30   : > { %3841 = vmatprep.subr.bf16.mxu1 %v1900_v53 }
 0xb31   : > { %v4131_v45 = vpop.permute.xlu0 %4130 }
 0xb32   : > { %v4126_v41 = vpop.permute.xlu1 %4125  ;;  %v4133_v47 = vunpack.i.h.bf16 %v4131_v45  ;;  %v4132_v48 = vunpack.i.l.bf16 %v4131_v45 }
 0xb33   : > { %3842 = vmatpush3.bf16.msra.mxu1 %v1900_v53  ;;  %v4202_v59 = vpop.eup %4201  ;;  %v4128_v43 = vunpack.i.h.bf16 %v4126_v41  ;;  %v4127_v44 = vunpack.i.l.bf16 %v4126_v41 }
 0xb34   : > { %v1894_v56 = vmul.f32 %v4202_v59, %v4196_v22  ;;  %3847 = vmatprep.subr.bf16.mxu1 %v4141_v4 }
 0xb35   : > { %v1998_v49 = vsel %vm1304_vm3, %v4759_v63, %v4128_v43  ;;  %v1997_v50 = vsel %vm1304_vm3, %v4757_v61, %v4127_v44  ;;  %v3625_v43 = vld [vmem:[%s1112_s7] ss:$0 sm:$0xff] }
 0xb36   : > { %v1969_v42 = vpop.permute.xlu1 %1968  ;;  %v2001_v1 = vsel %vm2000_vm6, %v1997_v50, %v4132_v48  ;;  %v2002_v5 = vsel %vm2000_vm6, %v1998_v49, %v4133_v47  ;;  %v3626_v49 = vld [vmem:[%s1115_s23] ss:$0 sm:$0xff]  ;;  %s5181_s23 = sld [smem:[#allocation14_spill]] (!%p3641_p1) }
 0xb37   : > { %v4204_v52 = vpop.eup %4203  ;;  %v1999_v54 = vsel %vm1304_vm3, %v4755_v60, %v1969_v42 }
 0xb38   : > { %v4206_v55 = vpop.eup %4205  ;;  %v1895_v32 = vmul.f32 %v4204_v52, %v4198_v24 }
 0xb39   : > { %v1896_v33 = vmul.f32 %v4206_v55, %v4200_v25 }
 0xb3a   : > { %v1897_v34 = vpack.c.bf16 %v1895_v32, %v1894_v56  ;;  %v1981_v46 = vpop.permute.xlu1 %1980  ;;  %v4143_v32 = vld [vmem:[%s4666_s4 + $0x8] sm:$0xff]  }
 0xb3b   : > { %v1898_v35 = vpack.c.bf16 %v1896_v33, %v1896_v33  ;;  %v2003_v58 = vsel %vm2000_vm6, %v1999_v54, %v1981_v46  ;;  %v4144_v33 = vld [vmem:[%s4666_s4] sm:$0xff]   ;;  %3855 = vmatprep.subr.bf16.mxu0 %v4143_v32  ;;  %s5178_s4 = sld [smem:[#allocation9_spill]] (!%p3641_p1) }
 0xb3c   : > { %3843 = vmatprep.mubr.msk.bf16.mxu1 %vm1365_vm4, %v1897_v34  ;;  %3856 = vmatpush3.bf16.msra.mxu0 %v4143_v32  ;;  %s5182_s0 = smov (!%p3641_p1), %s5181_s23 }
 0xb3d   : > { %3844 = vmatmul.mubr.msk.bf16.vlgmr.msra.gmra.mxu1 %vm1365_vm4, %v1898_v35  ;;  %3857 = vmatprep.subr.bf16.mxu0 %v4144_v33 }
 0xb3e   : > { %3848 = vmatpush3.bf16.msra.mxu1 %v4141_v4 }
 0xb3f   : > { %3849 = vmatprep.subr.bf16.mxu1 %v4142_v13 }
 0xb40   : > { %3858 = vmatpush3.bf16.msra.mxu0 %v4144_v33 }
 0xb42   : > { %3850 = vmatpush3.bf16.msra.mxu1 %v4142_v13 }
 0xbfd   : > { %v3845_v36 = vpop.f32.mrf.mxu1 }
 0xbfe   : > { %1992 = vrot.lane.b32.xlu1 %v3845_v36, %s4397_s18 }
 0xbff   : > { %v1947_v37 = vpop.f32.mrf.mxu1 }
 0xc01   : > { %v3846_v38 = vpop.f32.mrf.mxu1 }
 0xc03   : > { %v1950_v39 = vpop.f32.mrf.mxu1 }
 0xc04   : > { %v4134_v40 = vpack.i.bf16 %v1950_v39, %v1947_v37 }
 0xc06   : > { %4135 = vrot.lane.b32.xlu0 %v4134_v40, %s4397_s18  ;;  %s4400_s18 = smov (!%p3641_p1), 120  }
 0xc70   : > { %v1993_v51 = vpop.permute.xlu1 %1992 }
 0xc71   : > { %v2006_v63 = vsel %vm1365_vm4, %v2003_v58, %v1993_v51 }
 0xc72   : > { %v2012_v11 = vpack.c.bf16 %v2006_v63, %v2006_v63  ;;  %v4147_v63 = vld [vmem:[%s4674_s28 + $0x28] sm:$0xff]  }
 0xc78   : > { %v4136_v57 = vpop.permute.xlu0 %4135 }
 0xc79   : > { %v4138_v62 = vunpack.i.h.bf16 %v4136_v57  ;;  %v4137_v0 = vunpack.i.l.bf16 %v4136_v57 }
 0xc7b   : > { %v2004_v61 = vsel %vm1365_vm4, %v2001_v1, %v4137_v0  ;;  %v2005_v6 = vsel %vm1365_vm4, %v2002_v5, %v4138_v62  ;;  %v4145_v1 = vld [vmem:[%s4674_s28 + $0x38] sm:$0xff]   ;;  %v4146_v5 = vld [vmem:[%s4674_s28 + $0x30] sm:$0xff]  }
 0xc7c   : > { %v2011_v10 = vpack.c.bf16 %v2005_v6, %v2004_v61  ;;  %3863 = vmatprep.subr.bf16.mxu1 %v4145_v1  ;;  %v4148_v61 = vld [vmem:[%s4674_s28 + $0x20] sm:$0xff]   ;;  %v4149_v6 = vld [vmem:[%s4674_s28 + $0x18] sm:$0xff]  }
 0xc7e   : > { %3851 = vmatprep.mubr.msk.bf16.mxu1 %vm1153_vm2, %v2011_v10  ;;  %v4150_v10 = vld [vmem:[%s4674_s28 + $0x10] sm:$0xff]  }
 0xc7f   : > { %3852 = vmatmul.mubr.msk.bf16.vlgmr.msra.gmra.mxu1 %vm1153_vm2, %v2012_v11  ;;  %v4151_v11 = vld [vmem:[%s4674_s28 + $0x8] sm:$0xff]  }
 0xc80   : > { %3864 = vmatpush3.bf16.msra.mxu1 %v4145_v1 }
 0xc81   : > { %3865 = vmatprep.subr.bf16.mxu1 %v4146_v5 }
 0xc84   : > { %3866 = vmatpush3.bf16.msra.mxu1 %v4146_v5 }
 0xc85   : > { %3867 = vmatprep.subr.bf16.mxu1 %v4147_v63 }
 0xc88   : > { %3868 = vmatpush3.bf16.msra.mxu1 %v4147_v63 }
 0xc89   : > { %3869 = vmatprep.subr.bf16.mxu1 %v4148_v61 }
 0xc8c   : > { %3870 = vmatpush3.bf16.msra.mxu1 %v4148_v61 }
 0xc8d   : > { %3871 = vmatprep.subr.bf16.mxu1 %v4149_v6 }
 0xc90   : > { %3872 = vmatpush3.bf16.msra.mxu1 %v4149_v6 }
 0xc91   : > { %3873 = vmatprep.subr.bf16.mxu1 %v4150_v10 }
 0xc94   : > { %3874 = vmatpush3.bf16.msra.mxu1 %v4150_v10 }
 0xc95   : > { %3875 = vmatprep.subr.bf16.mxu1 %v4151_v11 }
 0xc98   : > { %3876 = vmatpush3.bf16.msra.mxu1 %v4151_v11 }
 0xd3f   : > { %v3853_v60 = vpop.f32.mrf.mxu1 }
 0xd40   : > { %v2081_v14 = vadd.f32 %v3853_v60, %v4683_v8  ;;  %v4152_v60 = vld [vmem:[%s4674_s28] sm:$0xff]   ;;  %s5183_s28 = sld [smem:[#allocation18_spill]] (!%p3641_p1) }
 0xd41   : > { %v2065_v12 = vpop.f32.mrf.mxu1  ;;  %3877 = vmatprep.subr.bf16.mxu1 %v4152_v60 }
 0xd42   : > { %v2079_v15 = vadd.f32 %v2065_v12, %v4681_v7  ;;  %v4861_v20 = vadd.f32 %v3624_v16, %v2081_v14  ;;  %3878 = vmatpush3.bf16.msra.mxu1 %v4152_v60  ;;  %v3627_v12 = vld [vmem:[%s1123_s20] ss:$0 sm:$0xff]  ;;  %s5176_s20 = sld [smem:[#allocation7_spill]] (!%p3641_p1) }
 0xd43   : > { %v3854_v17 = vpop.f32.mrf.mxu1 }
 0xd44   : > { %v4859_v18 = vadd.f32 %v3624_v16, %v2079_v15  ;;  %v2100_v8 = vsel %vm1153_vm2, %v4861_v20, 0.0 }
 0xd45   : > { %v2068_v19 = vpop.f32.mrf.mxu1 }
 0xd46   : > { %v2080_v21 = vadd.f32 %v2068_v19, %v4685_v9  ;;  %v2094_v22 = vsel %vm1153_vm2, %v4859_v18, 0.0  ;;  %s5184_s7 = smov (!%p3641_p1), %s5183_s28 }
 0xd47   : > { %2095 = vadd.xlane.f32.xlu0 %v2094_v22 }
 0xd48   : > { %v4866_v23 = vadd.f32 %v3624_v16, %v2080_v21 }
 0xd4a   : > { %v2097_v7 = vsel %vm1153_vm2, %v4866_v23, 0.0 }
 0xd4b   : > { %2101 = vadd.xlane.f32.xlu0 %v2100_v8  ;;  %2098 = vadd.xlane.f32.xlu1 %v2097_v7 }
 0xdd0   : > { %v2096_v24 = vpop.xlane.xlu0 %2095 }
 0xdd1   : > { %v2103_v25 = vmul.f32 0.03125, %v2096_v24 }
 0xdd3   : > { %v2106_v26 = vsub.f32 %v4859_v18, %v2103_v25 }
 0xdd4   : > { %v2102_v9 = vpop.xlane.xlu0 %2101  ;;  %v2099_v27 = vpop.xlane.xlu1 %2098 }
 0xdd5   : > { %v2105_v28 = vmul.f32 0.03125, %v2102_v9  ;;  %v2104_v29 = vmul.f32 0.03125, %v2099_v27  ;;  %v2109_v30 = vmul.f32 %v2106_v26, %v2106_v26 }
 0xdd7   : > { %v2108_v31 = vsub.f32 %v4861_v20, %v2105_v28  ;;  %v2107_v2 = vsub.f32 %v4866_v23, %v2104_v29  ;;  %v2112_v53 = vsel %vm1153_vm2, %v2109_v30, 0.0 }
 0xdd8   : > { %2113 = vadd.xlane.f32.xlu0 %v2112_v53 }
 0xdd9   : > { %v2111_v59 = vmul.f32 %v2108_v31, %v2108_v31  ;;  %v2110_v52 = vmul.f32 %v2107_v2, %v2107_v2 }
 0xddb   : > { %v2118_v55 = vsel %vm1153_vm2, %v2111_v59, 0.0  ;;  %v2115_v56 = vsel %vm1153_vm2, %v2110_v52, 0.0 }
 0xddc   : > { %2119 = vadd.xlane.f32.xlu1 %v2118_v55  ;;  %2116 = vadd.xlane.f32.xlu0 %v2115_v56 }
 0xe61   : > { %v2114_v34 = vpop.xlane.xlu0 %2113 }
 0xe62   : > { %v2121_v35 = vmul.f32 0.03125, %v2114_v34 }
 0xe64   : > { %v2124_v4 = vadd.f32 1e-05, %v2121_v35 }
 0xe65   : > { %v2117_v13 = vpop.xlane.xlu0 %2116  ;;  %v2120_v36 = vpop.xlane.xlu1 %2119 }
 0xe66   : > { %4207 = vrsqrt.f32 %v2124_v4  ;;  %v2122_v37 = vmul.f32 0.03125, %v2117_v13  ;;  %v2123_v38 = vmul.f32 0.03125, %v2120_v36 }
 0xe68   : > { %v2125_v39 = vadd.f32 1e-05, %v2122_v37  ;;  %v2126_v40 = vadd.f32 1e-05, %v2123_v38 }
 0xe6a   : > { %4209 = vrsqrt.f32 %v2125_v39 }
 0xe6b   : > { %4211 = vrsqrt.f32 %v2126_v40 }
 0xe73   : > { %v4208_v41 = vpop.eup %4207 }
 0xe74   : > { %v2130_v42 = vmul.f32 %v4208_v41, %v2106_v26 }
 0xe76   : > { %v2139_v47 = vmul.f32 %v3625_v43, %v2130_v42 }
 0xe77   : > { %v4210_v44 = vpop.eup %4209 }
 0xe78   : > { %v4212_v45 = vpop.eup %4211  ;;  %v2131_v46 = vmul.f32 %v4210_v44, %v2107_v2  ;;  %v2148_v54 = vadd.f32 %v3626_v49, %v2139_v47 }
 0xe79   : > { %v2132_v48 = vmul.f32 %v4212_v45, %v2108_v31 }
 0xe7a   : > { %v2140_v50 = vmul.f32 %v3625_v43, %v2131_v46 }
 0xe7b   : > { %v2141_v51 = vmul.f32 %v3625_v43, %v2132_v48  ;;  %v3640_v43 = vld [vmem:[%s1131_s27] ss:$0 sm:$0xff]  ;;  %s5177_s27 = sld [smem:[#allocation8_spill]] (!%p3641_p1) }
 0xe7c   : > { %v2149_v57 = vadd.f32 %v3626_v49, %v2140_v50 }
 0xe7d   : > { %v2150_v58 = vadd.f32 %v3626_v49, %v2141_v51 }
 0xe7e   : > { %v2155_v62 = vpack.c.bf16 %v2149_v57, %v2148_v54 }
 0xe7f   : > { %v2156_v0 = vpack.c.bf16 %v2150_v58, %v2150_v58 }
 0xe80   : > { %3859 = vmatprep.mubr.msk.bf16.mxu0 %vm1153_vm2, %v2155_v62 }
 0xe81   : > { %3860 = vmatmul.mubr.msk.bf16.vlgmr.msra.gmra.mxu0 %vm1153_vm2, %v2156_v0 }
 0xf41   : > { %v3861_v14 = vpop.f32.mrf.mxu0 }
 0xf42   : > { %v2225_v15 = vadd.f32 %v3861_v14, %v3627_v12 }
 0xf43   : > { %v2216_v16 = vpop.f32.mrf.mxu0 }
 0xf44   : > { %v2232_v17 = vmul.f32 %v2225_v15, %v2225_v15  ;;  %v2217_v19 = vadd.f32 %v3627_v12, %v2216_v16 }
 0xf45   : > { %v3862_v21 = vpop.f32.mrf.mxu0 }
 0xf46   : > { %v2235_v22 = vmul.f32 %v2232_v17, %v2225_v15  ;;  %v2230_v8 = vmul.f32 %v2217_v19, %v2217_v19 }
 0xf47   : > { %v2219_v7 = vpop.f32.mrf.mxu0 }
 0xf48   : > { %v2238_v24 = vmul.f32 0.044715, %v2235_v22  ;;  %v2233_v25 = vmul.f32 %v2230_v8, %v2217_v19  ;;  %v2220_v26 = vadd.f32 %v3627_v12, %v2219_v7 }
 0xf4a   : > { %v2241_v9 = vadd.f32 %v2238_v24, %v2225_v15  ;;  %v2236_v27 = vmul.f32 0.044715, %v2233_v25  ;;  %v2231_v28 = vmul.f32 %v2220_v26, %v2220_v26 }
 0xf4c   : > { %v2244_v29 = vmul.f32 0.7978846, %v2241_v9  ;;  %v2239_v30 = vadd.f32 %v2236_v27, %v2217_v19  ;;  %v2234_v31 = vmul.f32 %v2231_v28, %v2220_v26 }
 0xf4e   : > { %4213 = vtanh.f32 %v2244_v29  ;;  %v2242_v2 = vmul.f32 0.7978846, %v2239_v30  ;;  %v2237_v53 = vmul.f32 0.044715, %v2234_v31 }
 0xf50   : > { %4215 = vtanh.f32 %v2242_v2  ;;  %v2240_v59 = vadd.f32 %v2237_v53, %v2220_v26 }
 0xf52   : > { %v2243_v52 = vmul.f32 0.7978846, %v2240_v59 }
 0xf54   : > { %4217 = vtanh.f32 %v2243_v52 }
 0xf5b   : > { %v4214_v55 = vpop.eup %4213 }
 0xf5c   : > { %v2250_v32 = vadd.f32 1.0, %v4214_v55 }
 0xf5d   : > { %v4216_v56 = vpop.eup %4215 }
 0xf5e   : > { %v2248_v33 = vadd.f32 1.0, %v4216_v56  ;;  %v2253_v35 = vmul.f32 0.5, %v2250_v32 }
 0xf60   : > { %v2251_v13 = vmul.f32 0.5, %v2248_v33  ;;  %v2256_v37 = vmul.f32 %v2253_v35, %v2225_v15 }
 0xf61   : > { %v4218_v34 = vpop.eup %4217 }
 0xf62   : > { %v2249_v4 = vadd.f32 1.0, %v4218_v34  ;;  %v2254_v38 = vmul.f32 %v2251_v13, %v2217_v19  ;;  %v2274_v41 = vpack.c.bf16 %v2256_v37, %v2256_v37 }
 0xf64   : > { %v2252_v36 = vmul.f32 0.5, %v2249_v4 }
 0xf66   : > { %v2255_v39 = vmul.f32 %v2252_v36, %v2220_v26 }
 0xf68   : > { %v2273_v40 = vpack.c.bf16 %v2255_v39, %v2254_v38 }
 0xf6a   : > { %3879 = vmatprep.mubr.bf16.mxu1 %v2273_v40 }
 0xf6b   : > { %3880 = vmatmul.mubr.bf16.vlgmr.msra.gmra.mxu1 %v2274_v41 }
0x102b   : > { %v3881_v42 = vpop.f32.mrf.mxu1 }
0x102c   : > { %v2373_v44 = vadd.f32 %v3881_v42, %v4861_v20 }
0x102d   : > { %v2357_v45 = vpop.f32.mrf.mxu1 }
0x102e   : > { %v2383_v46 = vadd.f32 %v3640_v43, %v2373_v44  ;;  %v2371_v47 = vadd.f32 %v2357_v45, %v4859_v18 }
0x102f   : > { %v3882_v48 = vpop.f32.mrf.mxu1 }
0x1030   : > { %2386 = vst.msk [vmem:[#allocation2 + $0x10] sm:$0xff] %vm1153_vm2, %v2383_v46  ;;  %v2381_v49 = vadd.f32 %v3640_v43, %v2371_v47 }
0x1031   : > { %v2360_v50 = vpop.f32.mrf.mxu1 }
0x1032   : > { %2384 = vst.msk [vmem:[#allocation2] sm:$0xff] %vm1153_vm2, %v2381_v49  ;;  %v2372_v51 = vadd.f32 %v2360_v50, %v4866_v23  ;;  %2390 = sbr.rel (%p3641_p1) target bundleno = 7782 (0x1e66), region = 148 }
0x1034   : > { %v2382_v54 = vadd.f32 %v3640_v43, %v2372_v51 }
0x1036   : > { %2385 = vst.msk [vmem:[#allocation2 + $0x8] sm:$0xff] %vm1153_vm2, %v2382_v54 }
0x1037   : > { %v2393_v57 = vld [vmem:[#allocation2 + $0x10] sm:$0xff]  ;;  %v3642_v29 = vld [vmem:[%s5176_s20] ss:$0 sm:$0xff]  ;;  %vm2515_vm7 = vcmask 253952   ;;  %vm4399_vm8 = vmmov 0   ;;  %vm2795_vm9 = vcmask 188416  }
0x1038   : > { %v2402_v62 = vsel %vm1153_vm2, %v2393_v57, 0.0  ;;  %v3643_v31 = vld [vmem:[%s5177_s27] ss:$0 sm:$0xff]  ;;  %s4401_s20 = smov 112   ;;  %s4402_s27 = smov 104  }
0x1039   : > { %v2391_v20 = vld [vmem:[#allocation2] sm:$0xff]  ;;  %2403 = vadd.xlane.f32.xlu1 %v2402_v62 }
0x103a   : > { %v2396_v18 = vsel %vm1153_vm2, %v2391_v20, 0.0  ;;  %v2512_v36 = vld [vmem:[%s5178_s4] sm:$0x1]  ;;  %s4403_s4 = smov 8  }
0x103b   : > { %2397 = vadd.xlane.f32.xlu0 %v2396_v18  ;;  %v2516_v38 = vsel %vm2515_vm7, %v2512_v36, 0.0 }
0x103d   : > { %v2392_v58 = vld [vmem:[#allocation2 + $0x8] sm:$0xff] }
0x103e   : > { %v2399_v0 = vsel %vm1153_vm2, %v2392_v58, 0.0 }
0x103f   : > { %2400 = vadd.xlane.f32.xlu0 %v2399_v0 }
0x10c2   : > { %v2404_v23 = vpop.xlane.xlu1 %2403 }
0x10c3   : > { %v2407_v63 = vmul.f32 0.03125, %v2404_v23  ;;  %v4220_v23 = vld [vmem:[%s5181_s23 + $0x8] sm:$0xff]   ;;  %s5192_s23 = sld [smem:[#allocation20_spill]] }
0x10c4   : > { %v2398_v1 = vpop.xlane.xlu0 %2397 }
0x10c5   : > { %v2405_v5 = vmul.f32 0.03125, %v2398_v1  ;;  %v2410_v6 = vsub.f32 %v2393_v57, %v2407_v63  ;;  %v4219_v1 = vld [vmem:[%s5179_s22 + $0x8] sm:$0xff]   ;;  %v4398_v63 = vmov 0.0   ;;  %s4404_s22 = smov 16  }
0x10c6   : > { %3883 = vmatprep.subr.bf16.mxu0 %v4398_v63  ;;  %3891 = vmatprep.subr.bf16.mxu1 %v4219_v1 }
0x10c7   : > { %v2408_v61 = vsub.f32 %v2391_v20, %v2405_v5  ;;  %v2413_v12 = vmul.f32 %v2410_v6, %v2410_v6  ;;  %v4221_v5 = vld [vmem:[%s5180_s11] sm:$0xff]   ;;  %3884 = vmatpush3.bf16.msra.mxu0 %v4220_v23  ;;  %3892 = vmatpush3.bf16.msra.mxu1 %v4219_v1 }
0x10c8   : > { %v2401_v10 = vpop.xlane.xlu0 %2400  ;;  %3885 = vmatprep.subr.bf16.mxu0 %v4398_v63  ;;  %3893 = vmatprep.subr.bf16.mxu1 %v4221_v5 }
0x10c9   : > { %v2406_v11 = vmul.f32 0.03125, %v2401_v10  ;;  %v2411_v60 = vmul.f32 %v2408_v61, %v2408_v61  ;;  %v2420_v16 = vsel %vm1153_vm2, %v2413_v12, 0.0  ;;  %3887 = vmatprep.mubr.msk.bf16.mxu0 %vm4399_vm8, %v4398_v63 }
0x10cb   : > { %v2409_v14 = vsub.f32 %v2392_v58, %v2406_v11  ;;  %v2414_v15 = vsel %vm1153_vm2, %v2411_v60, 0.0  ;;  %3894 = vmatpush3.bf16.msra.mxu1 %v4221_v5 }
0x10cc   : > { %2415 = vadd.xlane.f32.xlu1 %v2414_v15  ;;  %3907 = vmatprep.subr.bf16.mxu1 %v4398_v63 }
0x10cd   : > { %v2412_v17 = vmul.f32 %v2409_v14, %v2409_v14 }
0x10cf   : > { %v2417_v19 = vsel %vm1153_vm2, %v2412_v17, 0.0 }
0x10d0   : > { %2421 = vadd.xlane.f32.xlu1 %v2420_v16  ;;  %2418 = vadd.xlane.f32.xlu0 %v2417_v19 }
0x1155   : > { %v2416_v21 = vpop.xlane.xlu1 %2415 }
0x1156   : > { %v2423_v22 = vmul.f32 0.03125, %v2416_v21 }
0x1158   : > { %v2426_v8 = vadd.f32 1e-05, %v2423_v22 }
0x1159   : > { %v2422_v7 = vpop.xlane.xlu1 %2421  ;;  %v2419_v24 = vpop.xlane.xlu0 %2418 }
0x115a   : > { %4229 = vrsqrt.f32 %v2426_v8  ;;  %v2425_v25 = vmul.f32 0.03125, %v2422_v7  ;;  %v2424_v26 = vmul.f32 0.03125, %v2419_v24 }
0x115c   : > { %v2428_v9 = vadd.f32 1e-05, %v2425_v25  ;;  %v2427_v27 = vadd.f32 1e-05, %v2424_v26  ;;  %v3644_v25 = vld [vmem:[%s5185_s1] ss:$0 sm:$0xff] }
0x115d   : > { %s5196_s1 = sld [smem:[#allocation21_spill]] }
0x115e   : > { %4231 = vrsqrt.f32 %v2428_v9 }
0x115f   : > { %4233 = vrsqrt.f32 %v2427_v27 }
0x1167   : > { %v4230_v28 = vpop.eup %4229 }
0x1168   : > { %v2432_v30 = vmul.f32 %v4230_v28, %v2408_v61  ;;  %v4222_v61 = vld [vmem:[%s5182_s0] sm:$0xff]  }
0x1169   : > { %3886 = vmatpush3.bf16.msra.mxu0 %v4222_v61 }
0x116a   : > { %v2441_v2 = vmul.f32 %v3642_v29, %v2432_v30  ;;  %v3645_v30 = vld [vmem:[%s5186_s26] ss:$0 sm:$0xff]  ;;  %s4405_s26 = smov 24  }
0x116b   : > { %v4232_v53 = vpop.eup %4231 }
0x116c   : > { %v4234_v59 = vpop.eup %4233  ;;  %v2450_v52 = vadd.f32 %v3643_v31, %v2441_v2  ;;  %v2434_v55 = vmul.f32 %v4232_v53, %v2410_v6  ;;  %v4223_v6 = vld [vmem:[%s5183_s28 + $0x8] sm:$0xff]   ;;  %s5194_s28 = sld [smem:[#allocation22_spill]] }
0x116d   : > { %v2433_v56 = vmul.f32 %v4234_v59, %v2409_v14  ;;  %3899 = vmatprep.subr.bf16.mxu0 %v4223_v6 }
0x116e   : > { %v2455_v32 = vsel %vm1153_vm2, %v2450_v52, 0.0  ;;  %v2443_v33 = vmul.f32 %v3642_v29, %v2434_v55 }
0x116f   : > { %2456 = vadd.xlane.f32.xlu0 %v2455_v32  ;;  %v2442_v34 = vmul.f32 %v3642_v29, %v2433_v56 }
0x1170   : > { %v2452_v35 = vadd.f32 %v3643_v31, %v2443_v33 }
0x1171   : > { %v2451_v4 = vadd.f32 %v3643_v31, %v2442_v34  ;;  %v2514_v34 = vld [vmem:[%s5188_s10] sm:$0x1]  ;;  %s5193_s10 = smov %s5192_s23 }
0x1172   : > { %v2461_v13 = vsel %vm1153_vm2, %v2452_v35, 0.0 }
0x1173   : > { %2462 = vadd.xlane.f32.xlu0 %v2461_v13  ;;  %v2458_v37 = vsel %vm1153_vm2, %v2451_v4, 0.0 }
0x1174   : > { %2459 = vadd.xlane.f32.xlu1 %v2458_v37  ;;  %v4224_v37 = vld [vmem:[%s5184_s7] sm:$0xff]  }
0x1178   : > { %2517 = vadd.xlane.f32.xlu1 %v2516_v38  ;;  %v3649_v38 = vld [vmem:[%s5189_s2] ss:$0 sm:$0xff]  ;;  %s5195_s2 = smov %s5194_s28 }
0x11f8   : > { %v2457_v39 = vpop.xlane.xlu0 %2456 }
0x11f9   : > { %v2464_v40 = vmul.f32 0.03125, %v2457_v39 }
0x11fb   : > { %v2467_v41 = vsub.f32 %v2450_v52, %v2464_v40  ;;  %v2513_v52 = vld [vmem:[%s5187_s15] sm:$0x1]  ;;  %s5197_s15 = sld [smem:[#allocation23_spill]] }
0x11fc   : > { %v2463_v42 = vpop.xlane.xlu0 %2462 }
0x11fd   : > { %v2460_v43 = vpop.xlane.xlu1 %2459  ;;  %v2466_v44 = vmul.f32 0.03125, %v2463_v42  ;;  %v2470_v45 = vmul.f32 %v2467_v41, %v2467_v41 }
0x11fe   : > { %v2465_v46 = vmul.f32 0.03125, %v2460_v43 }
0x11ff   : > { %v2469_v47 = vsub.f32 %v2452_v35, %v2466_v44  ;;  %v2473_v48 = vsel %vm1153_vm2, %v2470_v45, 0.0 }
0x1200   : > { %v2468_v49 = vsub.f32 %v2451_v4, %v2465_v46  ;;  %2474 = vadd.xlane.f32.xlu0 %v2473_v48 }
0x1201   : > { %v2518_v50 = vpop.xlane.xlu1 %2517  ;;  %v2472_v51 = vmul.f32 %v2469_v47, %v2469_v47 }
0x1202   : > { %v2519_v54 = vmul.f32 0.03125, %v2518_v50  ;;  %v2471_v20 = vmul.f32 %v2468_v49, %v2468_v49 }
0x1203   : > { %v2479_v57 = vsel %vm1153_vm2, %v2472_v51, 0.0  ;;  %v2536_v51 = vld [vmem:[%s5190_s6] sm:$0x1] }
0x1204   : > { %v2520_v58 = vsub.f32 %v2512_v36, %v2519_v54  ;;  %v2476_v18 = vsel %vm1153_vm2, %v2471_v20, 0.0  ;;  %2480 = vadd.xlane.f32.xlu0 %v2479_v57  ;;  %v3654_v57 = vld [vmem:[%s5191_s12] ss:$0 sm:$0xff] }
0x1205   : > { %2477 = vadd.xlane.f32.xlu1 %v2476_v18 }
0x1206   : > { %v2521_v62 = vmul.f32 %v2520_v58, %v2520_v58 }
0x1208   : > { %v2522_v0 = vsel %vm2515_vm7, %v2521_v62, 0.0 }
0x1209   : > { %2523 = vadd.xlane.f32.xlu1 %v2522_v0 }
0x1289   : > { %v2475_v10 = vpop.xlane.xlu0 %2474 }
0x128a   : > { %v2482_v11 = vmul.f32 0.03125, %v2475_v10 }
0x128c   : > { %v2485_v60 = vadd.f32 1e-05, %v2482_v11 }
0x128d   : > { %v2481_v12 = vpop.xlane.xlu0 %2480 }
0x128e   : > { %4235 = vrsqrt.f32 %v2485_v60  ;;  %v2478_v14 = vpop.xlane.xlu1 %2477  ;;  %v2484_v15 = vmul.f32 0.03125, %v2481_v12 }
0x128f   : > { %v2483_v16 = vmul.f32 0.03125, %v2478_v14 }
0x1290   : > { %v2487_v17 = vadd.f32 1e-05, %v2484_v15 }
0x1291   : > { %v2486_v19 = vadd.f32 1e-05, %v2483_v16 }
0x1292   : > { %4237 = vrsqrt.f32 %v2487_v17  ;;  %v2524_v21 = vpop.xlane.xlu1 %2523 }
0x1293   : > { %4239 = vrsqrt.f32 %v2486_v19  ;;  %v2525_v22 = vmul.f32 0.03125, %v2524_v21 }
0x1295   : > { %v2526_v8 = vadd.f32 1e-05, %v2525_v22 }
0x1297   : > { %4241 = vrsqrt.f32 %v2526_v8 }
0x129b   : > { %v4236_v7 = vpop.eup %4235 }
0x129c   : > { %v2491_v24 = vmul.f32 %v4236_v7, %v2467_v41 }
0x129e   : > { %v2500_v29 = vmul.f32 %v3644_v25, %v2491_v24 }
0x129f   : > { %v4238_v26 = vpop.eup %4237 }
0x12a0   : > { %v4240_v9 = vpop.eup %4239  ;;  %v2493_v27 = vmul.f32 %v4238_v26, %v2469_v47  ;;  %v2509_v55 = vadd.f32 %v3645_v30, %v2500_v29 }
0x12a1   : > { %v2492_v28 = vmul.f32 %v4240_v9, %v2468_v49 }
0x12a2   : > { %v2502_v31 = vmul.f32 %v3644_v25, %v2493_v27 }
0x12a3   : > { %v2501_v2 = vmul.f32 %v3644_v25, %v2492_v28 }
0x12a4   : > { %v4242_v53 = vpop.eup %4241  ;;  %v2511_v59 = vadd.f32 %v3645_v30, %v2502_v31 }
0x12a5   : > { %v2510_v56 = vadd.f32 %v3645_v30, %v2501_v2  ;;  %v2528_v32 = vmul.f32 %v4242_v53, %v2520_v58 }
0x12a6   : > { %v2598_v33 = vpack.c.bf16 %v2511_v59, %v2511_v59 }
0x12a7   : > { %v2597_v35 = vpack.c.bf16 %v2510_v56, %v2509_v55  ;;  %v2529_v4 = vmul.f32 %v2528_v32, %v2513_v52 }
0x12a9   : > { %3895 = vmatprep.mubr.msk.bf16.mxu1 %vm1153_vm2, %v2597_v35  ;;  %v2530_v13 = vadd.f32 %v2529_v4, %v2514_v34 }
0x12aa   : > { %3896 = vmatmul.mubr.msk.bf16.vlgmr.msra.gmra.mxu1 %vm1153_vm2, %v2598_v33 }
0x12ab   : > { %v2535_v36 = vpack.c.bf16 %v2530_v13, %v2530_v13  ;;  %3911 = vmatprep.mubr.msk.bf16.mxu1 %vm4399_vm8, %v4398_v63 }
0x12ad   : > { %3888 = vmatmul.mubr.msk.bf16.vlgmr.msra.gmra.mxu0 %vm1153_vm2, %v2535_v36 }
0x12ae   : > { %3900 = vmatpush3.bf16.msra.mxu0 %v4223_v6  ;;  %3903 = vmatprep.mubr.msk.bf16.mxu0 %vm1153_vm2, %v2597_v35 }
0x12af   : > { %3901 = vmatprep.subr.bf16.mxu0 %v4224_v37 }
0x12b2   : > { %3902 = vmatpush3.bf16.msra.mxu0 %v4224_v37 }
0x12b3   : > { %3915 = vmatprep.subr.bf16.mxu0 %v4398_v63 }
0x12b5   : > { %3904 = vmatmul.mubr.msk.bf16.vlgmr.msra.gmra.mxu0 %vm1153_vm2, %v2598_v33 }
0x12b6   : > { %3919 = vmatprep.mubr.msk.bf16.mxu0 %vm4399_vm8, %v4398_v63 }
0x136a   : > { %v3897_v39 = vpop.f32.mrf.mxu1 }
0x136b   : > { %v2667_v40 = vadd.f32 %v3897_v39, %v3649_v38 }
0x136c   : > { %v2658_v41 = vpop.f32.mrf.mxu1 }
0x136d   : > { %v4952_v42 = vpack.c.bf16 %v2667_v40, %v2667_v40  ;;  %v2586_v43 = vpop.f32.mrf.mxu0  ;;  %v2659_v48 = vadd.f32 %v3649_v38, %v2658_v41 }
0x136e   : > { %v3898_v44 = vpop.f32.mrf.mxu1  ;;  %v2587_v58 = vadd.f32 %v2586_v43, %v2536_v51 }
0x136f   : > { %v3889_v45 = vpop.f32.mrf.mxu0  ;;  %v2753_v46 = vsel %vm1304_vm3, %v4952_v42, 0 }
0x1370   : > { %v2661_v47 = vpop.f32.mrf.mxu1  ;;  %3908 = vmatpush3.bf16.xpose.msra.mxu1 %v2753_v46  ;;  %v2592_v5 = vmul.f32 0.35355338, %v2587_v58 }
0x1371   : > { %v2662_v49 = vadd.f32 %v3649_v38, %v2661_v47  ;;  %v2589_v50 = vpop.f32.mrf.mxu0  ;;  %3909 = vmatprep.subr.bf16.mxu1 %v4398_v63 }
0x1372   : > { %v4969_v12 = vpack.c.bf16 %v2592_v5, %v2592_v5 }
0x1373   : > { %v4958_v54 = vpack.c.bf16 %v2662_v49, %v2659_v48  ;;  %v3890_v20 = vpop.f32.mrf.mxu0 }
0x1375   : > { %v3905_v18 = vpop.f32.mrf.mxu0  ;;  %v2750_v1 = vsel %vm1304_vm3, %v4958_v54, 0 }
0x1376   : > { %v2738_v62 = vadd.f32 %v3905_v18, %v3654_v57 }
0x1377   : > { %v2729_v0 = vpop.f32.mrf.mxu0 }
0x1378   : > { %v4963_v23 = vpack.c.bf16 %v2738_v62, %v2738_v62  ;;  %3910 = vmatpush3.bf16.xpose.msra.mxu1 %v2750_v1  ;;  %v2730_v11 = vadd.f32 %v3654_v57, %v2729_v0 }
0x1379   : > { %v3906_v61 = vpop.f32.mrf.mxu0  ;;  %3931 = vmatprep.subr.bf16.mxu1 %v4398_v63 }
0x137a   : > { %v2814_v6 = vsel %vm1412_vm5, %v4963_v23, 0 }
0x137b   : > { %v2732_v10 = vpop.f32.mrf.mxu0  ;;  %3916 = vmatpush3.bf16.msra.mxu0 %v2814_v6 }
0x137c   : > { %v2733_v60 = vadd.f32 %v3654_v57, %v2732_v10  ;;  %3917 = vmatprep.subr.bf16.mxu0 %v4398_v63 }
0x137e   : > { %v4971_v14 = vpack.c.bf16 %v2733_v60, %v2730_v11 }
0x137f   : > { %3912 = vmatmul.mubr.msk.bf16.vlgmr.msra.gmra.mxu1 %vm1304_vm3, %v4969_v12 }
0x1380   : > { %3918 = vmatpush3.bf16.msra.mxu0 %v4971_v14  ;;  %3935 = vmatprep.mubr.msk.bf16.mxu1 %vm4399_vm8, %v4398_v63 }
0x1381   : > { %3923 = vmatprep.subr.bf16.mxu0 %v4398_v63 }
0x143f   : > { %v2789_v15 = vpop.f32.mrf.mxu1 }
0x1440   : > { %v2790_v16 = vadd.f32 %v2789_v15, %v4647_v3 }
0x1441   : > { %v3913_v17 = vpop.f32.mrf.mxu1 }
0x1442   : > { %v2796_v19 = vsel %vm2795_vm9, %v2790_v16, -inf }
0x1443   : > { %2797 = vmax.xlane.f32.xlu0 %v2796_v19  ;;  %v2792_v21 = vpop.f32.mrf.mxu1 }
0x1445   : > { %v3914_v22 = vpop.f32.mrf.mxu1 }
0x1459   : > { %2863 = vrot.lane.b32.xlu0 %v4952_v42, %s4400_s18 }
0x14cc   : > { %v2798_v8 = vpop.xlane.xlu0 %2797 }
0x14cd   : > { %v2799_v7 = vsub.f32 %v2790_v16, %v2798_v8 }
0x14cf   : > { %v2800_v24 = vmul.f32 1.442695, %v2799_v7 }
0x14d0   : > { %v2864_v29 = vpop.permute.xlu0 %2863 }
0x14d1   : > { %4243 = vpow2.f32 %v2800_v24  ;;  %v2872_v31 = vsel %vm1304_vm3, %v2864_v29, 0 }
0x14de   : > { %v4244_v25 = vpop.eup %4243 }
0x14df   : > { %v2802_v26 = vsel %vm2795_vm9, %v4244_v25, 0.0 }
0x14e0   : > { %2803 = vadd.xlane.f32.xlu1 %v2802_v26 }
0x14f1   : > { %2861 = vrot.lane.b32.xlu1 %v4958_v54, %s4400_s18 }
0x14f5   : > { %2857 = vrot.lane.b32.xlu1 %v4969_v12, %s4400_s18 }
0x1569   : > { %v2804_v9 = vpop.xlane.xlu1 %2803 }
0x156a   : > { %4245 = vrcp.f32 %v2804_v9 }
0x156d   : > { %v2862_v2 = vpop.permute.xlu1 %2861 }
0x156e   : > { %v2869_v53 = vsel %vm1304_vm3, %v2862_v2, 0 }
0x1571   : > { %v2858_v59 = vpop.permute.xlu1 %2857 }
0x1577   : > { %v4246_v27 = vpop.eup %4245 }
0x1578   : > { %v2806_v28 = vmul.f32 %v4246_v27, %v4244_v25 }
0x157a   : > { %v2807_v30 = vpack.c.bf16 %v2806_v28, %v2806_v28 }
0x157c   : > { %3920 = vmatmul.mubr.msk.bf16.vlgmr.msra.gmra.mxu0 %vm1365_vm4, %v2807_v30 }
0x157d   : > { %3924 = vmatpush3.bf16.xpose.msra.mxu0 %v2872_v31  ;;  %3927 = vmatprep.mubr.msk.bf16.mxu0 %vm4399_vm8, %v4398_v63 }
0x157e   : > { %3925 = vmatprep.subr.bf16.mxu0 %v4398_v63 }
0x1585   : > { %3926 = vmatpush3.bf16.xpose.msra.mxu0 %v2869_v53 }
0x1586   : > { %3947 = vmatprep.subr.bf16.mxu0 %v4398_v63 }
0x158c   : > { %3928 = vmatmul.mubr.msk.bf16.vlgmr.msra.gmra.mxu0 %vm1304_vm3, %v2858_v59 }
0x158d   : > { %3951 = vmatprep.mubr.msk.bf16.mxu0 %vm4399_vm8, %v4398_v63 }
0x163c   : > { %v4998_v52 = vpop.f32.mrf.mxu0 }
0x163e   : > { %v3921_v55 = vpop.f32.mrf.mxu0 }
0x1640   : > { %v2853_v56 = vpop.f32.mrf.mxu0 }
0x1642   : > { %v3922_v32 = vpop.f32.mrf.mxu0 }
0x164c   : > { %v2908_v33 = vpop.f32.mrf.mxu0 }
0x164d   : > { %v2909_v34 = vadd.f32 %v2908_v33, %v4647_v3 }
0x164e   : > { %v3929_v35 = vpop.f32.mrf.mxu0 }
0x164f   : > { %v2914_v4 = vsel %vm2795_vm9, %v2909_v34, -inf }
0x1650   : > { %2915 = vmax.xlane.f32.xlu1 %v2914_v4  ;;  %v2911_v13 = vpop.f32.mrf.mxu0 }
0x1652   : > { %v3930_v36 = vpop.f32.mrf.mxu0 }
0x1661   : > { %2928 = vrot.lane.b32.xlu1 %v4971_v14, %s4400_s18 }
0x1665   : > { %2983 = vrot.lane.b32.xlu1 %v4952_v42, %s4401_s20 }
0x1669   : > { %2979 = vrot.lane.b32.xlu1 %v4969_v12, %s4401_s20 }
0x16d9   : > { %v2916_v37 = vpop.xlane.xlu1 %2915 }
0x16da   : > { %v2917_v38 = vsub.f32 %v2909_v34, %v2916_v37 }
0x16dc   : > { %v2918_v39 = vmul.f32 1.442695, %v2917_v38 }
0x16dd   : > { %v2929_v46 = vpop.permute.xlu1 %2928 }
0x16de   : > { %4247 = vpow2.f32 %v2918_v39 }
0x16e1   : > { %v2984_v49 = vpop.permute.xlu1 %2983 }
0x16e2   : > { %v2992_v51 = vsel %vm1304_vm3, %v2984_v49, 0 }
0x16e5   : > { %v2980_v58 = vpop.permute.xlu1 %2979 }
0x16eb   : > { %v4248_v40 = vpop.eup %4247 }
0x16ec   : > { %v2920_v41 = vsel %vm2795_vm9, %v4248_v40, 0.0 }
0x16ed   : > { %2921 = vadd.xlane.f32.xlu0 %v2920_v41  ;;  %v4225_v41 = vld [vmem:[%s5192_s23 + $0x8] sm:$0xff]  }
0x1703   : > { %2930 = vrot.lane.b32.xlu0 %v4963_v23, %s4400_s18 }
0x1707   : > { %2981 = vrot.lane.b32.xlu0 %v4958_v54, %s4401_s20 }
0x1776   : > { %v2922_v43 = vpop.xlane.xlu0 %2921 }
0x1777   : > { %4249 = vrcp.f32 %v2922_v43  ;;  %v4226_v43 = vld [vmem:[%s5193_s10] sm:$0xff]  }
0x177a   : > { %v2931_v44 = vpop.permute.xlu0 %2930 }
0x177b   : > { %v2937_v45 = vsel %vm1412_vm5, %v2931_v44, 0  ;;  %v4227_v44 = vld [vmem:[%s5194_s28 + $0x8] sm:$0xff]  }
0x177c   : > { %3932 = vmatpush3.bf16.msra.mxu1 %v2937_v45 }
0x177d   : > { %3933 = vmatprep.subr.bf16.mxu1 %v4398_v63 }
0x177e   : > { %v2982_v20 = vpop.permute.xlu0 %2981 }
0x177f   : > { %v2989_v57 = vsel %vm1304_vm3, %v2982_v20, 0 }
0x1780   : > { %3934 = vmatpush3.bf16.msra.mxu1 %v2929_v46 }
0x1781   : > { %3939 = vmatprep.subr.bf16.mxu1 %v4398_v63 }
0x1784   : > { %v4250_v47 = vpop.eup %4249 }
0x1785   : > { %v2924_v48 = vmul.f32 %v4250_v47, %v4248_v40 }
0x1787   : > { %v2925_v50 = vpack.c.bf16 %v2924_v48, %v2924_v48 }
0x1789   : > { %3936 = vmatmul.mubr.msk.bf16.vlgmr.msra.gmra.mxu1 %vm1365_vm4, %v2925_v50 }
0x178a   : > { %3940 = vmatpush3.bf16.xpose.msra.mxu1 %v2992_v51  ;;  %3943 = vmatprep.mubr.msk.bf16.mxu1 %vm4399_vm8, %v4398_v63 }
0x178b   : > { %3941 = vmatprep.subr.bf16.mxu1 %v4398_v63 }
0x1792   : > { %3942 = vmatpush3.bf16.xpose.msra.mxu1 %v2989_v57 }
0x1793   : > { %3963 = vmatprep.subr.bf16.mxu1 %v4398_v63 }
0x1799   : > { %3944 = vmatmul.mubr.msk.bf16.vlgmr.msra.gmra.mxu1 %vm1304_vm3, %v2980_v58 }
0x179a   : > { %3967 = vmatprep.mubr.msk.bf16.mxu1 %vm4399_vm8, %v4398_v63 }
0x1849   : > { %v2973_v18 = vpop.f32.mrf.mxu1 }
0x184b   : > { %v3937_v62 = vpop.f32.mrf.mxu1 }
0x184c   : > { %v3235_v62 = vld [vmem:[%s5196_s1] sm:$0x1] }
0x184d   : > { %v2976_v0 = vpop.f32.mrf.mxu1 }
0x184f   : > { %v3938_v1 = vpop.f32.mrf.mxu1 }
0x1859   : > { %v3028_v5 = vpop.f32.mrf.mxu1 }
0x185a   : > { %v3029_v61 = vadd.f32 %v3028_v5, %v4647_v3 }
0x185b   : > { %v3945_v6 = vpop.f32.mrf.mxu1 }
0x185c   : > { %v3034_v10 = vsel %vm2795_vm9, %v3029_v61, -inf }
0x185d   : > { %3035 = vmax.xlane.f32.xlu0 %v3034_v10  ;;  %v3031_v11 = vpop.f32.mrf.mxu1  ;;  %v3296_v10 = vld [vmem:[%s5197_s15] sm:$0x1] }
0x185f   : > { %v3946_v60 = vpop.f32.mrf.mxu1 }
0x1873   : > { %3048 = vrot.lane.b32.xlu0 %v4963_v23, %s4401_s20 }
0x1877   : > { %3101 = vrot.lane.b32.xlu0 %v4952_v42, %s4402_s27 }
0x187b   : > { %3097 = vrot.lane.b32.xlu0 %v4969_v12, %s4402_s27 }
0x18e6   : > { %v3036_v15 = vpop.xlane.xlu0 %3035 }
0x18e7   : > { %v3037_v16 = vsub.f32 %v3029_v61, %v3036_v15 }
0x18e9   : > { %v3038_v17 = vmul.f32 1.442695, %v3037_v16 }
0x18ea   : > { %v3049_v19 = vpop.permute.xlu0 %3048 }
0x18eb   : > { %4251 = vpow2.f32 %v3038_v17  ;;  %v3055_v21 = vsel %vm1412_vm5, %v3049_v19, 0 }
0x18ec   : > { %3948 = vmatpush3.bf16.msra.mxu0 %v3055_v21 }
0x18ed   : > { %3949 = vmatprep.subr.bf16.mxu0 %v4398_v63 }
0x18ee   : > { %v3102_v25 = vpop.permute.xlu0 %3101 }
0x18ef   : > { %v3110_v9 = vsel %vm1304_vm3, %v3102_v25, 0 }
0x18f2   : > { %v3098_v28 = vpop.permute.xlu0 %3097 }
0x18f8   : > { %v4252_v22 = vpop.eup %4251 }
0x18f9   : > { %v3040_v8 = vsel %vm2795_vm9, %v4252_v22, 0.0 }
0x18fa   : > { %3041 = vadd.xlane.f32.xlu1 %v3040_v8 }
0x190b   : > { %3046 = vrot.lane.b32.xlu1 %v4971_v14, %s4401_s20 }
0x190f   : > { %3099 = vrot.lane.b32.xlu1 %v4958_v54, %s4402_s27 }
0x1983   : > { %v3042_v42 = vpop.xlane.xlu1 %3041 }
0x1984   : > { %4253 = vrcp.f32 %v3042_v42 }
0x1987   : > { %v3047_v12 = vpop.permute.xlu1 %3046 }
0x1988   : > { %3950 = vmatpush3.bf16.msra.mxu0 %v3047_v12 }
0x1989   : > { %3955 = vmatprep.subr.bf16.mxu0 %v4398_v63 }
0x198b   : > { %v3100_v54 = vpop.permute.xlu1 %3099 }
0x198c   : > { %v3107_v27 = vsel %vm1304_vm3, %v3100_v54, 0 }
0x1991   : > { %v4254_v7 = vpop.eup %4253 }
0x1992   : > { %v3044_v24 = vmul.f32 %v4254_v7, %v4252_v22 }
0x1994   : > { %v3045_v26 = vpack.c.bf16 %v3044_v24, %v3044_v24 }
0x1996   : > { %3952 = vmatmul.mubr.msk.bf16.vlgmr.msra.gmra.mxu0 %vm1365_vm4, %v3045_v26 }
0x1997   : > { %3956 = vmatpush3.bf16.xpose.msra.mxu0 %v3110_v9  ;;  %3959 = vmatprep.mubr.msk.bf16.mxu0 %vm4399_vm8, %v4398_v63 }
0x1998   : > { %3957 = vmatprep.subr.bf16.mxu0 %v4398_v63 }
0x199f   : > { %3958 = vmatpush3.bf16.xpose.msra.mxu0 %v3107_v27 }
0x19a0   : > { %3979 = vmatprep.subr.bf16.mxu0 %v4398_v63 }
0x19a6   : > { %3960 = vmatmul.mubr.msk.bf16.vlgmr.msra.gmra.mxu0 %vm1304_vm3, %v3098_v28 }
0x19a7   : > { %3983 = vmatprep.mubr.msk.bf16.mxu0 %vm4399_vm8, %v4398_v63  ;;  %3980 = vmatpush3.bf16.msra.mxu0 %v4227_v44 }
0x19a8   : > { %3981 = vmatprep.subr.bf16.mxu0 %v4398_v63 }
0x1a56   : > { %v3091_v29 = vpop.f32.mrf.mxu0 }
0x1a58   : > { %v3953_v30 = vpop.f32.mrf.mxu0 }
0x1a5a   : > { %v3094_v31 = vpop.f32.mrf.mxu0 }
0x1a5c   : > { %v3954_v2 = vpop.f32.mrf.mxu0 }
0x1a66   : > { %v3146_v53 = vpop.f32.mrf.mxu0 }
0x1a67   : > { %v3147_v59 = vadd.f32 %v3146_v53, %v4647_v3 }
0x1a68   : > { %v3961_v55 = vpop.f32.mrf.mxu0 }
0x1a69   : > { %v3152_v56 = vsel %vm2795_vm9, %v3147_v59, -inf }
0x1a6a   : > { %3153 = vmax.xlane.f32.xlu1 %v3152_v56  ;;  %v3149_v32 = vpop.f32.mrf.mxu0 }
0x1a6c   : > { %v3962_v33 = vpop.f32.mrf.mxu0 }
0x1a7b   : > { %3164 = vrot.lane.b32.xlu1 %v4971_v14, %s4402_s27 }
0x1a7f   : > { %3216 = vrot.lane.b32.xlu1 %v2973_v18, %s4403_s4 }
0x1af3   : > { %v3154_v34 = vpop.xlane.xlu1 %3153 }
0x1af4   : > { %v3155_v35 = vsub.f32 %v3147_v59, %v3154_v34 }
0x1af6   : > { %v3156_v4 = vmul.f32 1.442695, %v3155_v35 }
0x1af7   : > { %v3165_v38 = vpop.permute.xlu1 %3164 }
0x1af8   : > { %4255 = vpow2.f32 %v3156_v4 }
0x1afb   : > { %v3217_v49 = vpop.permute.xlu1 %3216 }
0x1afc   : > { %v3227_v51 = vsel %vm1304_vm3, %v4998_v52, %v3217_v49 }
0x1b05   : > { %v4256_v13 = vpop.eup %4255 }
0x1b06   : > { %v3158_v36 = vsel %vm2795_vm9, %v4256_v13, 0.0 }
0x1b07   : > { %3159 = vadd.xlane.f32.xlu0 %v3158_v36 }
0x1b1d   : > { %3166 = vrot.lane.b32.xlu0 %v4963_v23, %s4402_s27 }
0x1b21   : > { %3220 = vrot.lane.b32.xlu0 %v3091_v29, %s4404_s22 }
0x1b90   : > { %v3160_v3 = vpop.xlane.xlu0 %3159 }
0x1b91   : > { %4257 = vrcp.f32 %v3160_v3 }
0x1b94   : > { %v3167_v14 = vpop.permute.xlu0 %3166 }
0x1b95   : > { %v3173_v37 = vsel %vm1412_vm5, %v3167_v14, 0 }
0x1b96   : > { %3964 = vmatpush3.bf16.msra.mxu1 %v3173_v37 }
0x1b97   : > { %3965 = vmatprep.subr.bf16.mxu1 %v4398_v63 }
0x1b98   : > { %v3221_v50 = vpop.permute.xlu0 %3220 }
0x1b99   : > { %v3228_v20 = vsel %vm2000_vm6, %v3227_v51, %v3221_v50 }
0x1b9a   : > { %3966 = vmatpush3.bf16.msra.mxu1 %v3165_v38 }
0x1b9b   : > { %3971 = vmatprep.subr.bf16.mxu1 %v4398_v63 }
0x1b9e   : > { %v4258_v39 = vpop.eup %4257 }
0x1b9f   : > { %v3162_v40 = vmul.f32 %v4258_v39, %v4256_v13 }
0x1ba1   : > { %v3163_v23 = vpack.c.bf16 %v3162_v40, %v3162_v40 }
0x1ba3   : > { %3968 = vmatmul.mubr.msk.bf16.vlgmr.msra.gmra.mxu1 %vm1365_vm4, %v3163_v23 }
0x1ba4   : > { %3975 = vmatprep.mubr.msk.bf16.mxu1 %vm4399_vm8, %v4398_v63  ;;  %3972 = vmatpush3.bf16.msra.mxu1 %v4225_v41 }
0x1ba5   : > { %3973 = vmatprep.subr.bf16.mxu1 %v4398_v63  ;;  %v4228_v63 = vld [vmem:[%s5195_s2] sm:$0xff]  }
0x1ba6   : > { %3982 = vmatpush3.bf16.msra.mxu0 %v4228_v63 }
0x1ba8   : > { %3974 = vmatpush3.bf16.msra.mxu1 %v4226_v43 }
0x1c63   : > { %v3209_v45 = vpop.f32.mrf.mxu1 }
0x1c64   : > { %3224 = vrot.lane.b32.xlu1 %v3209_v45, %s4405_s26 }
0x1c65   : > { %v3969_v46 = vpop.f32.mrf.mxu1 }
0x1c67   : > { %v3212_v47 = vpop.f32.mrf.mxu1 }
0x1c69   : > { %v3970_v48 = vpop.f32.mrf.mxu1 }
0x1cd6   : > { %v3225_v57 = vpop.permute.xlu1 %3224 }
0x1cd7   : > { %v3229_v58 = vsel %vm1365_vm4, %v3228_v20, %v3225_v57 }
0x1cd8   : > { %v3234_v18 = vpack.c.bf16 %v3229_v58, %v3229_v58 }
0x1cda   : > { %3976 = vmatmul.mubr.msk.bf16.vlgmr.msra.gmra.mxu1 %vm1153_vm2, %v3234_v18 }
0x1d9a   : > { %v3285_v0 = vpop.f32.mrf.mxu1 }
0x1d9b   : > { %v3286_v1 = vadd.f32 %v3285_v0, %v3235_v62 }
0x1d9c   : > { %v3977_v5 = vpop.f32.mrf.mxu1 }
0x1d9d   : > { %v3295_v61 = vpack.c.bf16 %v3286_v1, %v3286_v1 }
0x1d9e   : > { %v3288_v6 = vpop.f32.mrf.mxu1 }
0x1d9f   : > { %3984 = vmatmul.mubr.msk.bf16.vlgmr.msra.gmra.mxu0 %vm1153_vm2, %v3295_v61 }
0x1da0   : > { %v3978_v52 = vpop.f32.mrf.mxu1 }
0x1e5f   : > { %v3346_v11 = vpop.f32.mrf.mxu0 }
0x1e60   : > { %v3347_v60 = vadd.f32 %v3346_v11, %v3296_v10 }
0x1e61   : > { %v3985_v15 = vpop.f32.mrf.mxu0 }
0x1e62   : > { %3352 = vst [vmem:[%s4678_s13] sm:$0x1] %v3347_v60 }
0x1e63   : > { %v3349_v16 = vpop.f32.mrf.mxu0 }
0x1e65   : > { %v3986_v17 = vpop.f32.mrf.mxu0 }
0x1e66 PF: > { %s5198_s6 = sld [smem:[#allocation27_spill]]  ;;  %s3366_s4 = sshll.u32 %s4678_s13, 4  ;;  %s3367_s4 = int_to_ptr.vmem [resolvable:$true] %s3366_s4 }
0x1e67   : > { %s5199_s12 = sld [smem:[#allocation24_spill]]  ;;  %s5201_s22 = sand.u32 1, %s4327_s16  }
0x1e68   : > { %s3354_s23 = scalar_lea.sflag [#allocation4], %s5201_s22  ;;  %s4259_s28 = scalar_lea.vmem %s3367_s4, 16 }
0x1e69   : > { %p4260_p2 = scmp.ne.s32.totalorder %s3367_s4, %s4259_s28  ;;  %s4406_s1 = smov [#allocation3]  }
0x1e6a   : > { %s4263_s26 = sshll.u32 %s4406_s1, 4  ;;  %s4264_s26 = int_to_ptr.vmem [resolvable:$false] %s4263_s26 }
0x1e6b   : > { %p4261_p4 = pnand %p4260_p2, %p4616_p3  ;;  %s4265_s15 = scalar_lea.vmem %s4264_s26, 32 }
0x1e6c   : > { %s3673_s20 = sshll.u32 %s5198_s6, 4  ;;  %p4266_p6 = scmp.lt.s32.totalorder %s3367_s4, %s4264_s26 }
0x1e6d   : > { %s3364_s27 = scalar_lea.hbm %s5199_s12, %s3673_s20  ;;  %p4262_p5 = pneg %p4261_p4 }
0x1e6e   : > { %p4267_p7 = scmp.lt.s32.totalorder %s4265_s15, %s4259_s28 }
0x1e70   : > { %p4268_p8 = por %p4267_p7, %p4266_p6 }
0x1e72   : > { %p4269_p10 = pnand %p4268_p8, %p4262_p5 }
0x1e74   : > { %4272 = shalt.err (!%p4269_p10)
}
0x1e75   : > { %s4273_s6 = scalar_lea.hbm %s3364_s27, 16  ;;  %s4277_s13 = scalar_lea.hbm %s5199_s12, 32 }
0x1e76   : > { %p4274_p11 = scmp.ne.s32.totalorder %s3364_s27, %s4273_s6  ;;  %p4278_p0 = scmp.lt.s32.totalorder %s3364_s27, %s5199_s12 }
0x1e77   : > { %p4279_p1 = scmp.lt.s32.totalorder %s4277_s13, %s4273_s6 }
0x1e78   : > { %p4275_p12 = pnand %p4274_p11, %p4616_p3 }
0x1e79   : > { %p4280_p2 = por %p4279_p1, %p4278_p0 }
0x1e7a   : > { %p4276_p13 = pneg %p4275_p12 }
0x1e7c   : > { %p4281_p4 = pnand %p4280_p2, %p4276_p13 }
0x1e7e   : > { %4284 = shalt.err (!%p4281_p4)
}
0x1e7f   : > { %4000 = dma.vmem_to_hbm [thread:$0]  (%p4616_p3), %s3367_s4, 16, %s3364_s27, %s3354_s23  }
0x1e80 PF: > { %s5202_s20 = sld [smem:[#allocation30_spill]] }
0x1e81   : > { %s5203_s22 = sld [smem:[#allocation25_spill]] }
0x1e86   : > { %p4006_p5 = scmp.ge.s32.totalorder %s5202_s20, 2 }
0x1e87   : > { %s3378_s1 = sand.u32 1, %s5203_s22  }
0x1e88   : > { %p4003_p6 = pnand %p4006_p5, %p4626_p9  ;;  %s3379_s26 = scalar_lea.sflag [#allocation4], %s3378_s1 }
0x1e8a   : > { %p4004_p7 = pneg %p4003_p6 }
0x1e8c   : > { %4318 = dma.done.wait (%p4004_p7), %s3379_s26, 16  }
0x1e8d   : > { %4320 = vsyncadd (%p4004_p7), %s3379_s26, 4294967280  ;;  %s74_s1 = sadd.s32 1, %s5202_s20   ;;  %s5205_s6 = sld [smem:[#allocation26_spill]] }
0x1e8e   : > { %p71_p8 = scmp.ge.s32.totalorder %s74_s1, 6   ;;  %s5206_s18 = sld [smem:[#allocation35_spill]] }
0x1e8f   : > { %s5207_s22 = sld [smem:[#allocation28_spill]]  ;;  %s5211_s15 = smov %s4327_s16 }
0x1e90   : > { %s5208_s23 = sld [smem:[#allocation29_spill]]  ;;  %73 = sbr.rel (!%p71_p8) target bundleno = 68 (0x44), region = 249 }
0x1e91   : > { %s5209_s26 = sld [smem:[#allocation31_spill]] }
0x1e92   : > { %s5210_s28 = sld [smem:[#allocation33_spill]] }
0x1e93   : > { %s5212_s16 = smov %s5205_s6 }
0x1e95   :  { %3383 = vsyncpa [#allocation4], 1 }
0x1e96   :  { %3385 = vsyncpa [#allocation4 + $0x1], 1 }

</bundles_post_ra>
